<compile_context>
chip_gen: v7x
topology: tpu7x:2x2x1
jax: 0.10.0
libtpu: 0.0.40
codegen_flags: <defaults>
</compile_context>

<pallas_src>
import functools

import jax
import jax.numpy as jnp
from jax.experimental import pallas as pl
from jax.experimental.pallas import tpu as pltpu

BN_EPS = 1e-3
_TM_MM = 512     # rows per matmul tile (512-1024 rows ~ HBM-roofline sweet spot)


def _silu(y):
    # y * sigmoid(y): the transcendental rides the EUP slot.
    return y * jax.nn.sigmoid(y)


def _fold_bn(bn):
    scale = bn["gamma"] * jax.lax.rsqrt(bn["var"] + BN_EPS)
    shift = bn["beta"] - bn["mean"] * scale
    return scale.astype(jnp.float32), shift.astype(jnp.float32)


# ----------------------------------------------------------------------------
# Pallas kernels (all compute happens here; wrappers only reshape/pad)
# ----------------------------------------------------------------------------
def _mm_fused_kernel(x_ref, w_ref, s_ref, b_ref, o_ref, *, act):
    # (tm, K) @ (K, N) on the MXU (bf16 operands, f32 accumulate).  The folded
    # BatchNorm affine (+ optional SiLU) rides the store as an epilogue.
    y = jnp.dot(x_ref[...].astype(jnp.bfloat16), w_ref[...],
                preferred_element_type=jnp.float32)
    y = y * s_ref[...] + b_ref[...]
    if act == "silu":
        y = _silu(y)
    o_ref[...] = y.astype(o_ref.dtype)


def _mm_fused_res_kernel(x_ref, w_ref, s_ref, b_ref, r_ref, o_ref, *, act):
    y = jnp.dot(x_ref[...].astype(jnp.bfloat16), w_ref[...],
                preferred_element_type=jnp.float32)
    y = y * s_ref[...] + b_ref[...]
    if act == "silu":
        y = _silu(y)
    o_ref[...] = (y + r_ref[...]).astype(o_ref.dtype)


def _mm_bn_silu_multi_kernel(x_ref, w_ref, s_ref, b_ref,
                             o_raw_ref, o_bn_ref, o_act_ref):
    # One MXU pass, three feature outputs: conv, BN(conv), SiLU(BN(conv)).
    y = jnp.dot(x_ref[...].astype(jnp.bfloat16), w_ref[...],
                preferred_element_type=jnp.float32)
    o_raw_ref[...] = y.astype(o_raw_ref.dtype)
    yb = y * s_ref[...] + b_ref[...]
    o_bn_ref[...] = yb.astype(o_bn_ref.dtype)
    o_act_ref[...] = _silu(yb).astype(o_act_ref.dtype)


def _dwconv_bn_act_kernel(xph_ref, w_ref, s_ref, b_ref, o_ref, *,
                          kh, kw, stride, act):
    # xph_ref: (P, 1, Hph, Wph, C)  stride-phase decomposed, padded input
    # w_ref:   (kh*kw, 1, 1, 1, C)  per-tap depthwise weights
    # s_ref/b_ref: (1, 1, 1, C)     folded BatchNorm
    # o_ref:   (1, Ho, Wo, C)
    _, Ho, Wo, C = o_ref.shape
    P = xph_ref.shape[0]
    phases = [xph_ref[p] for p in range(P)]           # (1, Hph, Wph, C) each
    acc = jnp.zeros((1, Ho, Wo, C), jnp.float32)
    for i in range(kh):
        for j in range(kw):
            p = (i % stride) * stride + (j % stride)
            di, dj = i // stride, j // stride
            tap = phases[p][:, di:di + Ho, dj:dj + Wo, :]
            acc = acc + tap * w_ref[i * kw + j]
    y = acc * s_ref[...] + b_ref[...]
    if act == "silu":
        y = _silu(y)
    o_ref[...] = y.astype(o_ref.dtype)


# ----------------------------------------------------------------------------
# pallas_call wrappers
# ----------------------------------------------------------------------------
def pallas_matmul_fused(x, w, scale=None, shift=None, act=None, residual=None):
    """(M, K) @ (K, N) with fused per-channel affine (+SiLU, +residual).

    bf16 MXU operands (activation cast in-kernel), f32 accumulation/epilogue.
    M-tiled grid with double-buffered pipelining; "parallel" so v7x can shard
    the grid over both TensorCores.
    """
    M, K = x.shape
    N = w.shape[1]
    if scale is None:
        scale = jnp.ones((N,), jnp.float32)
    if shift is None:
        shift = jnp.zeros((N,), jnp.float32)

    wb = w.astype(jnp.bfloat16)
    s2 = scale.reshape(1, N).astype(jnp.float32)
    b2 = shift.reshape(1, N).astype(jnp.float32)

    tm = M if M <= _TM_MM else _TM_MM      # tm is full-M or a multiple of 8
    gm = pl.cdiv(M, tm)

    in_specs = [
        pl.BlockSpec((tm, K), lambda i: (i, 0)),
        pl.BlockSpec((K, N), lambda i: (0, 0)),
        pl.BlockSpec((1, N), lambda i: (0, 0)),
        pl.BlockSpec((1, N), lambda i: (0, 0)),
    ]
    args = [x.astype(jnp.float32), wb, s2, b2]
    if residual is not None:
        in_specs.append(pl.BlockSpec((tm, N), lambda i: (i, 0)))
        args.append(residual.astype(jnp.float32))
        kernel = functools.partial(_mm_fused_res_kernel, act=act)
    else:
        kernel = functools.partial(_mm_fused_kernel, act=act)

    return pl.pallas_call(
        kernel,
        out_shape=jax.ShapeDtypeStruct((M, N), jnp.float32),
        grid=(gm,),
        in_specs=in_specs,
        out_specs=pl.BlockSpec((tm, N), lambda i: (i, 0)),
        compiler_params=pltpu.CompilerParams(
            dimension_semantics=("parallel",)),
    )(*args)


def pallas_matmul_bn_silu_multi(x, w, scale, shift):
    """One matmul pass producing (conv, BN(conv), SiLU(BN(conv)))."""
    M, K = x.shape
    N = w.shape[1]
    wb = w.astype(jnp.bfloat16)
    s2 = scale.reshape(1, N).astype(jnp.float32)
    b2 = shift.reshape(1, N).astype(jnp.float32)

    tm = M if M <= _TM_MM else _TM_MM
    gm = pl.cdiv(M, tm)

    return pl.pallas_call(
        _mm_bn_silu_multi_kernel,
        out_shape=(jax.ShapeDtypeStruct((M, N), jnp.float32),
                   jax.ShapeDtypeStruct((M, N), jnp.float32),
                   jax.ShapeDtypeStruct((M, N), jnp.float32)),
        grid=(gm,),
        in_specs=[pl.BlockSpec((tm, K), lambda i: (i, 0)),
                  pl.BlockSpec((K, N), lambda i: (0, 0)),
                  pl.BlockSpec((1, N), lambda i: (0, 0)),
                  pl.BlockSpec((1, N), lambda i: (0, 0))],
        out_specs=[pl.BlockSpec((tm, N), lambda i: (i, 0)),
                   pl.BlockSpec((tm, N), lambda i: (i, 0)),
                   pl.BlockSpec((tm, N), lambda i: (i, 0))],
        compiler_params=pltpu.CompilerParams(
            dimension_semantics=("parallel",)),
    )(x.astype(jnp.float32), wb, s2, b2)


def _tf_same_pad(x, kh, kw, stride):
    """TF 'SAME' padding for NHWC input."""
    N, H, W, C = x.shape
    out_h = -(-H // stride)
    out_w = -(-W // stride)
    pad_h = max((out_h - 1) * stride + kh - H, 0)
    pad_w = max((out_w - 1) * stride + kw - W, 0)
    return jnp.pad(x, ((0, 0), (pad_h // 2, pad_h - pad_h // 2),
                       (pad_w // 2, pad_w - pad_w // 2), (0, 0)))


def dwconv_bn_act(x, w, bn, stride, act="silu"):
    """Depthwise 3x3 conv with fused folded-BN (+SiLU).  x: NHWC, w: (kh,kw,C).

    No im2col / 9x tap stack: the wrapper does a single stride-phase
    reorganisation of the padded input (skipped entirely for stride 1) and the
    kernel accumulates the kh*kw taps in VMEM with contiguous static slices.
    Grid over the batch dim (parallel on v7x).
    """
    # TODO(synk): large images need spatial tiling with halos; whole (padded)
    # image per batch element is kept in VMEM here, which is fine at these sizes.
    kh, kw, C = w.shape
    xp = _tf_same_pad(x, kh, kw, stride)
    N, Hp, Wp, _ = xp.shape
    Ho = (Hp - kh) // stride + 1
    Wo = (Wp - kw) // stride + 1

    s = stride
    if s == 1:
        xph = xp[None]                                   # (1, N, Hp, Wp, C)
        Hph, Wph = Hp, Wp
    else:
        Hph = -(-Hp // s)
        Wph = -(-Wp // s)
        phases = []
        for a in range(s):
            for b in range(s):
                ph = xp[:, a::s, b::s, :]
                ph = jnp.pad(ph, ((0, 0), (0, Hph - ph.shape[1]),
                                  (0, Wph - ph.shape[2]), (0, 0)))
                phases.append(ph)
        xph = jnp.stack(phases, axis=0)                  # (s*s, N, Hph, Wph, C)
    P = s * s

    scale, shift = _fold_bn(bn)
    wtaps = w.reshape(kh * kw, 1, 1, 1, C).astype(jnp.float32)
    s4 = scale.reshape(1, 1, 1, C)
    b4 = shift.reshape(1, 1, 1, C)

    return pl.pallas_call(
        functools.partial(_dwconv_bn_act_kernel, kh=kh, kw=kw,
                          stride=stride, act=act),
        out_shape=jax.ShapeDtypeStruct((N, Ho, Wo, C), jnp.float32),
        grid=(N,),
        in_specs=[
            pl.BlockSpec((P, 1, Hph, Wph, C), lambda n: (0, n, 0, 0, 0)),
            pl.BlockSpec((kh * kw, 1, 1, 1, C), lambda n: (0, 0, 0, 0, 0)),
            pl.BlockSpec((1, 1, 1, C), lambda n: (0, 0, 0, 0)),
            pl.BlockSpec((1, 1, 1, C), lambda n: (0, 0, 0, 0)),
        ],
        out_specs=pl.BlockSpec((1, Ho, Wo, C), lambda n: (n, 0, 0, 0)),
        compiler_params=pltpu.CompilerParams(
            dimension_semantics=("parallel",)),
    )(xph, wtaps, s4, b4)


# ----------------------------------------------------------------------------
# NHWC-level ops
# ----------------------------------------------------------------------------
def conv1x1_bn_act(x, w, bn=None, act=None, residual=None):
    """Pointwise conv with optional fused folded-BN, SiLU and residual add."""
    N, H, W, C = x.shape
    scale = shift = None
    if bn is not None:
        scale, shift = _fold_bn(bn)
    r = None
    if residual is not None:
        r = residual.reshape(N * H * W, residual.shape[-1])
    y = pallas_matmul_fused(x.reshape(N * H * W, C), w, scale, shift,
                            act=act, residual=r)
    return y.reshape(N, H, W, w.shape[1])


def conv1x1_bn_silu_multi(x, w, bn):
    """Head segment: conv_head, bn2 and act2 features from one kernel."""
    N, H, W, C = x.shape
    scale, shift = _fold_bn(bn)
    raw, ybn, yact = pallas_matmul_bn_silu_multi(
        x.reshape(N * H * W, C), w, scale, shift)
    Cout = w.shape[1]
    rs = lambda a: a.reshape(N, H, W, Cout)
    return rs(raw), rs(ybn), rs(yact)


def conv2d_stem_bn_silu_multi(x, w, bn, stride):
    """Stem segment: full 3x3 conv (Cin=3) + bn1 + act1 features from one
    kernel.  im2col in the wrapper (cheap at Cin=3, feeds the MXU a dense
    contraction), K zero-padded 27->32 (dense sublanes), M-tiled matmul."""
    kh, kw, cin, cout = w.shape
    xp = _tf_same_pad(x, kh, kw, stride)
    N, Hp, Wp, _ = xp.shape
    Ho = (Hp - kh) // stride + 1
    Wo = (Wp - kw) // stride + 1
    patches = [xp[:, i:i + stride * Ho:stride, j:j + stride * Wo:stride, :]
               for i in range(kh) for j in range(kw)]
    xmat = jnp.concatenate(patches, axis=-1).reshape(N * Ho * Wo, kh * kw * cin)
    wmat = w.reshape(kh * kw * cin, cout)
    K = kh * kw * cin
    Kpad = -(-K // 8) * 8                       # 27 -> 32: dense sublanes
    xmat = jnp.pad(xmat, ((0, 0), (0, Kpad - K)))
    wmat = jnp.pad(wmat, ((0, Kpad - K), (0, 0)))
    scale, shift = _fold_bn(bn)
    raw, ybn, yact = pallas_matmul_bn_silu_multi(xmat, wmat, scale, shift)
    rs = lambda a: a.reshape(N, Ho, Wo, cout)
    return rs(raw), rs(ybn), rs(yact)


# ----------------------------------------------------------------------------
# Encoder (mirrors the PyTorch forward: collect a feature per module / block)
# ----------------------------------------------------------------------------
def _init_bn(c, key):
    k1, k2 = jax.random.split(key)
    return dict(gamma=1.0 + 0.1 * jax.random.normal(k1, (c,), jnp.float32),
                beta=0.05 * jax.random.normal(k2, (c,), jnp.float32),
                mean=jnp.zeros((c,), jnp.float32),
                var=jnp.ones((c,), jnp.float32))


def _w(key, shape, fan_in):
    return jax.random.normal(key, shape, jnp.float32) / jnp.sqrt(fan_in)


def _mbconv(p, x, ex, bn_ex, dw, bn_dw, pw, bn_pw, stride):
    y = conv1x1_bn_act(x, p[ex], p[bn_ex], act="silu")           # expand+BN+SiLU
    y = dwconv_bn_act(y, p[dw], p[bn_dw], stride=stride, act="silu")
    # TODO(synk): squeeze-and-excitation sub-module omitted
    y = conv1x1_bn_act(y, p[pw], p[bn_pw], act=None)             # project + BN
    return y


def _encoder_forward(p, x_nchw):
    nhwc = []
    x = jnp.transpose(x_nchw, (0, 2, 3, 1)).astype(jnp.float32)   # -> NHWC

    # conv_stem / bn1 / act1 : one fused multi-output kernel, three features
    stem, bn1, act1 = conv2d_stem_bn_silu_multi(x, p["stem_w"], p["bn1"],
                                                stride=2)
    nhwc += [stem, bn1, act1]
    x = act1

    # blocks[0]: depthwise-separable, stride 1, residual fused into epilogue
    y = dwconv_bn_act(x, p["b0_dw"], p["b0_bn_dw"], stride=1, act="silu")
    x = conv1x1_bn_act(y, p["b0_pw"], p["b0_bn_pw"], act=None, residual=x)
    nhwc.append(x)

    # blocks[1]: MBConv expand x4, stride 2
    x = _mbconv(p, x, "b1_ex", "b1_bn_ex", "b1_dw", "b1_bn_dw",
                "b1_pw", "b1_bn_pw", stride=2)
    nhwc.append(x)

    # blocks[2]: MBConv expand x4, stride 2
    x = _mbconv(p, x, "b2_ex", "b2_bn_ex", "b2_dw", "b2_bn_dw",
                "b2_pw", "b2_bn_pw", stride=2)
    nhwc.append(x)

    # conv_head / bn2 / act2 : one fused multi-output kernel, three features
    head, bn2, act2 = conv1x1_bn_silu_multi(x, p["head_w"], p["bn2"])
    nhwc += [head, bn2, act2]

    # Single NHWC->NCHW transpose per feature, outside the compute chain.
    features = [x_nchw] + [jnp.transpose(f, (0, 3, 1, 2)) for f in nhwc]
    features.append(features[-1])                    # global_pool = Identity
    features.append(features[-1])                    # classifier  = Identity
    return features


_encoder_forward_jit = jax.jit(_encoder_forward)


class PallasEncoder:
    # scaled-down channel plan: stem=16, blocks -> 16, 24, 32, head=128
    def __init__(self, key):
        ks = iter(jax.random.split(key, 32))
        self.p = {
            "stem_w": _w(next(ks), (3, 3, 3, 16), 27),
            "bn1": _init_bn(16, next(ks)),
            # block 0: depthwise-separable, stride 1, 16 -> 16 (residual)
            "b0_dw": _w(next(ks), (3, 3, 16), 9), "b0_bn_dw": _init_bn(16, next(ks)),
            "b0_pw": _w(next(ks), (16, 16), 16), "b0_bn_pw": _init_bn(16, next(ks)),
            # block 1: MBConv expand x4, stride 2, 16 -> 24
            "b1_ex": _w(next(ks), (16, 64), 16), "b1_bn_ex": _init_bn(64, next(ks)),
            "b1_dw": _w(next(ks), (3, 3, 64), 9), "b1_bn_dw": _init_bn(64, next(ks)),
            "b1_pw": _w(next(ks), (64, 24), 64), "b1_bn_pw": _init_bn(24, next(ks)),
            # block 2: MBConv expand x4, stride 2, 24 -> 32
            "b2_ex": _w(next(ks), (24, 96), 24), "b2_bn_ex": _init_bn(96, next(ks)),
            "b2_dw": _w(next(ks), (3, 3, 96), 9), "b2_bn_dw": _init_bn(96, next(ks)),
            "b2_pw": _w(next(ks), (96, 32), 96), "b2_bn_pw": _init_bn(32, next(ks)),
            # head
            "head_w": _w(next(ks), (32, 128), 32),
            "bn2": _init_bn(128, next(ks)),
        }

    def __call__(self, x_nchw):
        return _encoder_forward_jit(self.p, x_nchw)


# ----------------------------------------------------------------------------
if __name__ == "__main__":
    key = jax.random.PRNGKey(0)
    k_param, k_x = jax.random.split(key)
    enc = PallasEncoder(k_param)

    x = jax.random.normal(k_x, (2, 3, 16, 16), jnp.float32)   # NCHW, like PyTorch
    feats = enc(x)
    feats = [jax.block_until_ready(f) for f in feats]

    # sanity: right number of features, expected shapes, finite values
    assert len(feats) == 12, len(feats)
    assert feats[0].shape == (2, 3, 16, 16)
    assert feats[1].shape == (2, 16, 8, 8)      # conv_stem (stride 2)
    assert feats[2].shape == (2, 16, 8, 8)      # bn1
    assert feats[3].shape == (2, 16, 8, 8)      # act1
    assert feats[6].shape == (2, 32, 2, 2)      # blocks[2]
    assert feats[7].shape == (2, 128, 2, 2)     # conv_head
    assert feats[-1].shape == (2, 128, 2, 2)    # classifier (Identity)
    assert all(bool(jnp.isfinite(f).all()) for f in feats)

    print("KERNEL_OK")
</pallas_src>

<mosaic_0001>
module attributes {stable_mosaic.version = 11 : i64} {
  func.func @_mm_bn_silu_multi_kernel(%arg0: i32, %arg1: memref<128x32xf32, #tpu.memory_space<vmem>>, %arg2: memref<32x16xbf16, #tpu.memory_space<vmem>>, %arg3: memref<1x16xf32, #tpu.memory_space<vmem>>, %arg4: memref<1x16xf32, #tpu.memory_space<vmem>>, %arg5: memref<128x16xf32, #tpu.memory_space<vmem>>, %arg6: memref<128x16xf32, #tpu.memory_space<vmem>>, %arg7: memref<128x16xf32, #tpu.memory_space<vmem>>) attributes {dimension_semantics = [#tpu.dimension_semantics<parallel>], iteration_bounds = array<i64: 1>, scalar_prefetch = 0 : i64, scratch_operands = 0 : i64, tpu.core_type = #tpu.core_type<tc>, window_params = [{transform_indices = @transform_0, window_bounds = array<i64: 128, 32>}, {pipeline_mode = #tpu.pipeline_mode<synchronous>, transform_indices = @transform_1, window_bounds = array<i64: 32, 16>}, {pipeline_mode = #tpu.pipeline_mode<synchronous>, transform_indices = @transform_2, window_bounds = array<i64: 1, 16>}, {pipeline_mode = #tpu.pipeline_mode<synchronous>, transform_indices = @transform_3, window_bounds = array<i64: 1, 16>}, {transform_indices = @transform_4, window_bounds = array<i64: 128, 16>}, {transform_indices = @transform_5, window_bounds = array<i64: 128, 16>}, {transform_indices = @transform_6, window_bounds = array<i64: 128, 16>}]} {
    %c0 = arith.constant 0 : index
    %c0_0 = arith.constant 0 : index
    %0 = vector.load %arg1[%c0, %c0_0] : memref<128x32xf32, #tpu.memory_space<vmem>>, vector<128x32xf32>
    %1 = arith.truncf %0 : vector<128x32xf32> to vector<128x32xbf16>
    %c0_1 = arith.constant 0 : index
    %c0_2 = arith.constant 0 : index
    %2 = vector.load %arg2[%c0_1, %c0_2] : memref<32x16xbf16, #tpu.memory_space<vmem>>, vector<32x16xbf16>
    %cst = arith.constant dense<0.000000e+00> : vector<128x16xf32>
    %3 = tpu.matmul %1, %2, %cst {dimension_numbers = #tpu.dot_dimension_numbers<[1], [0], [0], [1], [0, 0, 1, 1], [], []>} : vector<128x32xbf16>, vector<32x16xbf16>, vector<128x16xf32> -> vector<128x16xf32>
    %c0_3 = arith.constant 0 : index
    %c0_4 = arith.constant 0 : index
    %4 = vector.load %arg5[%c0_3, %c0_4] : memref<128x16xf32, #tpu.memory_space<vmem>>, vector<128x16xf32>
    tpu.vector_store %arg5[%c0_3, %c0_4], %3 {strides = array<i32>} : memref<128x16xf32, #tpu.memory_space<vmem>>, vector<128x16xf32>,
    %c0_5 = arith.constant 0 : index
    %c0_6 = arith.constant 0 : index
    %5 = vector.load %arg3[%c0_5, %c0_6] : memref<1x16xf32, #tpu.memory_space<vmem>>, vector<1x16xf32>
    %6 = vector.broadcast %5 : vector<1x16xf32> to vector<128x16xf32>
    %7 = arith.mulf %3, %6 : vector<128x16xf32>
    %c0_7 = arith.constant 0 : index
    %c0_8 = arith.constant 0 : index
    %8 = vector.load %arg4[%c0_7, %c0_8] : memref<1x16xf32, #tpu.memory_space<vmem>>, vector<1x16xf32>
    %9 = vector.broadcast %8 : vector<1x16xf32> to vector<128x16xf32>
    %10 = arith.addf %7, %9 : vector<128x16xf32>
    %c0_9 = arith.constant 0 : index
    %c0_10 = arith.constant 0 : index
    %11 = vector.load %arg6[%c0_9, %c0_10] : memref<128x16xf32, #tpu.memory_space<vmem>>, vector<128x16xf32>
    tpu.vector_store %arg6[%c0_9, %c0_10], %10 {strides = array<i32>} : memref<128x16xf32, #tpu.memory_space<vmem>>, vector<128x16xf32>,
    %12 = arith.negf %10 : vector<128x16xf32>
    %13 = math.exp %12 : vector<128x16xf32>
    %cst_11 = arith.constant 1.000000e+00 : f32
    %14 = vector.broadcast %cst_11 : f32 to vector<128x16xf32>
    %15 = arith.addf %14, %13 : vector<128x16xf32>
    %16 = arith.divf %14, %15 : vector<128x16xf32>
    %17 = arith.mulf %10, %16 : vector<128x16xf32>
    %c0_12 = arith.constant 0 : index
    %c0_13 = arith.constant 0 : index
    %18 = vector.load %arg7[%c0_12, %c0_13] : memref<128x16xf32, #tpu.memory_space<vmem>>, vector<128x16xf32>
    tpu.vector_store %arg7[%c0_12, %c0_13], %17 {strides = array<i32>} : memref<128x16xf32, #tpu.memory_space<vmem>>, vector<128x16xf32>,
    return
  }
  func.func @transform_0(%arg0: i32) -> (i32, i32) {
    %c0_i32 = arith.constant 0 : i32
    %c0_i32_0 = arith.constant 0 : i32
    return %arg0, %c0_i32 : i32, i32
  }
  func.func @transform_1(%arg0: i32) -> (i32, i32) {
    %c0_i32 = arith.constant 0 : i32
    %c0_i32_0 = arith.constant 0 : i32
    %c0_i32_1 = arith.constant 0 : i32
    return %c0_i32, %c0_i32_0 : i32, i32
  }
  func.func @transform_2(%arg0: i32) -> (i32, i32) {
    %c0_i32 = arith.constant 0 : i32
    %c0_i32_0 = arith.constant 0 : i32
    %c0_i32_1 = arith.constant 0 : i32
    return %c0_i32, %c0_i32_0 : i32, i32
  }
  func.func @transform_3(%arg0: i32) -> (i32, i32) {
    %c0_i32 = arith.constant 0 : i32
    %c0_i32_0 = arith.constant 0 : i32
    %c0_i32_1 = arith.constant 0 : i32
    return %c0_i32, %c0_i32_0 : i32, i32
  }
  func.func @transform_4(%arg0: i32) -> (i32, i32) {
    %c0_i32 = arith.constant 0 : i32
    %c0_i32_0 = arith.constant 0 : i32
    return %arg0, %c0_i32 : i32, i32
  }
  func.func @transform_5(%arg0: i32) -> (i32, i32) {
    %c0_i32 = arith.constant 0 : i32
    %c0_i32_0 = arith.constant 0 : i32
    return %arg0, %c0_i32 : i32, i32
  }
  func.func @transform_6(%arg0: i32) -> (i32, i32) {
    %c0_i32 = arith.constant 0 : i32
    %c0_i32_0 = arith.constant 0 : i32
    return %arg0, %c0_i32 : i32, i32
  }
}

module attributes {stable_mosaic.version = 11 : i64} {
  func.func @_mm_fused_kernel(%arg0: i32, %arg1: memref<128x16xf32, #tpu.memory_space<vmem>>, %arg2: memref<16x64xbf16, #tpu.memory_space<vmem>>, %arg3: memref<1x64xf32, #tpu.memory_space<vmem>>, %arg4: memref<1x64xf32, #tpu.memory_space<vmem>>, %arg5: memref<128x64xf32, #tpu.memory_space<vmem>>) attributes {dimension_semantics = [#tpu.dimension_semantics<parallel>], iteration_bounds = array<i64: 1>, scalar_prefetch = 0 : i64, scratch_operands = 0 : i64, tpu.core_type = #tpu.core_type<tc>, window_params = [{transform_indices = @transform_0, window_bounds = array<i64: 128, 16>}, {pipeline_mode = #tpu.pipeline_mode<synchronous>, transform_indices = @transform_1, window_bounds = array<i64: 16, 64>}, {pipeline_mode = #tpu.pipeline_mode<synchronous>, transform_indices = @transform_2, window_bounds = array<i64: 1, 64>}, {pipeline_mode = #tpu.pipeline_mode<synchronous>, transform_indices = @transform_3, window_bounds = array<i64: 1, 64>}, {transform_indices = @transform_4, window_bounds = array<i64: 128, 64>}]} {
    %c0 = arith.constant 0 : index
    %c0_0 = arith.constant 0 : index
    %0 = vector.load %arg1[%c0, %c0_0] : memref<128x16xf32, #tpu.memory_space<vmem>>, vector<128x16xf32>
    %1 = arith.truncf %0 : vector<128x16xf32> to vector<128x16xbf16>
    %c0_1 = arith.constant 0 : index
    %c0_2 = arith.constant 0 : index
    %2 = vector.load %arg2[%c0_1, %c0_2] : memref<16x64xbf16, #tpu.memory_space<vmem>>, vector<16x64xbf16>
    %cst = arith.constant dense<0.000000e+00> : vector<128x64xf32>
    %3 = tpu.matmul %1, %2, %cst {dimension_numbers = #tpu.dot_dimension_numbers<[1], [0], [0], [1], [0, 0, 1, 1], [], []>} : vector<128x16xbf16>, vector<16x64xbf16>, vector<128x64xf32> -> vector<128x64xf32>
    %c0_3 = arith.constant 0 : index
    %c0_4 = arith.constant 0 : index
    %4 = vector.load %arg3[%c0_3, %c0_4] : memref<1x64xf32, #tpu.memory_space<vmem>>, vector<1x64xf32>
    %5 = vector.broadcast %4 : vector<1x64xf32> to vector<128x64xf32>
    %6 = arith.mulf %3, %5 : vector<128x64xf32>
    %c0_5 = arith.constant 0 : index
    %c0_6 = arith.constant 0 : index
    %7 = vector.load %arg4[%c0_5, %c0_6] : memref<1x64xf32, #tpu.memory_space<vmem>>, vector<1x64xf32>
    %8 = vector.broadcast %7 : vector<1x64xf32> to vector<128x64xf32>
    %9 = arith.addf %6, %8 : vector<128x64xf32>
    %10 = arith.negf %9 : vector<128x64xf32>
    %11 = math.exp %10 : vector<128x64xf32>
    %cst_7 = arith.constant 1.000000e+00 : f32
    %12 = vector.broadcast %cst_7 : f32 to vector<128x64xf32>
    %13 = arith.addf %12, %11 : vector<128x64xf32>
    %14 = arith.divf %12, %13 : vector<128x64xf32>
    %15 = arith.mulf %9, %14 : vector<128x64xf32>
    %c0_8 = arith.constant 0 : index
    %c0_9 = arith.constant 0 : index
    %16 = vector.load %arg5[%c0_8, %c0_9] : memref<128x64xf32, #tpu.memory_space<vmem>>, vector<128x64xf32>
    tpu.vector_store %arg5[%c0_8, %c0_9], %15 {strides = array<i32>} : memref<128x64xf32, #tpu.memory_space<vmem>>, vector<128x64xf32>,
    return
  }
  func.func @transform_0(%arg0: i32) -> (i32, i32) {
    %c0_i32 = arith.constant 0 : i32
    %c0_i32_0 = arith.constant 0 : i32
    return %arg0, %c0_i32 : i32, i32
  }
  func.func @transform_1(%arg0: i32) -> (i32, i32) {
    %c0_i32 = arith.constant 0 : i32
    %c0_i32_0 = arith.constant 0 : i32
    %c0_i32_1 = arith.constant 0 : i32
    return %c0_i32, %c0_i32_0 : i32, i32
  }
  func.func @transform_2(%arg0: i32) -> (i32, i32) {
    %c0_i32 = arith.constant 0 : i32
    %c0_i32_0 = arith.constant 0 : i32
    %c0_i32_1 = arith.constant 0 : i32
    return %c0_i32, %c0_i32_0 : i32, i32
  }
  func.func @transform_3(%arg0: i32) -> (i32, i32) {
    %c0_i32 = arith.constant 0 : i32
    %c0_i32_0 = arith.constant 0 : i32
    %c0_i32_1 = arith.constant 0 : i32
    return %c0_i32, %c0_i32_0 : i32, i32
  }
  func.func @transform_4(%arg0: i32) -> (i32, i32) {
    %c0_i32 = arith.constant 0 : i32
    %c0_i32_0 = arith.constant 0 : i32
    return %arg0, %c0_i32 : i32, i32
  }
}

module attributes {stable_mosaic.version = 11 : i64} {
  func.func @_dwconv_bn_act_kernel(%arg0: i32, %arg1: memref<1x1x10x10x16xf32, #tpu.memory_space<vmem>>, %arg2: memref<9x1x1x1x16xf32, #tpu.memory_space<vmem>>, %arg3: memref<1x1x1x16xf32, #tpu.memory_space<vmem>>, %arg4: memref<1x1x1x16xf32, #tpu.memory_space<vmem>>, %arg5: memref<1x8x8x16xf32, #tpu.memory_space<vmem>>) attributes {dimension_semantics = [#tpu.dimension_semantics<parallel>], iteration_bounds = array<i64: 2>, scalar_prefetch = 0 : i64, scratch_operands = 0 : i64, tpu.core_type = #tpu.core_type<tc>, window_params = [{transform_indices = @transform_0, window_bounds = array<i64: 1, 1, 10, 10, 16>}, {pipeline_mode = #tpu.pipeline_mode<synchronous>, transform_indices = @transform_1, window_bounds = array<i64: 9, 1, 1, 1, 16>}, {pipeline_mode = #tpu.pipeline_mode<synchronous>, transform_indices = @transform_2, window_bounds = array<i64: 1, 1, 1, 16>}, {pipeline_mode = #tpu.pipeline_mode<synchronous>, transform_indices = @transform_3, window_bounds = array<i64: 1, 1, 1, 16>}, {transform_indices = @transform_4, window_bounds = array<i64: 1, 8, 8, 16>}]} {
    %c0 = arith.constant 0 : index
    %c0_0 = arith.constant 0 : index
    %c0_1 = arith.constant 0 : index
    %c0_2 = arith.constant 0 : index
    %c0_3 = arith.constant 0 : index
    %0 = vector.load %arg1[%c0, %c0_0, %c0_1, %c0_2, %c0_3] : memref<1x1x10x10x16xf32, #tpu.memory_space<vmem>>, vector<1x1x10x10x16xf32>
    %1 = vector.shape_cast %0 : vector<1x1x10x10x16xf32> to vector<1x10x10x16xf32>
    %cst = arith.constant 0.000000e+00 : f32
    %2 = vector.broadcast %cst : f32 to vector<1x8x8x16xf32>
    %3 = vector.extract_strided_slice %1 {offsets = [0, 0, 0, 0], sizes = [1, 8, 8, 16], strides = [1, 1, 1, 1]} : vector<1x10x10x16xf32> to vector<1x8x8x16xf32>
    %c0_4 = arith.constant 0 : index
    %c0_5 = arith.constant 0 : index
    %c0_6 = arith.constant 0 : index
    %c0_7 = arith.constant 0 : index
    %c0_8 = arith.constant 0 : index
    %4 = vector.load %arg2[%c0_4, %c0_5, %c0_6, %c0_7, %c0_8] : memref<9x1x1x1x16xf32, #tpu.memory_space<vmem>>, vector<1x1x1x1x16xf32>
    %5 = vector.shape_cast %4 : vector<1x1x1x1x16xf32> to vector<1x1x1x16xf32>
    %6 = vector.broadcast %5 : vector<1x1x1x16xf32> to vector<1x8x8x16xf32>
    %7 = arith.mulf %3, %6 : vector<1x8x8x16xf32>
    %8 = arith.addf %2, %7 : vector<1x8x8x16xf32>
    %9 = vector.extract_strided_slice %1 {offsets = [0, 0, 1, 0], sizes = [1, 8, 8, 16], strides = [1, 1, 1, 1]} : vector<1x10x10x16xf32> to vector<1x8x8x16xf32>
    %c1 = arith.constant 1 : index
    %c0_9 = arith.constant 0 : index
    %c0_10 = arith.constant 0 : index
    %c0_11 = arith.constant 0 : index
    %c0_12 = arith.constant 0 : index
    %10 = vector.load %arg2[%c1, %c0_9, %c0_10, %c0_11, %c0_12] : memref<9x1x1x1x16xf32, #tpu.memory_space<vmem>>, vector<1x1x1x1x16xf32>
    %11 = vector.shape_cast %10 : vector<1x1x1x1x16xf32> to vector<1x1x1x16xf32>
    %12 = vector.broadcast %11 : vector<1x1x1x16xf32> to vector<1x8x8x16xf32>
    %13 = arith.mulf %9, %12 : vector<1x8x8x16xf32>
    %14 = arith.addf %8, %13 : vector<1x8x8x16xf32>
    %15 = vector.extract_strided_slice %1 {offsets = [0, 0, 2, 0], sizes = [1, 8, 8, 16], strides = [1, 1, 1, 1]} : vector<1x10x10x16xf32> to vector<1x8x8x16xf32>
    %c2 = arith.constant 2 : index
    %c0_13 = arith.constant 0 : index
    %c0_14 = arith.constant 0 : index
    %c0_15 = arith.constant 0 : index
    %c0_16 = arith.constant 0 : index
    %16 = vector.load %arg2[%c2, %c0_13, %c0_14, %c0_15, %c0_16] : memref<9x1x1x1x16xf32, #tpu.memory_space<vmem>>, vector<1x1x1x1x16xf32>
    %17 = vector.shape_cast %16 : vector<1x1x1x1x16xf32> to vector<1x1x1x16xf32>
    %18 = vector.broadcast %17 : vector<1x1x1x16xf32> to vector<1x8x8x16xf32>
    %19 = arith.mulf %15, %18 : vector<1x8x8x16xf32>
    %20 = arith.addf %14, %19 : vector<1x8x8x16xf32>
    %21 = vector.extract_strided_slice %1 {offsets = [0, 1, 0, 0], sizes = [1, 8, 8, 16], strides = [1, 1, 1, 1]} : vector<1x10x10x16xf32> to vector<1x8x8x16xf32>
    %c3 = arith.constant 3 : index
    %c0_17 = arith.constant 0 : index
    %c0_18 = arith.constant 0 : index
    %c0_19 = arith.constant 0 : index
    %c0_20 = arith.constant 0 : index
    %22 = vector.load %arg2[%c3, %c0_17, %c0_18, %c0_19, %c0_20] : memref<9x1x1x1x16xf32, #tpu.memory_space<vmem>>, vector<1x1x1x1x16xf32>
    %23 = vector.shape_cast %22 : vector<1x1x1x1x16xf32> to vector<1x1x1x16xf32>
    %24 = vector.broadcast %23 : vector<1x1x1x16xf32> to vector<1x8x8x16xf32>
    %25 = arith.mulf %21, %24 : vector<1x8x8x16xf32>
    %26 = arith.addf %20, %25 : vector<1x8x8x16xf32>
    %27 = vector.extract_strided_slice %1 {offsets = [0, 1, 1, 0], sizes = [1, 8, 8, 16], strides = [1, 1, 1, 1]} : vector<1x10x10x16xf32> to vector<1x8x8x16xf32>
    %c4 = arith.constant 4 : index
    %c0_21 = arith.constant 0 : index
    %c0_22 = arith.constant 0 : index
    %c0_23 = arith.constant 0 : index
    %c0_24 = arith.constant 0 : index
    %28 = vector.load %arg2[%c4, %c0_21, %c0_22, %c0_23, %c0_24] : memref<9x1x1x1x16xf32, #tpu.memory_space<vmem>>, vector<1x1x1x1x16xf32>
    %29 = vector.shape_cast %28 : vector<1x1x1x1x16xf32> to vector<1x1x1x16xf32>
    %30 = vector.broadcast %29 : vector<1x1x1x16xf32> to vector<1x8x8x16xf32>
    %31 = arith.mulf %27, %30 : vector<1x8x8x16xf32>
    %32 = arith.addf %26, %31 : vector<1x8x8x16xf32>
    %33 = vector.extract_strided_slice %1 {offsets = [0, 1, 2, 0], sizes = [1, 8, 8, 16], strides = [1, 1, 1, 1]} : vector<1x10x10x16xf32> to vector<1x8x8x16xf32>
    %c5 = arith.constant 5 : index
    %c0_25 = arith.constant 0 : index
    %c0_26 = arith.constant 0 : index
    %c0_27 = arith.constant 0 : index
    %c0_28 = arith.constant 0 : index
    %34 = vector.load %arg2[%c5, %c0_25, %c0_26, %c0_27, %c0_28] : memref<9x1x1x1x16xf32, #tpu.memory_space<vmem>>, vector<1x1x1x1x16xf32>
    %35 = vector.shape_cast %34 : vector<1x1x1x1x16xf32> to vector<1x1x1x16xf32>
    %36 = vector.broadcast %35 : vector<1x1x1x16xf32> to vector<1x8x8x16xf32>
    %37 = arith.mulf %33, %36 : vector<1x8x8x16xf32>
    %38 = arith.addf %32, %37 : vector<1x8x8x16xf32>
    %39 = vector.extract_strided_slice %1 {offsets = [0, 2, 0, 0], sizes = [1, 8, 8, 16], strides = [1, 1, 1, 1]} : vector<1x10x10x16xf32> to vector<1x8x8x16xf32>
    %c6 = arith.constant 6 : index
    %c0_29 = arith.constant 0 : index
    %c0_30 = arith.constant 0 : index
    %c0_31 = arith.constant 0 : index
    %c0_32 = arith.constant 0 : index
    %40 = vector.load %arg2[%c6, %c0_29, %c0_30, %c0_31, %c0_32] : memref<9x1x1x1x16xf32, #tpu.memory_space<vmem>>, vector<1x1x1x1x16xf32>
    %41 = vector.shape_cast %40 : vector<1x1x1x1x16xf32> to vector<1x1x1x16xf32>
    %42 = vector.broadcast %41 : vector<1x1x1x16xf32> to vector<1x8x8x16xf32>
    %43 = arith.mulf %39, %42 : vector<1x8x8x16xf32>
    %44 = arith.addf %38, %43 : vector<1x8x8x16xf32>
    %45 = vector.extract_strided_slice %1 {offsets = [0, 2, 1, 0], sizes = [1, 8, 8, 16], strides = [1, 1, 1, 1]} : vector<1x10x10x16xf32> to vector<1x8x8x16xf32>
    %c7 = arith.constant 7 : index
    %c0_33 = arith.constant 0 : index
    %c0_34 = arith.constant 0 : index
    %c0_35 = arith.constant 0 : index
    %c0_36 = arith.constant 0 : index
    %46 = vector.load %arg2[%c7, %c0_33, %c0_34, %c0_35, %c0_36] : memref<9x1x1x1x16xf32, #tpu.memory_space<vmem>>, vector<1x1x1x1x16xf32>
    %47 = vector.shape_cast %46 : vector<1x1x1x1x16xf32> to vector<1x1x1x16xf32>
    %48 = vector.broadcast %47 : vector<1x1x1x16xf32> to vector<1x8x8x16xf32>
    %49 = arith.mulf %45, %48 : vector<1x8x8x16xf32>
    %50 = arith.addf %44, %49 : vector<1x8x8x16xf32>
    %51 = vector.extract_strided_slice %1 {offsets = [0, 2, 2, 0], sizes = [1, 8, 8, 16], strides = [1, 1, 1, 1]} : vector<1x10x10x16xf32> to vector<1x8x8x16xf32>
    %c8 = arith.constant 8 : index
    %c0_37 = arith.constant 0 : index
    %c0_38 = arith.constant 0 : index
    %c0_39 = arith.constant 0 : index
    %c0_40 = arith.constant 0 : index
    %52 = vector.load %arg2[%c8, %c0_37, %c0_38, %c0_39, %c0_40] : memref<9x1x1x1x16xf32, #tpu.memory_space<vmem>>, vector<1x1x1x1x16xf32>
    %53 = vector.shape_cast %52 : vector<1x1x1x1x16xf32> to vector<1x1x1x16xf32>
    %54 = vector.broadcast %53 : vector<1x1x1x16xf32> to vector<1x8x8x16xf32>
    %55 = arith.mulf %51, %54 : vector<1x8x8x16xf32>
    %56 = arith.addf %50, %55 : vector<1x8x8x16xf32>
    %c0_41 = arith.constant 0 : index
    %c0_42 = arith.constant 0 : index
    %c0_43 = arith.constant 0 : index
    %c0_44 = arith.constant 0 : index
    %57 = vector.load %arg3[%c0_41, %c0_42, %c0_43, %c0_44] : memref<1x1x1x16xf32, #tpu.memory_space<vmem>>, vector<1x1x1x16xf32>
    %58 = vector.broadcast %57 : vector<1x1x1x16xf32> to vector<1x8x8x16xf32>
    %59 = arith.mulf %56, %58 : vector<1x8x8x16xf32>
    %c0_45 = arith.constant 0 : index
    %c0_46 = arith.constant 0 : index
    %c0_47 = arith.constant 0 : index
    %c0_48 = arith.constant 0 : index
    %60 = vector.load %arg4[%c0_45, %c0_46, %c0_47, %c0_48] : memref<1x1x1x16xf32, #tpu.memory_space<vmem>>, vector<1x1x1x16xf32>
    %61 = vector.broadcast %60 : vector<1x1x1x16xf32> to vector<1x8x8x16xf32>
    %62 = arith.addf %59, %61 : vector<1x8x8x16xf32>
    %63 = arith.negf %62 : vector<1x8x8x16xf32>
    %64 = math.exp %63 : vector<1x8x8x16xf32>
    %cst_49 = arith.constant 1.000000e+00 : f32
    %65 = vector.broadcast %cst_49 : f32 to vector<1x8x8x16xf32>
    %66 = arith.addf %65, %64 : vector<1x8x8x16xf32>
    %67 = arith.divf %65, %66 : vector<1x8x8x16xf32>
    %68 = arith.mulf %62, %67 : vector<1x8x8x16xf32>
    %c0_50 = arith.constant 0 : index
    %c0_51 = arith.constant 0 : index
    %c0_52 = arith.constant 0 : index
    %c0_53 = arith.constant 0 : index
    %69 = vector.load %arg5[%c0_50, %c0_51, %c0_52, %c0_53] : memref<1x8x8x16xf32, #tpu.memory_space<vmem>>, vector<1x8x8x16xf32>
    tpu.vector_store %arg5[%c0_50, %c0_51, %c0_52, %c0_53], %68 {strides = array<i32>} : memref<1x8x8x16xf32, #tpu.memory_space<vmem>>, vector<1x8x8x16xf32>,
    return
  }
  func.func @transform_0(%arg0: i32) -> (i32, i32, i32, i32, i32) {
    %c0_i32 = arith.constant 0 : i32
    %c0_i32_0 = arith.constant 0 : i32
    %c0_i32_1 = arith.constant 0 : i32
    %c0_i32_2 = arith.constant 0 : i32
    %c0_i32_3 = arith.constant 0 : i32
    return %c0_i32, %arg0, %c0_i32_0, %c0_i32_1, %c0_i32_2 : i32, i32, i32, i32, i32
  }
  func.func @transform_1(%arg0: i32) -> (i32, i32, i32, i32, i32) {
    %c0_i32 = arith.constant 0 : i32
    %c0_i32_0 = arith.constant 0 : i32
    %c0_i32_1 = arith.constant 0 : i32
    %c0_i32_2 = arith.constant 0 : i32
    %c0_i32_3 = arith.constant 0 : i32
    %c0_i32_4 = arith.constant 0 : i32
    return %c0_i32, %c0_i32_0, %c0_i32_1, %c0_i32_2, %c0_i32_3 : i32, i32, i32, i32, i32
  }
  func.func @transform_2(%arg0: i32) -> (i32, i32, i32, i32) {
    %c0_i32 = arith.constant 0 : i32
    %c0_i32_0 = arith.constant 0 : i32
    %c0_i32_1 = arith.constant 0 : i32
    %c0_i32_2 = arith.constant 0 : i32
    %c0_i32_3 = arith.constant 0 : i32
    return %c0_i32, %c0_i32_0, %c0_i32_1, %c0_i32_2 : i32, i32, i32, i32
  }
  func.func @transform_3(%arg0: i32) -> (i32, i32, i32, i32) {
    %c0_i32 = arith.constant 0 : i32
    %c0_i32_0 = arith.constant 0 : i32
    %c0_i32_1 = arith.constant 0 : i32
    %c0_i32_2 = arith.constant 0 : i32
    %c0_i32_3 = arith.constant 0 : i32
    return %c0_i32, %c0_i32_0, %c0_i32_1, %c0_i32_2 : i32, i32, i32, i32
  }
  func.func @transform_4(%arg0: i32) -> (i32, i32, i32, i32) {
    %c0_i32 = arith.constant 0 : i32
    %c0_i32_0 = arith.constant 0 : i32
    %c0_i32_1 = arith.constant 0 : i32
    %c0_i32_2 = arith.constant 0 : i32
    return %arg0, %c0_i32, %c0_i32_0, %c0_i32_1 : i32, i32, i32, i32
  }
}

module attributes {stable_mosaic.version = 11 : i64} {
  func.func @_mm_fused_res_kernel(%arg0: i32, %arg1: memref<128x16xf32, #tpu.memory_space<vmem>>, %arg2: memref<16x16xbf16, #tpu.memory_space<vmem>>, %arg3: memref<1x16xf32, #tpu.memory_space<vmem>>, %arg4: memref<1x16xf32, #tpu.memory_space<vmem>>, %arg5: memref<128x16xf32, #tpu.memory_space<vmem>>, %arg6: memref<128x16xf32, #tpu.memory_space<vmem>>) attributes {dimension_semantics = [#tpu.dimension_semantics<parallel>], iteration_bounds = array<i64: 1>, scalar_prefetch = 0 : i64, scratch_operands = 0 : i64, tpu.core_type = #tpu.core_type<tc>, window_params = [{transform_indices = @transform_0, window_bounds = array<i64: 128, 16>}, {pipeline_mode = #tpu.pipeline_mode<synchronous>, transform_indices = @transform_1, window_bounds = array<i64: 16, 16>}, {pipeline_mode = #tpu.pipeline_mode<synchronous>, transform_indices = @transform_2, window_bounds = array<i64: 1, 16>}, {pipeline_mode = #tpu.pipeline_mode<synchronous>, transform_indices = @transform_3, window_bounds = array<i64: 1, 16>}, {transform_indices = @transform_4, window_bounds = array<i64: 128, 16>}, {transform_indices = @transform_5, window_bounds = array<i64: 128, 16>}]} {
    %c0 = arith.constant 0 : index
    %c0_0 = arith.constant 0 : index
    %0 = vector.load %arg1[%c0, %c0_0] : memref<128x16xf32, #tpu.memory_space<vmem>>, vector<128x16xf32>
    %1 = arith.truncf %0 : vector<128x16xf32> to vector<128x16xbf16>
    %c0_1 = arith.constant 0 : index
    %c0_2 = arith.constant 0 : index
    %2 = vector.load %arg2[%c0_1, %c0_2] : memref<16x16xbf16, #tpu.memory_space<vmem>>, vector<16x16xbf16>
    %cst = arith.constant dense<0.000000e+00> : vector<128x16xf32>
    %3 = tpu.matmul %1, %2, %cst {dimension_numbers = #tpu.dot_dimension_numbers<[1], [0], [0], [1], [0, 0, 1, 1], [], []>} : vector<128x16xbf16>, vector<16x16xbf16>, vector<128x16xf32> -> vector<128x16xf32>
    %c0_3 = arith.constant 0 : index
    %c0_4 = arith.constant 0 : index
    %4 = vector.load %arg3[%c0_3, %c0_4] : memref<1x16xf32, #tpu.memory_space<vmem>>, vector<1x16xf32>
    %5 = vector.broadcast %4 : vector<1x16xf32> to vector<128x16xf32>
    %6 = arith.mulf %3, %5 : vector<128x16xf32>
    %c0_5 = arith.constant 0 : index
    %c0_6 = arith.constant 0 : index
    %7 = vector.load %arg4[%c0_5, %c0_6] : memref<1x16xf32, #tpu.memory_space<vmem>>, vector<1x16xf32>
    %8 = vector.broadcast %7 : vector<1x16xf32> to vector<128x16xf32>
    %9 = arith.addf %6, %8 : vector<128x16xf32>
    %c0_7 = arith.constant 0 : index
    %c0_8 = arith.constant 0 : index
    %10 = vector.load %arg5[%c0_7, %c0_8] : memref<128x16xf32, #tpu.memory_space<vmem>>, vector<128x16xf32>
    %11 = arith.addf %9, %10 : vector<128x16xf32>
    %c0_9 = arith.constant 0 : index
    %c0_10 = arith.constant 0 : index
    %12 = vector.load %arg6[%c0_9, %c0_10] : memref<128x16xf32, #tpu.memory_space<vmem>>, vector<128x16xf32>
    tpu.vector_store %arg6[%c0_9, %c0_10], %11 {strides = array<i32>} : memref<128x16xf32, #tpu.memory_space<vmem>>, vector<128x16xf32>,
    return
  }
  func.func @transform_0(%arg0: i32) -> (i32, i32) {
    %c0_i32 = arith.constant 0 : i32
    %c0_i32_0 = arith.constant 0 : i32
    return %arg0, %c0_i32 : i32, i32
  }
  func.func @transform_1(%arg0: i32) -> (i32, i32) {
    %c0_i32 = arith.constant 0 : i32
    %c0_i32_0 = arith.constant 0 : i32
    %c0_i32_1 = arith.constant 0 : i32
    return %c0_i32, %c0_i32_0 : i32, i32
  }
  func.func @transform_2(%arg0: i32) -> (i32, i32) {
    %c0_i32 = arith.constant 0 : i32
    %c0_i32_0 = arith.constant 0 : i32
    %c0_i32_1 = arith.constant 0 : i32
    return %c0_i32, %c0_i32_0 : i32, i32
  }
  func.func @transform_3(%arg0: i32) -> (i32, i32) {
    %c0_i32 = arith.constant 0 : i32
    %c0_i32_0 = arith.constant 0 : i32
    %c0_i32_1 = arith.constant 0 : i32
    return %c0_i32, %c0_i32_0 : i32, i32
  }
  func.func @transform_4(%arg0: i32) -> (i32, i32) {
    %c0_i32 = arith.constant 0 : i32
    %c0_i32_0 = arith.constant 0 : i32
    return %arg0, %c0_i32 : i32, i32
  }
  func.func @transform_5(%arg0: i32) -> (i32, i32) {
    %c0_i32 = arith.constant 0 : i32
    %c0_i32_0 = arith.constant 0 : i32
    return %arg0, %c0_i32 : i32, i32
  }
}

module attributes {stable_mosaic.version = 11 : i64} {
  func.func @_mm_fused_kernel(%arg0: i32, %arg1: memref<32x24xf32, #tpu.memory_space<vmem>>, %arg2: memref<24x96xbf16, #tpu.memory_space<vmem>>, %arg3: memref<1x96xf32, #tpu.memory_space<vmem>>, %arg4: memref<1x96xf32, #tpu.memory_space<vmem>>, %arg5: memref<32x96xf32, #tpu.memory_space<vmem>>) attributes {dimension_semantics = [#tpu.dimension_semantics<parallel>], iteration_bounds = array<i64: 1>, scalar_prefetch = 0 : i64, scratch_operands = 0 : i64, tpu.core_type = #tpu.core_type<tc>, window_params = [{transform_indices = @transform_0, window_bounds = array<i64: 32, 24>}, {pipeline_mode = #tpu.pipeline_mode<synchronous>, transform_indices = @transform_1, window_bounds = array<i64: 24, 96>}, {pipeline_mode = #tpu.pipeline_mode<synchronous>, transform_indices = @transform_2, window_bounds = array<i64: 1, 96>}, {pipeline_mode = #tpu.pipeline_mode<synchronous>, transform_indices = @transform_3, window_bounds = array<i64: 1, 96>}, {transform_indices = @transform_4, window_bounds = array<i64: 32, 96>}]} {
    %c0 = arith.constant 0 : index
    %c0_0 = arith.constant 0 : index
    %0 = vector.load %arg1[%c0, %c0_0] : memref<32x24xf32, #tpu.memory_space<vmem>>, vector<32x24xf32>
    %1 = arith.truncf %0 : vector<32x24xf32> to vector<32x24xbf16>
    %c0_1 = arith.constant 0 : index
    %c0_2 = arith.constant 0 : index
    %2 = vector.load %arg2[%c0_1, %c0_2] : memref<24x96xbf16, #tpu.memory_space<vmem>>, vector<24x96xbf16>
    %cst = arith.constant dense<0.000000e+00> : vector<32x96xf32>
    %3 = tpu.matmul %1, %2, %cst {dimension_numbers = #tpu.dot_dimension_numbers<[1], [0], [0], [1], [0, 0, 1, 1], [], []>} : vector<32x24xbf16>, vector<24x96xbf16>, vector<32x96xf32> -> vector<32x96xf32>
    %c0_3 = arith.constant 0 : index
    %c0_4 = arith.constant 0 : index
    %4 = vector.load %arg3[%c0_3, %c0_4] : memref<1x96xf32, #tpu.memory_space<vmem>>, vector<1x96xf32>
    %5 = vector.broadcast %4 : vector<1x96xf32> to vector<32x96xf32>
    %6 = arith.mulf %3, %5 : vector<32x96xf32>
    %c0_5 = arith.constant 0 : index
    %c0_6 = arith.constant 0 : index
    %7 = vector.load %arg4[%c0_5, %c0_6] : memref<1x96xf32, #tpu.memory_space<vmem>>, vector<1x96xf32>
    %8 = vector.broadcast %7 : vector<1x96xf32> to vector<32x96xf32>
    %9 = arith.addf %6, %8 : vector<32x96xf32>
    %10 = arith.negf %9 : vector<32x96xf32>
    %11 = math.exp %10 : vector<32x96xf32>
    %cst_7 = arith.constant 1.000000e+00 : f32
    %12 = vector.broadcast %cst_7 : f32 to vector<32x96xf32>
    %13 = arith.addf %12, %11 : vector<32x96xf32>
    %14 = arith.divf %12, %13 : vector<32x96xf32>
    %15 = arith.mulf %9, %14 : vector<32x96xf32>
    %c0_8 = arith.constant 0 : index
    %c0_9 = arith.constant 0 : index
    %16 = vector.load %arg5[%c0_8, %c0_9] : memref<32x96xf32, #tpu.memory_space<vmem>>, vector<32x96xf32>
    tpu.vector_store %arg5[%c0_8, %c0_9], %15 {strides = array<i32>} : memref<32x96xf32, #tpu.memory_space<vmem>>, vector<32x96xf32>,
    return
  }
  func.func @transform_0(%arg0: i32) -> (i32, i32) {
    %c0_i32 = arith.constant 0 : i32
    %c0_i32_0 = arith.constant 0 : i32
    return %arg0, %c0_i32 : i32, i32
  }
  func.func @transform_1(%arg0: i32) -> (i32, i32) {
    %c0_i32 = arith.constant 0 : i32
    %c0_i32_0 = arith.constant 0 : i32
    %c0_i32_1 = arith.constant 0 : i32
    return %c0_i32, %c0_i32_0 : i32, i32
  }
  func.func @transform_2(%arg0: i32) -> (i32, i32) {
    %c0_i32 = arith.constant 0 : i32
    %c0_i32_0 = arith.constant 0 : i32
    %c0_i32_1 = arith.constant 0 : i32
    return %c0_i32, %c0_i32_0 : i32, i32
  }
  func.func @transform_3(%arg0: i32) -> (i32, i32) {
    %c0_i32 = arith.constant 0 : i32
    %c0_i32_0 = arith.constant 0 : i32
    %c0_i32_1 = arith.constant 0 : i32
    return %c0_i32, %c0_i32_0 : i32, i32
  }
  func.func @transform_4(%arg0: i32) -> (i32, i32) {
    %c0_i32 = arith.constant 0 : i32
    %c0_i32_0 = arith.constant 0 : i32
    return %arg0, %c0_i32 : i32, i32
  }
}

module attributes {stable_mosaic.version = 11 : i64} {
  func.func @_dwconv_bn_act_kernel(%arg0: i32, %arg1: memref<4x1x5x5x64xf32, #tpu.memory_space<vmem>>, %arg2: memref<9x1x1x1x64xf32, #tpu.memory_space<vmem>>, %arg3: memref<1x1x1x64xf32, #tpu.memory_space<vmem>>, %arg4: memref<1x1x1x64xf32, #tpu.memory_space<vmem>>, %arg5: memref<1x4x4x64xf32, #tpu.memory_space<vmem>>) attributes {dimension_semantics = [#tpu.dimension_semantics<parallel>], iteration_bounds = array<i64: 2>, scalar_prefetch = 0 : i64, scratch_operands = 0 : i64, tpu.core_type = #tpu.core_type<tc>, window_params = [{transform_indices = @transform_0, window_bounds = array<i64: 4, 1, 5, 5, 64>}, {pipeline_mode = #tpu.pipeline_mode<synchronous>, transform_indices = @transform_1, window_bounds = array<i64: 9, 1, 1, 1, 64>}, {pipeline_mode = #tpu.pipeline_mode<synchronous>, transform_indices = @transform_2, window_bounds = array<i64: 1, 1, 1, 64>}, {pipeline_mode = #tpu.pipeline_mode<synchronous>, transform_indices = @transform_3, window_bounds = array<i64: 1, 1, 1, 64>}, {transform_indices = @transform_4, window_bounds = array<i64: 1, 4, 4, 64>}]} {
    %c0 = arith.constant 0 : index
    %c0_0 = arith.constant 0 : index
    %c0_1 = arith.constant 0 : index
    %c0_2 = arith.constant 0 : index
    %c0_3 = arith.constant 0 : index
    %0 = vector.load %arg1[%c0, %c0_0, %c0_1, %c0_2, %c0_3] : memref<4x1x5x5x64xf32, #tpu.memory_space<vmem>>, vector<1x1x5x5x64xf32>
    %1 = vector.shape_cast %0 : vector<1x1x5x5x64xf32> to vector<1x5x5x64xf32>
    %c1 = arith.constant 1 : index
    %c0_4 = arith.constant 0 : index
    %c0_5 = arith.constant 0 : index
    %c0_6 = arith.constant 0 : index
    %c0_7 = arith.constant 0 : index
    %2 = vector.load %arg1[%c1, %c0_4, %c0_5, %c0_6, %c0_7] : memref<4x1x5x5x64xf32, #tpu.memory_space<vmem>>, vector<1x1x5x5x64xf32>
    %3 = vector.shape_cast %2 : vector<1x1x5x5x64xf32> to vector<1x5x5x64xf32>
    %c2 = arith.constant 2 : index
    %c0_8 = arith.constant 0 : index
    %c0_9 = arith.constant 0 : index
    %c0_10 = arith.constant 0 : index
    %c0_11 = arith.constant 0 : index
    %4 = vector.load %arg1[%c2, %c0_8, %c0_9, %c0_10, %c0_11] : memref<4x1x5x5x64xf32, #tpu.memory_space<vmem>>, vector<1x1x5x5x64xf32>
    %5 = vector.shape_cast %4 : vector<1x1x5x5x64xf32> to vector<1x5x5x64xf32>
    %c3 = arith.constant 3 : index
    %c0_12 = arith.constant 0 : index
    %c0_13 = arith.constant 0 : index
    %c0_14 = arith.constant 0 : index
    %c0_15 = arith.constant 0 : index
    %6 = vector.load %arg1[%c3, %c0_12, %c0_13, %c0_14, %c0_15] : memref<4x1x5x5x64xf32, #tpu.memory_space<vmem>>, vector<1x1x5x5x64xf32>
    %7 = vector.shape_cast %6 : vector<1x1x5x5x64xf32> to vector<1x5x5x64xf32>
    %cst = arith.constant 0.000000e+00 : f32
    %8 = vector.broadcast %cst : f32 to vector<1x4x4x64xf32>
    %9 = vector.extract_strided_slice %1 {offsets = [0, 0, 0, 0], sizes = [1, 4, 4, 64], strides = [1, 1, 1, 1]} : vector<1x5x5x64xf32> to vector<1x4x4x64xf32>
    %c0_16 = arith.constant 0 : index
    %c0_17 = arith.constant 0 : index
    %c0_18 = arith.constant 0 : index
    %c0_19 = arith.constant 0 : index
    %c0_20 = arith.constant 0 : index
    %10 = vector.load %arg2[%c0_16, %c0_17, %c0_18, %c0_19, %c0_20] : memref<9x1x1x1x64xf32, #tpu.memory_space<vmem>>, vector<1x1x1x1x64xf32>
    %11 = vector.shape_cast %10 : vector<1x1x1x1x64xf32> to vector<1x1x1x64xf32>
    %12 = vector.broadcast %11 : vector<1x1x1x64xf32> to vector<1x4x4x64xf32>
    %13 = arith.mulf %9, %12 : vector<1x4x4x64xf32>
    %14 = arith.addf %8, %13 : vector<1x4x4x64xf32>
    %15 = vector.extract_strided_slice %3 {offsets = [0, 0, 0, 0], sizes = [1, 4, 4, 64], strides = [1, 1, 1, 1]} : vector<1x5x5x64xf32> to vector<1x4x4x64xf32>
    %c1_21 = arith.constant 1 : index
    %c0_22 = arith.constant 0 : index
    %c0_23 = arith.constant 0 : index
    %c0_24 = arith.constant 0 : index
    %c0_25 = arith.constant 0 : index
    %16 = vector.load %arg2[%c1_21, %c0_22, %c0_23, %c0_24, %c0_25] : memref<9x1x1x1x64xf32, #tpu.memory_space<vmem>>, vector<1x1x1x1x64xf32>
    %17 = vector.shape_cast %16 : vector<1x1x1x1x64xf32> to vector<1x1x1x64xf32>
    %18 = vector.broadcast %17 : vector<1x1x1x64xf32> to vector<1x4x4x64xf32>
    %19 = arith.mulf %15, %18 : vector<1x4x4x64xf32>
    %20 = arith.addf %14, %19 : vector<1x4x4x64xf32>
    %21 = vector.extract_strided_slice %1 {offsets = [0, 0, 1, 0], sizes = [1, 4, 4, 64], strides = [1, 1, 1, 1]} : vector<1x5x5x64xf32> to vector<1x4x4x64xf32>
    %c2_26 = arith.constant 2 : index
    %c0_27 = arith.constant 0 : index
    %c0_28 = arith.constant 0 : index
    %c0_29 = arith.constant 0 : index
    %c0_30 = arith.constant 0 : index
    %22 = vector.load %arg2[%c2_26, %c0_27, %c0_28, %c0_29, %c0_30] : memref<9x1x1x1x64xf32, #tpu.memory_space<vmem>>, vector<1x1x1x1x64xf32>
    %23 = vector.shape_cast %22 : vector<1x1x1x1x64xf32> to vector<1x1x1x64xf32>
    %24 = vector.broadcast %23 : vector<1x1x1x64xf32> to vector<1x4x4x64xf32>
    %25 = arith.mulf %21, %24 : vector<1x4x4x64xf32>
    %26 = arith.addf %20, %25 : vector<1x4x4x64xf32>
    %27 = vector.extract_strided_slice %5 {offsets = [0, 0, 0, 0], sizes = [1, 4, 4, 64], strides = [1, 1, 1, 1]} : vector<1x5x5x64xf32> to vector<1x4x4x64xf32>
    %c3_31 = arith.constant 3 : index
    %c0_32 = arith.constant 0 : index
    %c0_33 = arith.constant 0 : index
    %c0_34 = arith.constant 0 : index
    %c0_35 = arith.constant 0 : index
    %28 = vector.load %arg2[%c3_31, %c0_32, %c0_33, %c0_34, %c0_35] : memref<9x1x1x1x64xf32, #tpu.memory_space<vmem>>, vector<1x1x1x1x64xf32>
    %29 = vector.shape_cast %28 : vector<1x1x1x1x64xf32> to vector<1x1x1x64xf32>
    %30 = vector.broadcast %29 : vector<1x1x1x64xf32> to vector<1x4x4x64xf32>
    %31 = arith.mulf %27, %30 : vector<1x4x4x64xf32>
    %32 = arith.addf %26, %31 : vector<1x4x4x64xf32>
    %33 = vector.extract_strided_slice %7 {offsets = [0, 0, 0, 0], sizes = [1, 4, 4, 64], strides = [1, 1, 1, 1]} : vector<1x5x5x64xf32> to vector<1x4x4x64xf32>
    %c4 = arith.constant 4 : index
    %c0_36 = arith.constant 0 : index
    %c0_37 = arith.constant 0 : index
    %c0_38 = arith.constant 0 : index
    %c0_39 = arith.constant 0 : index
    %34 = vector.load %arg2[%c4, %c0_36, %c0_37, %c0_38, %c0_39] : memref<9x1x1x1x64xf32, #tpu.memory_space<vmem>>, vector<1x1x1x1x64xf32>
    %35 = vector.shape_cast %34 : vector<1x1x1x1x64xf32> to vector<1x1x1x64xf32>
    %36 = vector.broadcast %35 : vector<1x1x1x64xf32> to vector<1x4x4x64xf32>
    %37 = arith.mulf %33, %36 : vector<1x4x4x64xf32>
    %38 = arith.addf %32, %37 : vector<1x4x4x64xf32>
    %39 = vector.extract_strided_slice %5 {offsets = [0, 0, 1, 0], sizes = [1, 4, 4, 64], strides = [1, 1, 1, 1]} : vector<1x5x5x64xf32> to vector<1x4x4x64xf32>
    %c5 = arith.constant 5 : index
    %c0_40 = arith.constant 0 : index
    %c0_41 = arith.constant 0 : index
    %c0_42 = arith.constant 0 : index
    %c0_43 = arith.constant 0 : index
    %40 = vector.load %arg2[%c5, %c0_40, %c0_41, %c0_42, %c0_43] : memref<9x1x1x1x64xf32, #tpu.memory_space<vmem>>, vector<1x1x1x1x64xf32>
    %41 = vector.shape_cast %40 : vector<1x1x1x1x64xf32> to vector<1x1x1x64xf32>
    %42 = vector.broadcast %41 : vector<1x1x1x64xf32> to vector<1x4x4x64xf32>
    %43 = arith.mulf %39, %42 : vector<1x4x4x64xf32>
    %44 = arith.addf %38, %43 : vector<1x4x4x64xf32>
    %45 = vector.extract_strided_slice %1 {offsets = [0, 1, 0, 0], sizes = [1, 4, 4, 64], strides = [1, 1, 1, 1]} : vector<1x5x5x64xf32> to vector<1x4x4x64xf32>
    %c6 = arith.constant 6 : index
    %c0_44 = arith.constant 0 : index
    %c0_45 = arith.constant 0 : index
    %c0_46 = arith.constant 0 : index
    %c0_47 = arith.constant 0 : index
    %46 = vector.load %arg2[%c6, %c0_44, %c0_45, %c0_46, %c0_47] : memref<9x1x1x1x64xf32, #tpu.memory_space<vmem>>, vector<1x1x1x1x64xf32>
    %47 = vector.shape_cast %46 : vector<1x1x1x1x64xf32> to vector<1x1x1x64xf32>
    %48 = vector.broadcast %47 : vector<1x1x1x64xf32> to vector<1x4x4x64xf32>
    %49 = arith.mulf %45, %48 : vector<1x4x4x64xf32>
    %50 = arith.addf %44, %49 : vector<1x4x4x64xf32>
    %51 = vector.extract_strided_slice %3 {offsets = [0, 1, 0, 0], sizes = [1, 4, 4, 64], strides = [1, 1, 1, 1]} : vector<1x5x5x64xf32> to vector<1x4x4x64xf32>
    %c7 = arith.constant 7 : index
    %c0_48 = arith.constant 0 : index
    %c0_49 = arith.constant 0 : index
    %c0_50 = arith.constant 0 : index
    %c0_51 = arith.constant 0 : index
    %52 = vector.load %arg2[%c7, %c0_48, %c0_49, %c0_50, %c0_51] : memref<9x1x1x1x64xf32, #tpu.memory_space<vmem>>, vector<1x1x1x1x64xf32>
    %53 = vector.shape_cast %52 : vector<1x1x1x1x64xf32> to vector<1x1x1x64xf32>
    %54 = vector.broadcast %53 : vector<1x1x1x64xf32> to vector<1x4x4x64xf32>
    %55 = arith.mulf %51, %54 : vector<1x4x4x64xf32>
    %56 = arith.addf %50, %55 : vector<1x4x4x64xf32>
    %57 = vector.extract_strided_slice %1 {offsets = [0, 1, 1, 0], sizes = [1, 4, 4, 64], strides = [1, 1, 1, 1]} : vector<1x5x5x64xf32> to vector<1x4x4x64xf32>
    %c8 = arith.constant 8 : index
    %c0_52 = arith.constant 0 : index
    %c0_53 = arith.constant 0 : index
    %c0_54 = arith.constant 0 : index
    %c0_55 = arith.constant 0 : index
    %58 = vector.load %arg2[%c8, %c0_52, %c0_53, %c0_54, %c0_55] : memref<9x1x1x1x64xf32, #tpu.memory_space<vmem>>, vector<1x1x1x1x64xf32>
    %59 = vector.shape_cast %58 : vector<1x1x1x1x64xf32> to vector<1x1x1x64xf32>
    %60 = vector.broadcast %59 : vector<1x1x1x64xf32> to vector<1x4x4x64xf32>
    %61 = arith.mulf %57, %60 : vector<1x4x4x64xf32>
    %62 = arith.addf %56, %61 : vector<1x4x4x64xf32>
    %c0_56 = arith.constant 0 : index
    %c0_57 = arith.constant 0 : index
    %c0_58 = arith.constant 0 : index
    %c0_59 = arith.constant 0 : index
    %63 = vector.load %arg3[%c0_56, %c0_57, %c0_58, %c0_59] : memref<1x1x1x64xf32, #tpu.memory_space<vmem>>, vector<1x1x1x64xf32>
    %64 = vector.broadcast %63 : vector<1x1x1x64xf32> to vector<1x4x4x64xf32>
    %65 = arith.mulf %62, %64 : vector<1x4x4x64xf32>
    %c0_60 = arith.constant 0 : index
    %c0_61 = arith.constant 0 : index
    %c0_62 = arith.constant 0 : index
    %c0_63 = arith.constant 0 : index
    %66 = vector.load %arg4[%c0_60, %c0_61, %c0_62, %c0_63] : memref<1x1x1x64xf32, #tpu.memory_space<vmem>>, vector<1x1x1x64xf32>
    %67 = vector.broadcast %66 : vector<1x1x1x64xf32> to vector<1x4x4x64xf32>
    %68 = arith.addf %65, %67 : vector<1x4x4x64xf32>
    %69 = arith.negf %68 : vector<1x4x4x64xf32>
    %70 = math.exp %69 : vector<1x4x4x64xf32>
    %cst_64 = arith.constant 1.000000e+00 : f32
    %71 = vector.broadcast %cst_64 : f32 to vector<1x4x4x64xf32>
    %72 = arith.addf %71, %70 : vector<1x4x4x64xf32>
    %73 = arith.divf %71, %72 : vector<1x4x4x64xf32>
    %74 = arith.mulf %68, %73 : vector<1x4x4x64xf32>
    %c0_65 = arith.constant 0 : index
    %c0_66 = arith.constant 0 : index
    %c0_67 = arith.constant 0 : index
    %c0_68 = arith.constant 0 : index
    %75 = vector.load %arg5[%c0_65, %c0_66, %c0_67, %c0_68] : memref<1x4x4x64xf32, #tpu.memory_space<vmem>>, vector<1x4x4x64xf32>
    tpu.vector_store %arg5[%c0_65, %c0_66, %c0_67, %c0_68], %74 {strides = array<i32>} : memref<1x4x4x64xf32, #tpu.memory_space<vmem>>, vector<1x4x4x64xf32>,
    return
  }
  func.func @transform_0(%arg0: i32) -> (i32, i32, i32, i32, i32) {
    %c0_i32 = arith.constant 0 : i32
    %c0_i32_0 = arith.constant 0 : i32
    %c0_i32_1 = arith.constant 0 : i32
    %c0_i32_2 = arith.constant 0 : i32
    %c0_i32_3 = arith.constant 0 : i32
    return %c0_i32, %arg0, %c0_i32_0, %c0_i32_1, %c0_i32_2 : i32, i32, i32, i32, i32
  }
  func.func @transform_1(%arg0: i32) -> (i32, i32, i32, i32, i32) {
    %c0_i32 = arith.constant 0 : i32
    %c0_i32_0 = arith.constant 0 : i32
    %c0_i32_1 = arith.constant 0 : i32
    %c0_i32_2 = arith.constant 0 : i32
    %c0_i32_3 = arith.constant 0 : i32
    %c0_i32_4 = arith.constant 0 : i32
    return %c0_i32, %c0_i32_0, %c0_i32_1, %c0_i32_2, %c0_i32_3 : i32, i32, i32, i32, i32
  }
  func.func @transform_2(%arg0: i32) -> (i32, i32, i32, i32) {
    %c0_i32 = arith.constant 0 : i32
    %c0_i32_0 = arith.constant 0 : i32
    %c0_i32_1 = arith.constant 0 : i32
    %c0_i32_2 = arith.constant 0 : i32
    %c0_i32_3 = arith.constant 0 : i32
    return %c0_i32, %c0_i32_0, %c0_i32_1, %c0_i32_2 : i32, i32, i32, i32
  }
  func.func @transform_3(%arg0: i32) -> (i32, i32, i32, i32) {
    %c0_i32 = arith.constant 0 : i32
    %c0_i32_0 = arith.constant 0 : i32
    %c0_i32_1 = arith.constant 0 : i32
    %c0_i32_2 = arith.constant 0 : i32
    %c0_i32_3 = arith.constant 0 : i32
    return %c0_i32, %c0_i32_0, %c0_i32_1, %c0_i32_2 : i32, i32, i32, i32
  }
  func.func @transform_4(%arg0: i32) -> (i32, i32, i32, i32) {
    %c0_i32 = arith.constant 0 : i32
    %c0_i32_0 = arith.constant 0 : i32
    %c0_i32_1 = arith.constant 0 : i32
    %c0_i32_2 = arith.constant 0 : i32
    return %arg0, %c0_i32, %c0_i32_0, %c0_i32_1 : i32, i32, i32, i32
  }
}

module attributes {stable_mosaic.version = 11 : i64} {
  func.func @_mm_fused_kernel(%arg0: i32, %arg1: memref<32x64xf32, #tpu.memory_space<vmem>>, %arg2: memref<64x24xbf16, #tpu.memory_space<vmem>>, %arg3: memref<1x24xf32, #tpu.memory_space<vmem>>, %arg4: memref<1x24xf32, #tpu.memory_space<vmem>>, %arg5: memref<32x24xf32, #tpu.memory_space<vmem>>) attributes {dimension_semantics = [#tpu.dimension_semantics<parallel>], iteration_bounds = array<i64: 1>, scalar_prefetch = 0 : i64, scratch_operands = 0 : i64, tpu.core_type = #tpu.core_type<tc>, window_params = [{transform_indices = @transform_0, window_bounds = array<i64: 32, 64>}, {pipeline_mode = #tpu.pipeline_mode<synchronous>, transform_indices = @transform_1, window_bounds = array<i64: 64, 24>}, {pipeline_mode = #tpu.pipeline_mode<synchronous>, transform_indices = @transform_2, window_bounds = array<i64: 1, 24>}, {pipeline_mode = #tpu.pipeline_mode<synchronous>, transform_indices = @transform_3, window_bounds = array<i64: 1, 24>}, {transform_indices = @transform_4, window_bounds = array<i64: 32, 24>}]} {
    %c0 = arith.constant 0 : index
    %c0_0 = arith.constant 0 : index
    %0 = vector.load %arg1[%c0, %c0_0] : memref<32x64xf32, #tpu.memory_space<vmem>>, vector<32x64xf32>
    %1 = arith.truncf %0 : vector<32x64xf32> to vector<32x64xbf16>
    %c0_1 = arith.constant 0 : index
    %c0_2 = arith.constant 0 : index
    %2 = vector.load %arg2[%c0_1, %c0_2] : memref<64x24xbf16, #tpu.memory_space<vmem>>, vector<64x24xbf16>
    %cst = arith.constant dense<0.000000e+00> : vector<32x24xf32>
    %3 = tpu.matmul %1, %2, %cst {dimension_numbers = #tpu.dot_dimension_numbers<[1], [0], [0], [1], [0, 0, 1, 1], [], []>} : vector<32x64xbf16>, vector<64x24xbf16>, vector<32x24xf32> -> vector<32x24xf32>
    %c0_3 = arith.constant 0 : index
    %c0_4 = arith.constant 0 : index
    %4 = vector.load %arg3[%c0_3, %c0_4] : memref<1x24xf32, #tpu.memory_space<vmem>>, vector<1x24xf32>
    %5 = vector.broadcast %4 : vector<1x24xf32> to vector<32x24xf32>
    %6 = arith.mulf %3, %5 : vector<32x24xf32>
    %c0_5 = arith.constant 0 : index
    %c0_6 = arith.constant 0 : index
    %7 = vector.load %arg4[%c0_5, %c0_6] : memref<1x24xf32, #tpu.memory_space<vmem>>, vector<1x24xf32>
    %8 = vector.broadcast %7 : vector<1x24xf32> to vector<32x24xf32>
    %9 = arith.addf %6, %8 : vector<32x24xf32>
    %c0_7 = arith.constant 0 : index
    %c0_8 = arith.constant 0 : index
    %10 = vector.load %arg5[%c0_7, %c0_8] : memref<32x24xf32, #tpu.memory_space<vmem>>, vector<32x24xf32>
    tpu.vector_store %arg5[%c0_7, %c0_8], %9 {strides = array<i32>} : memref<32x24xf32, #tpu.memory_space<vmem>>, vector<32x24xf32>,
    return
  }
  func.func @transform_0(%arg0: i32) -> (i32, i32) {
    %c0_i32 = arith.constant 0 : i32
    %c0_i32_0 = arith.constant 0 : i32
    return %arg0, %c0_i32 : i32, i32
  }
  func.func @transform_1(%arg0: i32) -> (i32, i32) {
    %c0_i32 = arith.constant 0 : i32
    %c0_i32_0 = arith.constant 0 : i32
    %c0_i32_1 = arith.constant 0 : i32
    return %c0_i32, %c0_i32_0 : i32, i32
  }
  func.func @transform_2(%arg0: i32) -> (i32, i32) {
    %c0_i32 = arith.constant 0 : i32
    %c0_i32_0 = arith.constant 0 : i32
    %c0_i32_1 = arith.constant 0 : i32
    return %c0_i32, %c0_i32_0 : i32, i32
  }
  func.func @transform_3(%arg0: i32) -> (i32, i32) {
    %c0_i32 = arith.constant 0 : i32
    %c0_i32_0 = arith.constant 0 : i32
    %c0_i32_1 = arith.constant 0 : i32
    return %c0_i32, %c0_i32_0 : i32, i32
  }
  func.func @transform_4(%arg0: i32) -> (i32, i32) {
    %c0_i32 = arith.constant 0 : i32
    %c0_i32_0 = arith.constant 0 : i32
    return %arg0, %c0_i32 : i32, i32
  }
}

module attributes {stable_mosaic.version = 11 : i64} {
  func.func @_mm_fused_kernel(%arg0: i32, %arg1: memref<8x96xf32, #tpu.memory_space<vmem>>, %arg2: memref<96x32xbf16, #tpu.memory_space<vmem>>, %arg3: memref<1x32xf32, #tpu.memory_space<vmem>>, %arg4: memref<1x32xf32, #tpu.memory_space<vmem>>, %arg5: memref<8x32xf32, #tpu.memory_space<vmem>>) attributes {dimension_semantics = [#tpu.dimension_semantics<parallel>], iteration_bounds = array<i64: 1>, scalar_prefetch = 0 : i64, scratch_operands = 0 : i64, tpu.core_type = #tpu.core_type<tc>, window_params = [{transform_indices = @transform_0, window_bounds = array<i64: 8, 96>}, {pipeline_mode = #tpu.pipeline_mode<synchronous>, transform_indices = @transform_1, window_bounds = array<i64: 96, 32>}, {pipeline_mode = #tpu.pipeline_mode<synchronous>, transform_indices = @transform_2, window_bounds = array<i64: 1, 32>}, {pipeline_mode = #tpu.pipeline_mode<synchronous>, transform_indices = @transform_3, window_bounds = array<i64: 1, 32>}, {transform_indices = @transform_4, window_bounds = array<i64: 8, 32>}]} {
    %c0 = arith.constant 0 : index
    %c0_0 = arith.constant 0 : index
    %0 = vector.load %arg1[%c0, %c0_0] : memref<8x96xf32, #tpu.memory_space<vmem>>, vector<8x96xf32>
    %1 = arith.truncf %0 : vector<8x96xf32> to vector<8x96xbf16>
    %c0_1 = arith.constant 0 : index
    %c0_2 = arith.constant 0 : index
    %2 = vector.load %arg2[%c0_1, %c0_2] : memref<96x32xbf16, #tpu.memory_space<vmem>>, vector<96x32xbf16>
    %cst = arith.constant dense<0.000000e+00> : vector<8x32xf32>
    %3 = tpu.matmul %1, %2, %cst {dimension_numbers = #tpu.dot_dimension_numbers<[1], [0], [0], [1], [0, 0, 1, 1], [], []>} : vector<8x96xbf16>, vector<96x32xbf16>, vector<8x32xf32> -> vector<8x32xf32>
    %c0_3 = arith.constant 0 : index
    %c0_4 = arith.constant 0 : index
    %4 = vector.load %arg3[%c0_3, %c0_4] : memref<1x32xf32, #tpu.memory_space<vmem>>, vector<1x32xf32>
    %5 = vector.broadcast %4 : vector<1x32xf32> to vector<8x32xf32>
    %6 = arith.mulf %3, %5 : vector<8x32xf32>
    %c0_5 = arith.constant 0 : index
    %c0_6 = arith.constant 0 : index
    %7 = vector.load %arg4[%c0_5, %c0_6] : memref<1x32xf32, #tpu.memory_space<vmem>>, vector<1x32xf32>
    %8 = vector.broadcast %7 : vector<1x32xf32> to vector<8x32xf32>
    %9 = arith.addf %6, %8 : vector<8x32xf32>
    %c0_7 = arith.constant 0 : index
    %c0_8 = arith.constant 0 : index
    %10 = vector.load %arg5[%c0_7, %c0_8] : memref<8x32xf32, #tpu.memory_space<vmem>>, vector<8x32xf32>
    tpu.vector_store %arg5[%c0_7, %c0_8], %9 {strides = array<i32>} : memref<8x32xf32, #tpu.memory_space<vmem>>, vector<8x32xf32>,
    return
  }
  func.func @transform_0(%arg0: i32) -> (i32, i32) {
    %c0_i32 = arith.constant 0 : i32
    %c0_i32_0 = arith.constant 0 : i32
    return %arg0, %c0_i32 : i32, i32
  }
  func.func @transform_1(%arg0: i32) -> (i32, i32) {
    %c0_i32 = arith.constant 0 : i32
    %c0_i32_0 = arith.constant 0 : i32
    %c0_i32_1 = arith.constant 0 : i32
    return %c0_i32, %c0_i32_0 : i32, i32
  }
  func.func @transform_2(%arg0: i32) -> (i32, i32) {
    %c0_i32 = arith.constant 0 : i32
    %c0_i32_0 = arith.constant 0 : i32
    %c0_i32_1 = arith.constant 0 : i32
    return %c0_i32, %c0_i32_0 : i32, i32
  }
  func.func @transform_3(%arg0: i32) -> (i32, i32) {
    %c0_i32 = arith.constant 0 : i32
    %c0_i32_0 = arith.constant 0 : i32
    %c0_i32_1 = arith.constant 0 : i32
    return %c0_i32, %c0_i32_0 : i32, i32
  }
  func.func @transform_4(%arg0: i32) -> (i32, i32) {
    %c0_i32 = arith.constant 0 : i32
    %c0_i32_0 = arith.constant 0 : i32
    return %arg0, %c0_i32 : i32, i32
  }
}

module attributes {stable_mosaic.version = 11 : i64} {
  func.func @_mm_bn_silu_multi_kernel(%arg0: i32, %arg1: memref<8x32xf32, #tpu.memory_space<vmem>>, %arg2: memref<32x128xbf16, #tpu.memory_space<vmem>>, %arg3: memref<1x128xf32, #tpu.memory_space<vmem>>, %arg4: memref<1x128xf32, #tpu.memory_space<vmem>>, %arg5: memref<8x128xf32, #tpu.memory_space<vmem>>, %arg6: memref<8x128xf32, #tpu.memory_space<vmem>>, %arg7: memref<8x128xf32, #tpu.memory_space<vmem>>) attributes {dimension_semantics = [#tpu.dimension_semantics<parallel>], iteration_bounds = array<i64: 1>, scalar_prefetch = 0 : i64, scratch_operands = 0 : i64, tpu.core_type = #tpu.core_type<tc>, window_params = [{transform_indices = @transform_0, window_bounds = array<i64: 8, 32>}, {pipeline_mode = #tpu.pipeline_mode<synchronous>, transform_indices = @transform_1, window_bounds = array<i64: 32, 128>}, {pipeline_mode = #tpu.pipeline_mode<synchronous>, transform_indices = @transform_2, window_bounds = array<i64: 1, 128>}, {pipeline_mode = #tpu.pipeline_mode<synchronous>, transform_indices = @transform_3, window_bounds = array<i64: 1, 128>}, {transform_indices = @transform_4, window_bounds = array<i64: 8, 128>}, {transform_indices = @transform_5, window_bounds = array<i64: 8, 128>}, {transform_indices = @transform_6, window_bounds = array<i64: 8, 128>}]} {
    %c0 = arith.constant 0 : index
    %c0_0 = arith.constant 0 : index
    %0 = vector.load %arg1[%c0, %c0_0] : memref<8x32xf32, #tpu.memory_space<vmem>>, vector<8x32xf32>
    %1 = arith.truncf %0 : vector<8x32xf32> to vector<8x32xbf16>
    %c0_1 = arith.constant 0 : index
    %c0_2 = arith.constant 0 : index
    %2 = vector.load %arg2[%c0_1, %c0_2] : memref<32x128xbf16, #tpu.memory_space<vmem>>, vector<32x128xbf16>
    %cst = arith.constant dense<0.000000e+00> : vector<8x128xf32>
    %3 = tpu.matmul %1, %2, %cst {dimension_numbers = #tpu.dot_dimension_numbers<[1], [0], [0], [1], [0, 0, 1, 1], [], []>} : vector<8x32xbf16>, vector<32x128xbf16>, vector<8x128xf32> -> vector<8x128xf32>
    %c0_3 = arith.constant 0 : index
    %c0_4 = arith.constant 0 : index
    %4 = vector.load %arg5[%c0_3, %c0_4] : memref<8x128xf32, #tpu.memory_space<vmem>>, vector<8x128xf32>
    tpu.vector_store %arg5[%c0_3, %c0_4], %3 {strides = array<i32>} : memref<8x128xf32, #tpu.memory_space<vmem>>, vector<8x128xf32>,
    %c0_5 = arith.constant 0 : index
    %c0_6 = arith.constant 0 : index
    %5 = vector.load %arg3[%c0_5, %c0_6] : memref<1x128xf32, #tpu.memory_space<vmem>>, vector<1x128xf32>
    %6 = vector.broadcast %5 : vector<1x128xf32> to vector<8x128xf32>
    %7 = arith.mulf %3, %6 : vector<8x128xf32>
    %c0_7 = arith.constant 0 : index
    %c0_8 = arith.constant 0 : index
    %8 = vector.load %arg4[%c0_7, %c0_8] : memref<1x128xf32, #tpu.memory_space<vmem>>, vector<1x128xf32>
    %9 = vector.broadcast %8 : vector<1x128xf32> to vector<8x128xf32>
    %10 = arith.addf %7, %9 : vector<8x128xf32>
    %c0_9 = arith.constant 0 : index
    %c0_10 = arith.constant 0 : index
    %11 = vector.load %arg6[%c0_9, %c0_10] : memref<8x128xf32, #tpu.memory_space<vmem>>, vector<8x128xf32>
    tpu.vector_store %arg6[%c0_9, %c0_10], %10 {strides = array<i32>} : memref<8x128xf32, #tpu.memory_space<vmem>>, vector<8x128xf32>,
    %12 = arith.negf %10 : vector<8x128xf32>
    %13 = math.exp %12 : vector<8x128xf32>
    %cst_11 = arith.constant 1.000000e+00 : f32
    %14 = vector.broadcast %cst_11 : f32 to vector<8x128xf32>
    %15 = arith.addf %14, %13 : vector<8x128xf32>
    %16 = arith.divf %14, %15 : vector<8x128xf32>
    %17 = arith.mulf %10, %16 : vector<8x128xf32>
    %c0_12 = arith.constant 0 : index
    %c0_13 = arith.constant 0 : index
    %18 = vector.load %arg7[%c0_12, %c0_13] : memref<8x128xf32, #tpu.memory_space<vmem>>, vector<8x128xf32>
    tpu.vector_store %arg7[%c0_12, %c0_13], %17 {strides = array<i32>} : memref<8x128xf32, #tpu.memory_space<vmem>>, vector<8x128xf32>,
    return
  }
  func.func @transform_0(%arg0: i32) -> (i32, i32) {
    %c0_i32 = arith.constant 0 : i32
    %c0_i32_0 = arith.constant 0 : i32
    return %arg0, %c0_i32 : i32, i32
  }
  func.func @transform_1(%arg0: i32) -> (i32, i32) {
    %c0_i32 = arith.constant 0 : i32
    %c0_i32_0 = arith.constant 0 : i32
    %c0_i32_1 = arith.constant 0 : i32
    return %c0_i32, %c0_i32_0 : i32, i32
  }
  func.func @transform_2(%arg0: i32) -> (i32, i32) {
    %c0_i32 = arith.constant 0 : i32
    %c0_i32_0 = arith.constant 0 : i32
    %c0_i32_1 = arith.constant 0 : i32
    return %c0_i32, %c0_i32_0 : i32, i32
  }
  func.func @transform_3(%arg0: i32) -> (i32, i32) {
    %c0_i32 = arith.constant 0 : i32
    %c0_i32_0 = arith.constant 0 : i32
    %c0_i32_1 = arith.constant 0 : i32
    return %c0_i32, %c0_i32_0 : i32, i32
  }
  func.func @transform_4(%arg0: i32) -> (i32, i32) {
    %c0_i32 = arith.constant 0 : i32
    %c0_i32_0 = arith.constant 0 : i32
    return %arg0, %c0_i32 : i32, i32
  }
  func.func @transform_5(%arg0: i32) -> (i32, i32) {
    %c0_i32 = arith.constant 0 : i32
    %c0_i32_0 = arith.constant 0 : i32
    return %arg0, %c0_i32 : i32, i32
  }
  func.func @transform_6(%arg0: i32) -> (i32, i32) {
    %c0_i32 = arith.constant 0 : i32
    %c0_i32_0 = arith.constant 0 : i32
    return %arg0, %c0_i32 : i32, i32
  }
}

module attributes {stable_mosaic.version = 11 : i64} {
  func.func @_dwconv_bn_act_kernel(%arg0: i32, %arg1: memref<4x1x3x3x96xf32, #tpu.memory_space<vmem>>, %arg2: memref<9x1x1x1x96xf32, #tpu.memory_space<vmem>>, %arg3: memref<1x1x1x96xf32, #tpu.memory_space<vmem>>, %arg4: memref<1x1x1x96xf32, #tpu.memory_space<vmem>>, %arg5: memref<1x2x2x96xf32, #tpu.memory_space<vmem>>) attributes {dimension_semantics = [#tpu.dimension_semantics<parallel>], iteration_bounds = array<i64: 2>, scalar_prefetch = 0 : i64, scratch_operands = 0 : i64, tpu.core_type = #tpu.core_type<tc>, window_params = [{transform_indices = @transform_0, window_bounds = array<i64: 4, 1, 3, 3, 96>}, {pipeline_mode = #tpu.pipeline_mode<synchronous>, transform_indices = @transform_1, window_bounds = array<i64: 9, 1, 1, 1, 96>}, {pipeline_mode = #tpu.pipeline_mode<synchronous>, transform_indices = @transform_2, window_bounds = array<i64: 1, 1, 1, 96>}, {pipeline_mode = #tpu.pipeline_mode<synchronous>, transform_indices = @transform_3, window_bounds = array<i64: 1, 1, 1, 96>}, {transform_indices = @transform_4, window_bounds = array<i64: 1, 2, 2, 96>}]} {
    %c0 = arith.constant 0 : index
    %c0_0 = arith.constant 0 : index
    %c0_1 = arith.constant 0 : index
    %c0_2 = arith.constant 0 : index
    %c0_3 = arith.constant 0 : index
    %0 = vector.load %arg1[%c0, %c0_0, %c0_1, %c0_2, %c0_3] : memref<4x1x3x3x96xf32, #tpu.memory_space<vmem>>, vector<1x1x3x3x96xf32>
    %1 = vector.shape_cast %0 : vector<1x1x3x3x96xf32> to vector<1x3x3x96xf32>
    %c1 = arith.constant 1 : index
    %c0_4 = arith.constant 0 : index
    %c0_5 = arith.constant 0 : index
    %c0_6 = arith.constant 0 : index
    %c0_7 = arith.constant 0 : index
    %2 = vector.load %arg1[%c1, %c0_4, %c0_5, %c0_6, %c0_7] : memref<4x1x3x3x96xf32, #tpu.memory_space<vmem>>, vector<1x1x3x3x96xf32>
    %3 = vector.shape_cast %2 : vector<1x1x3x3x96xf32> to vector<1x3x3x96xf32>
    %c2 = arith.constant 2 : index
    %c0_8 = arith.constant 0 : index
    %c0_9 = arith.constant 0 : index
    %c0_10 = arith.constant 0 : index
    %c0_11 = arith.constant 0 : index
    %4 = vector.load %arg1[%c2, %c0_8, %c0_9, %c0_10, %c0_11] : memref<4x1x3x3x96xf32, #tpu.memory_space<vmem>>, vector<1x1x3x3x96xf32>
    %5 = vector.shape_cast %4 : vector<1x1x3x3x96xf32> to vector<1x3x3x96xf32>
    %c3 = arith.constant 3 : index
    %c0_12 = arith.constant 0 : index
    %c0_13 = arith.constant 0 : index
    %c0_14 = arith.constant 0 : index
    %c0_15 = arith.constant 0 : index
    %6 = vector.load %arg1[%c3, %c0_12, %c0_13, %c0_14, %c0_15] : memref<4x1x3x3x96xf32, #tpu.memory_space<vmem>>, vector<1x1x3x3x96xf32>
    %7 = vector.shape_cast %6 : vector<1x1x3x3x96xf32> to vector<1x3x3x96xf32>
    %cst = arith.constant 0.000000e+00 : f32
    %8 = vector.broadcast %cst : f32 to vector<1x2x2x96xf32>
    %9 = vector.extract_strided_slice %1 {offsets = [0, 0, 0, 0], sizes = [1, 2, 2, 96], strides = [1, 1, 1, 1]} : vector<1x3x3x96xf32> to vector<1x2x2x96xf32>
    %c0_16 = arith.constant 0 : index
    %c0_17 = arith.constant 0 : index
    %c0_18 = arith.constant 0 : index
    %c0_19 = arith.constant 0 : index
    %c0_20 = arith.constant 0 : index
    %10 = vector.load %arg2[%c0_16, %c0_17, %c0_18, %c0_19, %c0_20] : memref<9x1x1x1x96xf32, #tpu.memory_space<vmem>>, vector<1x1x1x1x96xf32>
    %11 = vector.shape_cast %10 : vector<1x1x1x1x96xf32> to vector<1x1x1x96xf32>
    %12 = vector.broadcast %11 : vector<1x1x1x96xf32> to vector<1x2x2x96xf32>
    %13 = arith.mulf %9, %12 : vector<1x2x2x96xf32>
    %14 = arith.addf %8, %13 : vector<1x2x2x96xf32>
    %15 = vector.extract_strided_slice %3 {offsets = [0, 0, 0, 0], sizes = [1, 2, 2, 96], strides = [1, 1, 1, 1]} : vector<1x3x3x96xf32> to vector<1x2x2x96xf32>
    %c1_21 = arith.constant 1 : index
    %c0_22 = arith.constant 0 : index
    %c0_23 = arith.constant 0 : index
    %c0_24 = arith.constant 0 : index
    %c0_25 = arith.constant 0 : index
    %16 = vector.load %arg2[%c1_21, %c0_22, %c0_23, %c0_24, %c0_25] : memref<9x1x1x1x96xf32, #tpu.memory_space<vmem>>, vector<1x1x1x1x96xf32>
    %17 = vector.shape_cast %16 : vector<1x1x1x1x96xf32> to vector<1x1x1x96xf32>
    %18 = vector.broadcast %17 : vector<1x1x1x96xf32> to vector<1x2x2x96xf32>
    %19 = arith.mulf %15, %18 : vector<1x2x2x96xf32>
    %20 = arith.addf %14, %19 : vector<1x2x2x96xf32>
    %21 = vector.extract_strided_slice %1 {offsets = [0, 0, 1, 0], sizes = [1, 2, 2, 96], strides = [1, 1, 1, 1]} : vector<1x3x3x96xf32> to vector<1x2x2x96xf32>
    %c2_26 = arith.constant 2 : index
    %c0_27 = arith.constant 0 : index
    %c0_28 = arith.constant 0 : index
    %c0_29 = arith.constant 0 : index
    %c0_30 = arith.constant 0 : index
    %22 = vector.load %arg2[%c2_26, %c0_27, %c0_28, %c0_29, %c0_30] : memref<9x1x1x1x96xf32, #tpu.memory_space<vmem>>, vector<1x1x1x1x96xf32>
    %23 = vector.shape_cast %22 : vector<1x1x1x1x96xf32> to vector<1x1x1x96xf32>
    %24 = vector.broadcast %23 : vector<1x1x1x96xf32> to vector<1x2x2x96xf32>
    %25 = arith.mulf %21, %24 : vector<1x2x2x96xf32>
    %26 = arith.addf %20, %25 : vector<1x2x2x96xf32>
    %27 = vector.extract_strided_slice %5 {offsets = [0, 0, 0, 0], sizes = [1, 2, 2, 96], strides = [1, 1, 1, 1]} : vector<1x3x3x96xf32> to vector<1x2x2x96xf32>
    %c3_31 = arith.constant 3 : index
    %c0_32 = arith.constant 0 : index
    %c0_33 = arith.constant 0 : index
    %c0_34 = arith.constant 0 : index
    %c0_35 = arith.constant 0 : index
    %28 = vector.load %arg2[%c3_31, %c0_32, %c0_33, %c0_34, %c0_35] : memref<9x1x1x1x96xf32, #tpu.memory_space<vmem>>, vector<1x1x1x1x96xf32>
    %29 = vector.shape_cast %28 : vector<1x1x1x1x96xf32> to vector<1x1x1x96xf32>
    %30 = vector.broadcast %29 : vector<1x1x1x96xf32> to vector<1x2x2x96xf32>
    %31 = arith.mulf %27, %30 : vector<1x2x2x96xf32>
    %32 = arith.addf %26, %31 : vector<1x2x2x96xf32>
    %33 = vector.extract_strided_slice %7 {offsets = [0, 0, 0, 0], sizes = [1, 2, 2, 96], strides = [1, 1, 1, 1]} : vector<1x3x3x96xf32> to vector<1x2x2x96xf32>
    %c4 = arith.constant 4 : index
    %c0_36 = arith.constant 0 : index
    %c0_37 = arith.constant 0 : index
    %c0_38 = arith.constant 0 : index
    %c0_39 = arith.constant 0 : index
    %34 = vector.load %arg2[%c4, %c0_36, %c0_37, %c0_38, %c0_39] : memref<9x1x1x1x96xf32, #tpu.memory_space<vmem>>, vector<1x1x1x1x96xf32>
    %35 = vector.shape_cast %34 : vector<1x1x1x1x96xf32> to vector<1x1x1x96xf32>
    %36 = vector.broadcast %35 : vector<1x1x1x96xf32> to vector<1x2x2x96xf32>
    %37 = arith.mulf %33, %36 : vector<1x2x2x96xf32>
    %38 = arith.addf %32, %37 : vector<1x2x2x96xf32>
    %39 = vector.extract_strided_slice %5 {offsets = [0, 0, 1, 0], sizes = [1, 2, 2, 96], strides = [1, 1, 1, 1]} : vector<1x3x3x96xf32> to vector<1x2x2x96xf32>
    %c5 = arith.constant 5 : index
    %c0_40 = arith.constant 0 : index
    %c0_41 = arith.constant 0 : index
    %c0_42 = arith.constant 0 : index
    %c0_43 = arith.constant 0 : index
    %40 = vector.load %arg2[%c5, %c0_40, %c0_41, %c0_42, %c0_43] : memref<9x1x1x1x96xf32, #tpu.memory_space<vmem>>, vector<1x1x1x1x96xf32>
    %41 = vector.shape_cast %40 : vector<1x1x1x1x96xf32> to vector<1x1x1x96xf32>
    %42 = vector.broadcast %41 : vector<1x1x1x96xf32> to vector<1x2x2x96xf32>
    %43 = arith.mulf %39, %42 : vector<1x2x2x96xf32>
    %44 = arith.addf %38, %43 : vector<1x2x2x96xf32>
    %45 = vector.extract_strided_slice %1 {offsets = [0, 1, 0, 0], sizes = [1, 2, 2, 96], strides = [1, 1, 1, 1]} : vector<1x3x3x96xf32> to vector<1x2x2x96xf32>
    %c6 = arith.constant 6 : index
    %c0_44 = arith.constant 0 : index
    %c0_45 = arith.constant 0 : index
    %c0_46 = arith.constant 0 : index
    %c0_47 = arith.constant 0 : index
    %46 = vector.load %arg2[%c6, %c0_44, %c0_45, %c0_46, %c0_47] : memref<9x1x1x1x96xf32, #tpu.memory_space<vmem>>, vector<1x1x1x1x96xf32>
    %47 = vector.shape_cast %46 : vector<1x1x1x1x96xf32> to vector<1x1x1x96xf32>
    %48 = vector.broadcast %47 : vector<1x1x1x96xf32> to vector<1x2x2x96xf32>
    %49 = arith.mulf %45, %48 : vector<1x2x2x96xf32>
    %50 = arith.addf %44, %49 : vector<1x2x2x96xf32>
    %51 = vector.extract_strided_slice %3 {offsets = [0, 1, 0, 0], sizes = [1, 2, 2, 96], strides = [1, 1, 1, 1]} : vector<1x3x3x96xf32> to vector<1x2x2x96xf32>
    %c7 = arith.constant 7 : index
    %c0_48 = arith.constant 0 : index
    %c0_49 = arith.constant 0 : index
    %c0_50 = arith.constant 0 : index
    %c0_51 = arith.constant 0 : index
    %52 = vector.load %arg2[%c7, %c0_48, %c0_49, %c0_50, %c0_51] : memref<9x1x1x1x96xf32, #tpu.memory_space<vmem>>, vector<1x1x1x1x96xf32>
    %53 = vector.shape_cast %52 : vector<1x1x1x1x96xf32> to vector<1x1x1x96xf32>
    %54 = vector.broadcast %53 : vector<1x1x1x96xf32> to vector<1x2x2x96xf32>
    %55 = arith.mulf %51, %54 : vector<1x2x2x96xf32>
    %56 = arith.addf %50, %55 : vector<1x2x2x96xf32>
    %57 = vector.extract_strided_slice %1 {offsets = [0, 1, 1, 0], sizes = [1, 2, 2, 96], strides = [1, 1, 1, 1]} : vector<1x3x3x96xf32> to vector<1x2x2x96xf32>
    %c8 = arith.constant 8 : index
    %c0_52 = arith.constant 0 : index
    %c0_53 = arith.constant 0 : index
    %c0_54 = arith.constant 0 : index
    %c0_55 = arith.constant 0 : index
    %58 = vector.load %arg2[%c8, %c0_52, %c0_53, %c0_54, %c0_55] : memref<9x1x1x1x96xf32, #tpu.memory_space<vmem>>, vector<1x1x1x1x96xf32>
    %59 = vector.shape_cast %58 : vector<1x1x1x1x96xf32> to vector<1x1x1x96xf32>
    %60 = vector.broadcast %59 : vector<1x1x1x96xf32> to vector<1x2x2x96xf32>
    %61 = arith.mulf %57, %60 : vector<1x2x2x96xf32>
    %62 = arith.addf %56, %61 : vector<1x2x2x96xf32>
    %c0_56 = arith.constant 0 : index
    %c0_57 = arith.constant 0 : index
    %c0_58 = arith.constant 0 : index
    %c0_59 = arith.constant 0 : index
    %63 = vector.load %arg3[%c0_56, %c0_57, %c0_58, %c0_59] : memref<1x1x1x96xf32, #tpu.memory_space<vmem>>, vector<1x1x1x96xf32>
    %64 = vector.broadcast %63 : vector<1x1x1x96xf32> to vector<1x2x2x96xf32>
    %65 = arith.mulf %62, %64 : vector<1x2x2x96xf32>
    %c0_60 = arith.constant 0 : index
    %c0_61 = arith.constant 0 : index
    %c0_62 = arith.constant 0 : index
    %c0_63 = arith.constant 0 : index
    %66 = vector.load %arg4[%c0_60, %c0_61, %c0_62, %c0_63] : memref<1x1x1x96xf32, #tpu.memory_space<vmem>>, vector<1x1x1x96xf32>
    %67 = vector.broadcast %66 : vector<1x1x1x96xf32> to vector<1x2x2x96xf32>
    %68 = arith.addf %65, %67 : vector<1x2x2x96xf32>
    %69 = arith.negf %68 : vector<1x2x2x96xf32>
    %70 = math.exp %69 : vector<1x2x2x96xf32>
    %cst_64 = arith.constant 1.000000e+00 : f32
    %71 = vector.broadcast %cst_64 : f32 to vector<1x2x2x96xf32>
    %72 = arith.addf %71, %70 : vector<1x2x2x96xf32>
    %73 = arith.divf %71, %72 : vector<1x2x2x96xf32>
    %74 = arith.mulf %68, %73 : vector<1x2x2x96xf32>
    %c0_65 = arith.constant 0 : index
    %c0_66 = arith.constant 0 : index
    %c0_67 = arith.constant 0 : index
    %c0_68 = arith.constant 0 : index
    %75 = vector.load %arg5[%c0_65, %c0_66, %c0_67, %c0_68] : memref<1x2x2x96xf32, #tpu.memory_space<vmem>>, vector<1x2x2x96xf32>
    tpu.vector_store %arg5[%c0_65, %c0_66, %c0_67, %c0_68], %74 {strides = array<i32>} : memref<1x2x2x96xf32, #tpu.memory_space<vmem>>, vector<1x2x2x96xf32>,
    return
  }
  func.func @transform_0(%arg0: i32) -> (i32, i32, i32, i32, i32) {
    %c0_i32 = arith.constant 0 : i32
    %c0_i32_0 = arith.constant 0 : i32
    %c0_i32_1 = arith.constant 0 : i32
    %c0_i32_2 = arith.constant 0 : i32
    %c0_i32_3 = arith.constant 0 : i32
    return %c0_i32, %arg0, %c0_i32_0, %c0_i32_1, %c0_i32_2 : i32, i32, i32, i32, i32
  }
  func.func @transform_1(%arg0: i32) -> (i32, i32, i32, i32, i32) {
    %c0_i32 = arith.constant 0 : i32
    %c0_i32_0 = arith.constant 0 : i32
    %c0_i32_1 = arith.constant 0 : i32
    %c0_i32_2 = arith.constant 0 : i32
    %c0_i32_3 = arith.constant 0 : i32
    %c0_i32_4 = arith.constant 0 : i32
    return %c0_i32, %c0_i32_0, %c0_i32_1, %c0_i32_2, %c0_i32_3 : i32, i32, i32, i32, i32
  }
  func.func @transform_2(%arg0: i32) -> (i32, i32, i32, i32) {
    %c0_i32 = arith.constant 0 : i32
    %c0_i32_0 = arith.constant 0 : i32
    %c0_i32_1 = arith.constant 0 : i32
    %c0_i32_2 = arith.constant 0 : i32
    %c0_i32_3 = arith.constant 0 : i32
    return %c0_i32, %c0_i32_0, %c0_i32_1, %c0_i32_2 : i32, i32, i32, i32
  }
  func.func @transform_3(%arg0: i32) -> (i32, i32, i32, i32) {
    %c0_i32 = arith.constant 0 : i32
    %c0_i32_0 = arith.constant 0 : i32
    %c0_i32_1 = arith.constant 0 : i32
    %c0_i32_2 = arith.constant 0 : i32
    %c0_i32_3 = arith.constant 0 : i32
    return %c0_i32, %c0_i32_0, %c0_i32_1, %c0_i32_2 : i32, i32, i32, i32
  }
  func.func @transform_4(%arg0: i32) -> (i32, i32, i32, i32) {
    %c0_i32 = arith.constant 0 : i32
    %c0_i32_0 = arith.constant 0 : i32
    %c0_i32_1 = arith.constant 0 : i32
    %c0_i32_2 = arith.constant 0 : i32
    return %arg0, %c0_i32, %c0_i32_0, %c0_i32_1 : i32, i32, i32, i32
  }
}

</mosaic_0001>

<bundles_post_ra>
// kernel: _encoder_forward.13
= control target key start
LH: loop header
LB: loop body
LE: loop exit
PB: predicated region body
PF: predicated region fallthrough
CT: control target
= control target key end

     0   :  { %vm50_vm0 = vcmask 130048   ;;  %vm330_vm1 = vcmask 523264   ;;  %s726_s1 = inlined_call_operand.vmem [shape: bf16[16,64], index: 1, kind: input, shape index: {}]   ;;  %s727_s0 = inlined_call_operand.vmem [shape: f32[128,16], index: 0, kind: input, shape index: {}]   ;;  %s728_s2 = inlined_call_operand.vmem [shape: f32[1,64], index: 2, kind: input, shape index: {}]   ;;  %s729_s3 = inlined_call_operand.vmem [shape: f32[1,64], index: 3, kind: input, shape index: {}]   ;;  %s730_s4 = inlined_call_operand.vmem [shape: f32[128,64], index: 4, kind: output, shape index: {}]  }
   0x1   :  { %v407_v0 = vld [vmem:[%s726_s1] sm:$0xff]   ;;  %v19_v2 = vld [vmem:[%s727_s0 + $0x8] sm:$0xff]  ;;  %v20_v6 = vld [vmem:[%s727_s0 + $0x10] sm:$0xff] }
   0x2   :  { %v18_v1 = vld [vmem:[%s727_s0] sm:$0xff]  ;;  %387 = vmatprep.subr.bf16.mxu0 %v407_v0  ;;  %405 = vmatprep.subr.bf16.mxu1 %v407_v0  ;;  %v27_v5 = vld [vmem:[%s727_s0 + $0x48] sm:$0xff]  ;;  %v21_v7 = vld [vmem:[%s727_s0 + $0x18] sm:$0xff] }
   0x3   :  { %v26_v3 = vld [vmem:[%s727_s0 + $0x40] sm:$0xff]  ;;  %v34_v4 = vpack.c.bf16 %v19_v2, %v18_v1  ;;  %388 = vmatpush3.bf16.msra.mxu0 %v407_v0  ;;  %406 = vmatpush3.bf16.msra.mxu1 %v407_v0  ;;  %v35_v9 = vpack.c.bf16 %v21_v7, %v20_v6  ;;  %v28_v10 = vld [vmem:[%s727_s0 + $0x50] sm:$0xff]  ;;  %v29_v11 = vld [vmem:[%s727_s0 + $0x58] sm:$0xff] }
   0x4   :  { %v38_v8 = vpack.c.bf16 %v27_v5, %v26_v3  ;;  %v22_v12 = vld [vmem:[%s727_s0 + $0x20] sm:$0xff]  ;;  %v39_v13 = vpack.c.bf16 %v29_v11, %v28_v10  ;;  %v23_v14 = vld [vmem:[%s727_s0 + $0x28] sm:$0xff]  ;;  %v24_v19 = vld [vmem:[%s727_s0 + $0x30] sm:$0xff] }
   0x5   :  { %389 = vmatprep.mubr.msk.bf16.mxu0 %vm50_vm0, %v34_v4  ;;  %v30_v15 = vld [vmem:[%s727_s0 + $0x60] sm:$0xff]  ;;  %v31_v16 = vld [vmem:[%s727_s0 + $0x68] sm:$0xff]  ;;  %v36_v17 = vpack.c.bf16 %v23_v14, %v22_v12  ;;  %v25_v20 = vld [vmem:[%s727_s0 + $0x38] sm:$0xff] }
   0x6   :  { %397 = vmatprep.mubr.msk.bf16.mxu1 %vm50_vm0, %v38_v8  ;;  %v40_v18 = vpack.c.bf16 %v31_v16, %v30_v15  ;;  %390 = vmatmul.mubr.msk.bf16.vlgmr.msra.gmra.mrb[0].mxu0 %vm50_vm0, %v35_v9  ;;  %v32_v21 = vld [vmem:[%s727_s0 + $0x70] sm:$0xff]  ;;  %v33_v22 = vld [vmem:[%s727_s0 + $0x78] sm:$0xff]  ;;  %v37_v23 = vpack.c.bf16 %v25_v20, %v24_v19  ;;  %v559_v25 = vld [vmem:[%s728_s2] ss:$0 sm:$0xff] }
   0x7   :  { %398 = vmatmul.mubr.msk.bf16.vlgmr.msra.gmra.mrb[0].mxu1 %vm50_vm0, %v39_v13  ;;  %393 = vmatprep.mubr.msk.bf16.mxu0 %vm50_vm0, %v36_v17  ;;  %v41_v24 = vpack.c.bf16 %v33_v22, %v32_v21  ;;  %v564_v27 = vld [vmem:[%s729_s3] ss:$0 sm:$0xff] }
   0x8   :  { %401 = vmatprep.mubr.msk.bf16.mxu1 %vm50_vm0, %v40_v18 }
   0xe   :  { %394 = vmatmul.mubr.msk.bf16.gmra.mrb[4].mxu0 %vm50_vm0, %v37_v23 }
   0xf   :  { %402 = vmatmul.mubr.msk.bf16.gmra.mrb[4].mxu1 %vm50_vm0, %v41_v24 }
  0xd9   :  { %v391_v26 = vpop.f32.mrb[0].mxu0 }
  0xda   :  { %v399_v28 = vpop.f32.mrb[0].mxu1  ;;  %v181_v29 = vmul.f32 %v391_v26, %v559_v25  ;;  %v109_v31 = vpop.f32.mrb[1].mxu0 }
  0xdb   :  { %v189_v30 = vmul.f32 %v399_v28, %v559_v25  ;;  %v141_v32 = vpop.f32.mrb[1].mxu1  ;;  %v179_v33 = vmul.f32 %v559_v25, %v109_v31  ;;  %v392_v35 = vpop.f32.mrb[2].mxu0 }
  0xdc   :  { %v187_v34 = vmul.f32 %v559_v25, %v141_v32  ;;  %v400_v36 = vpop.f32.mrb[2].mxu1  ;;  %v571_v37 = vadd.f32 %v564_v27, %v181_v29  ;;  %v182_v39 = vmul.f32 %v392_v35, %v559_v25  ;;  %v112_v41 = vpop.f32.mrb[3].mxu0 }
  0xdd   :  { %v574_v38 = vadd.f32 %v564_v27, %v189_v30  ;;  %v190_v40 = vmul.f32 %v400_v36, %v559_v25  ;;  %v144_v42 = vpop.f32.mrb[3].mxu1  ;;  %v579_v43 = vadd.f32 %v564_v27, %v179_v33  ;;  %v180_v45 = vmul.f32 %v559_v25, %v112_v41 }
  0xde   :  { %v582_v44 = vadd.f32 %v564_v27, %v187_v34  ;;  %v188_v46 = vmul.f32 %v559_v25, %v144_v42  ;;  %v364_v47 = vmul.f32 -1.442695, %v571_v37  ;;  %v589_v49 = vadd.f32 %v564_v27, %v182_v39 }
  0xdf   :  { %v372_v48 = vmul.f32 -1.442695, %v574_v38  ;;  %v592_v50 = vadd.f32 %v564_v27, %v190_v40  ;;  %v362_v51 = vmul.f32 -1.442695, %v579_v43  ;;  %v597_v53 = vadd.f32 %v564_v27, %v180_v45 }
  0xe0   :  { %v370_v52 = vmul.f32 -1.442695, %v582_v44  ;;  %v600_v54 = vadd.f32 %v564_v27, %v188_v46  ;;  %408 = vpow2.f32 %v364_v47  ;;  %v365_v55 = vmul.f32 -1.442695, %v589_v49 }
  0xe1   :  { %410 = vpow2.f32 %v372_v48  ;;  %v373_v56 = vmul.f32 -1.442695, %v592_v50  ;;  %v395_v57 = vpop.f32.mrb[4].mxu0  ;;  %v363_v59 = vmul.f32 -1.442695, %v597_v53 }
  0xe2   :  { %v403_v58 = vpop.f32.mrb[4].mxu1  ;;  %412 = vpow2.f32 %v362_v51  ;;  %v185_v60 = vmul.f32 %v395_v57, %v559_v25  ;;  %v125_v62 = vpop.f32.mrb[5].mxu0  ;;  %v371_v0 = vmul.f32 -1.442695, %v600_v54 }
  0xe3   :  { %v193_v61 = vmul.f32 %v403_v58, %v559_v25  ;;  %v157_v63 = vpop.f32.mrb[5].mxu1  ;;  %414 = vpow2.f32 %v370_v52  ;;  %v183_v1 = vmul.f32 %v559_v25, %v125_v62  ;;  %v396_v3 = vpop.f32.mrb[6].mxu0 }
  0xe4   :  { %v191_v2 = vmul.f32 %v559_v25, %v157_v63  ;;  %v404_v4 = vpop.f32.mrb[6].mxu1  ;;  %416 = vpow2.f32 %v365_v55  ;;  %v611_v5 = vadd.f32 %v564_v27, %v185_v60  ;;  %v186_v7 = vmul.f32 %v396_v3, %v559_v25  ;;  %v128_v8 = vpop.f32.mrb[7].mxu0 }
  0xe5   :  { %v614_v6 = vadd.f32 %v564_v27, %v193_v61  ;;  %v160_v9 = vpop.f32.mrb[7].mxu1  ;;  %418 = vpow2.f32 %v373_v56  ;;  %v618_v10 = vadd.f32 %v564_v27, %v183_v1  ;;  %v194_v29 = vmul.f32 %v404_v4, %v559_v25 }
  0xe6   :  { %v621_v11 = vadd.f32 %v564_v27, %v191_v2  ;;  %420 = vpow2.f32 %v363_v59  ;;  %v368_v12 = vmul.f32 -1.442695, %v611_v5  ;;  %v626_v14 = vadd.f32 %v564_v27, %v186_v7 }
  0xe7   :  { %v376_v13 = vmul.f32 -1.442695, %v614_v6  ;;  %422 = vpow2.f32 %v371_v0  ;;  %v366_v15 = vmul.f32 -1.442695, %v618_v10  ;;  %v184_v32 = vmul.f32 %v559_v25, %v128_v8 }
  0xe8   :  { %v374_v16 = vmul.f32 -1.442695, %v621_v11  ;;  %424 = vpow2.f32 %v368_v12  ;;  %v369_v17 = vmul.f32 -1.442695, %v626_v14  ;;  %v192_v35 = vmul.f32 %v559_v25, %v160_v9 }
  0xe9   :  { %426 = vpow2.f32 %v376_v13  ;;  %v635_v42 = vadd.f32 %v564_v27, %v194_v29  ;;  %v638_v47 = vadd.f32 %v564_v27, %v184_v32 }
  0xea   :  { %v409_v18 = vpop.eup %408  ;;  %428 = vpow2.f32 %v366_v15  ;;  %v641_v25 = vadd.f32 %v564_v27, %v192_v35 }
  0xeb   :  { %v411_v19 = vpop.eup %410  ;;  %v268_v20 = vadd.f32 1.0, %v409_v18  ;;  %430 = vpow2.f32 %v374_v16  ;;  %v377_v58 = vmul.f32 -1.442695, %v635_v42  ;;  %v367_v61 = vmul.f32 -1.442695, %v638_v47 }
  0xec   :  { %v413_v21 = vpop.eup %412  ;;  %v276_v22 = vadd.f32 1.0, %v411_v19  ;;  %432 = vpow2.f32 %v369_v17  ;;  %v375_v27 = vmul.f32 -1.442695, %v641_v25 }
  0xed   :  { %v415_v23 = vpop.eup %414  ;;  %434 = vrcp.f32 %v268_v20  ;;  %v266_v24 = vadd.f32 1.0, %v413_v21 }
  0xee   :  { %v417_v26 = vpop.eup %416  ;;  %436 = vrcp.f32 %v276_v22  ;;  %v274_v28 = vadd.f32 1.0, %v415_v23 }
  0xef   :  { %v419_v30 = vpop.eup %418  ;;  %438 = vrcp.f32 %v266_v24  ;;  %v269_v31 = vadd.f32 1.0, %v417_v26 }
  0xf0   :  { %v421_v33 = vpop.eup %420  ;;  %440 = vrcp.f32 %v274_v28  ;;  %v277_v34 = vadd.f32 1.0, %v419_v30 }
  0xf1   :  { %v423_v36 = vpop.eup %422  ;;  %442 = vrcp.f32 %v269_v31  ;;  %v267_v39 = vadd.f32 1.0, %v421_v33 }
  0xf2   :  { %v425_v40 = vpop.eup %424  ;;  %444 = vrcp.f32 %v277_v34  ;;  %v275_v41 = vadd.f32 1.0, %v423_v36 }
  0xf3   :  { %v427_v45 = vpop.eup %426  ;;  %446 = vrcp.f32 %v267_v39  ;;  %v272_v46 = vadd.f32 1.0, %v425_v40 }
  0xf4   :  { %v429_v48 = vpop.eup %428  ;;  %448 = vrcp.f32 %v275_v41  ;;  %v280_v51 = vadd.f32 1.0, %v427_v45 }
  0xf5   :  { %v431_v52 = vpop.eup %430  ;;  %450 = vrcp.f32 %v272_v46  ;;  %v270_v55 = vadd.f32 1.0, %v429_v48 }
  0xf6   :  { %v433_v56 = vpop.eup %432  ;;  %452 = vrcp.f32 %v280_v51  ;;  %v278_v57 = vadd.f32 1.0, %v431_v52 }
  0xf7   :  { %v435_v59 = vpop.eup %434  ;;  %454 = vrcp.f32 %v270_v55  ;;  %v273_v60 = vadd.f32 1.0, %v433_v56 }
  0xf8   :  { %v437_v62 = vpop.eup %436  ;;  %v316_v63 = vmul.f32 %v435_v59, %v571_v37  ;;  %456 = vrcp.f32 %v278_v57 }
  0xf9   :  { %v439_v0 = vpop.eup %438  ;;  %v324_v1 = vmul.f32 %v437_v62, %v574_v38  ;;  %458 = vrcp.f32 %v273_v60 }
  0xfa   :  { %v441_v2 = vpop.eup %440  ;;  %333 = vst.msk [vmem:[%s730_s4 + $0x10] sm:$0xff] %vm330_vm1, %v316_v63  ;;  %v314_v3 = vmul.f32 %v439_v0, %v579_v43  ;;  %460 = vpow2.f32 %v377_v58 }
  0xfb   :  { %v443_v4 = vpop.eup %442  ;;  %341 = vst.msk [vmem:[%s730_s4 + $0x50] sm:$0xff] %vm330_vm1, %v324_v1  ;;  %v322_v37 = vmul.f32 %v441_v2, %v582_v44  ;;  %462 = vpow2.f32 %v367_v61 }
  0xfc   :  { %v445_v38 = vpop.eup %444  ;;  %331 = vst.msk [vmem:[%s730_s4] sm:$0xff] %vm330_vm1, %v314_v3  ;;  %v317_v7 = vmul.f32 %v443_v4, %v589_v49  ;;  %464 = vpow2.f32 %v375_v27 }
  0xfd   :  { %v447_v43 = vpop.eup %446  ;;  %339 = vst.msk [vmem:[%s730_s4 + $0x40] sm:$0xff] %vm330_vm1, %v322_v37  ;;  %v325_v8 = vmul.f32 %v445_v38, %v592_v50 }
  0xfe   :  { %v449_v9 = vpop.eup %448  ;;  %334 = vst.msk [vmem:[%s730_s4 + $0x18] sm:$0xff] %vm330_vm1, %v317_v7  ;;  %v315_v44 = vmul.f32 %v447_v43, %v597_v53 }
  0xff   :  { %v451_v12 = vpop.eup %450  ;;  %342 = vst.msk [vmem:[%s730_s4 + $0x58] sm:$0xff] %vm330_vm1, %v325_v8  ;;  %v323_v49 = vmul.f32 %v449_v9, %v600_v54 }
 0x100   :  { %v453_v13 = vpop.eup %452  ;;  %332 = vst.msk [vmem:[%s730_s4 + $0x8] sm:$0xff] %vm330_vm1, %v315_v44  ;;  %v320_v50 = vmul.f32 %v451_v12, %v611_v5 }
 0x101   :  { %v455_v15 = vpop.eup %454  ;;  %340 = vst.msk [vmem:[%s730_s4 + $0x48] sm:$0xff] %vm330_vm1, %v323_v49  ;;  %v328_v53 = vmul.f32 %v453_v13, %v614_v6 }
 0x102   :  { %v457_v16 = vpop.eup %456  ;;  %337 = vst.msk [vmem:[%s730_s4 + $0x30] sm:$0xff] %vm330_vm1, %v320_v50  ;;  %v318_v54 = vmul.f32 %v455_v15, %v618_v10 }
 0x103   :  { %v459_v17 = vpop.eup %458  ;;  %345 = vst.msk [vmem:[%s730_s4 + $0x70] sm:$0xff] %vm330_vm1, %v328_v53  ;;  %v326_v5 = vmul.f32 %v457_v16, %v621_v11 }
 0x104   :  { %v461_v18 = vpop.eup %460  ;;  %335 = vst.msk [vmem:[%s730_s4 + $0x20] sm:$0xff] %vm330_vm1, %v318_v54  ;;  %v321_v6 = vmul.f32 %v459_v17, %v626_v14 }
 0x105   :  { %v463_v19 = vpop.eup %462  ;;  %343 = vst.msk [vmem:[%s730_s4 + $0x60] sm:$0xff] %vm330_vm1, %v326_v5  ;;  %v281_v10 = vadd.f32 1.0, %v461_v18 }
 0x106   :  { %v465_v20 = vpop.eup %464  ;;  %338 = vst.msk [vmem:[%s730_s4 + $0x38] sm:$0xff] %vm330_vm1, %v321_v6  ;;  %v271_v11 = vadd.f32 1.0, %v463_v19 }
 0x107   :  { %466 = vrcp.f32 %v281_v10  ;;  %v279_v21 = vadd.f32 1.0, %v465_v20 }
 0x108   :  { %468 = vrcp.f32 %v271_v11 }
 0x109   :  { %470 = vrcp.f32 %v279_v21 }
 0x111   :  { %v467_v22 = vpop.eup %466 }
 0x112   :  { %v469_v14 = vpop.eup %468  ;;  %v329_v23 = vmul.f32 %v467_v22, %v635_v42 }
 0x113   :  { %v471_v24 = vpop.eup %470  ;;  %v319_v26 = vmul.f32 %v469_v14, %v638_v47 }
 0x114   :  { %346 = vst.msk [vmem:[%s730_s4 + $0x78] sm:$0xff] %vm330_vm1, %v329_v23  ;;  %v327_v28 = vmul.f32 %v471_v24, %v641_v25 }
 0x115   :  { %336 = vst.msk [vmem:[%s730_s4 + $0x28] sm:$0xff] %vm330_vm1, %v319_v26 }
 0x116   :  { %344 = vst.msk [vmem:[%s730_s4 + $0x68] sm:$0xff] %vm330_vm1, %v327_v28 }

// kernel: _encoder_forward.10
= control target key start
LH: loop header
LB: loop body
LE: loop exit
PB: predicated region body
PF: predicated region fallthrough
CT: control target
= control target key end

     0   :  { %12 = vsyncpa [#allocation3], 0  ;;  %vm63_vm0 = vcmask 261120   ;;  %s964_s0 = inlined_call_operand.vmem [shape: f32[128,32], index: 0, kind: input, shape index: {}]   ;;  %s965_s1 = inlined_call_operand.vmem [shape: bf16[32,16], index: 1, kind: input, shape index: {}]   ;;  %s966_s2 = inlined_call_operand.vmem [shape: f32[1,16], index: 2, kind: input, shape index: {}]   ;;  %s967_s3 = inlined_call_operand.vmem [shape: f32[1,16], index: 3, kind: input, shape index: {}]   ;;  %s968_s4 = inlined_call_operand.hbm [shape: f32[128,16], index: 4, kind: output, shape index: {0}]   ;;  %s969_s5 = inlined_call_operand.hbm [shape: f32[128,16], index: 5, kind: output, shape index: {1}]   ;;  %s970_s6 = inlined_call_operand.vmem [shape: f32[128,16], index: 6, kind: output, shape index: {2}]  }
   0x1   :  { %v494_v0 = vld [vmem:[%s965_s1] sm:$0xff]   ;;  %v495_v1 = vld [vmem:[%s965_s1 + $0x8] sm:$0xff]   ;;  %v25_v7 = vld [vmem:[%s964_s0 + $0x10] sm:$0xff] }
   0x2   :  { %466 = vmatprep.subr.bf16.mxu0 %v494_v0  ;;  %486 = vmatprep.subr.bf16.mxu1 %v494_v0  ;;  %v23_v2 = vld [vmem:[%s964_s0] sm:$0xff]  ;;  %v24_v3 = vld [vmem:[%s964_s0 + $0x8] sm:$0xff]  ;;  %v26_v8 = vld [vmem:[%s964_s0 + $0x18] sm:$0xff] }
   0x3   :  { %v31_v4 = vld [vmem:[%s964_s0 + $0x40] sm:$0xff]  ;;  %467 = vmatpush3.bf16.msra.mxu0 %v494_v0  ;;  %488 = vmatpush3.bf16.msra.mxu1 %v494_v0  ;;  %v39_v5 = vpack.c.bf16 %v24_v3, %v23_v2  ;;  %v32_v6 = vld [vmem:[%s964_s0 + $0x48] sm:$0xff]  ;;  %v33_v10 = vld [vmem:[%s964_s0 + $0x50] sm:$0xff]  ;;  %v40_v16 = vpack.c.bf16 %v26_v8, %v25_v7 }
   0x4   :  { %468 = vmatprep.subr.bf16.mxu0 %v495_v1  ;;  %487 = vmatprep.subr.bf16.mxu1 %v495_v1  ;;  %v43_v9 = vpack.c.bf16 %v32_v6, %v31_v4  ;;  %v34_v11 = vld [vmem:[%s964_s0 + $0x58] sm:$0xff]  ;;  %v27_v12 = vld [vmem:[%s964_s0 + $0x20] sm:$0xff]  ;;  %v28_v13 = vld [vmem:[%s964_s0 + $0x28] sm:$0xff] }
   0x5   :  { %470 = vmatprep.mubr.msk.bf16.mxu0 %vm63_vm0, %v39_v5  ;;  %v35_v14 = vld [vmem:[%s964_s0 + $0x60] sm:$0xff]  ;;  %v36_v15 = vld [vmem:[%s964_s0 + $0x68] sm:$0xff]  ;;  %v44_v17 = vpack.c.bf16 %v34_v11, %v33_v10  ;;  %v41_v18 = vpack.c.bf16 %v28_v13, %v27_v12 }
   0x6   :  { %478 = vmatprep.mubr.msk.bf16.mxu1 %vm63_vm0, %v43_v9  ;;  %v45_v19 = vpack.c.bf16 %v36_v15, %v35_v14 }
   0x7   :  { %469 = vmatpush3.bf16.msra.mxu0 %v495_v1  ;;  %489 = vmatpush3.bf16.msra.mxu1 %v495_v1 }
   0x8   :  { %13 = vsyncpa [#allocation5], 0  ;;  %v29_v20 = vld [vmem:[%s964_s0 + $0x30] sm:$0xff]  ;;  %v30_v21 = vld [vmem:[%s964_s0 + $0x38] sm:$0xff]  ;;  %vm185_vm1 = vcmask 130048  }
   0x9   :  { %v37_v22 = vld [vmem:[%s964_s0 + $0x70] sm:$0xff]  ;;  %v38_v23 = vld [vmem:[%s964_s0 + $0x78] sm:$0xff]  ;;  %v42_v24 = vpack.c.bf16 %v30_v21, %v29_v20  ;;  %v712_v26 = vld [vmem:[%s966_s2] ss:$0 sm:$0xff]  ;;  %s608_s0 = smov [#allocation2]  }
   0xa   :  { %471 = vmatmul.mubr.msk.bf16.vlgmr.msra.gmra.mrb[0].mxu0 %vm63_vm0, %v40_v16  ;;  %479 = vmatmul.mubr.msk.bf16.vlgmr.msra.gmra.mrb[0].mxu1 %vm63_vm0, %v44_v17  ;;  %v46_v25 = vpack.c.bf16 %v38_v23, %v37_v22  ;;  %v717_v28 = vld [vmem:[%s967_s3] ss:$0 sm:$0xff]  ;;  %s397_s2 = sshll.u32 %s608_s0, 4  ;;  %s786_s2 = int_to_ptr.vmem [resolvable:$true] %s397_s2 }
   0xb   :  { %474 = vmatprep.mubr.msk.bf16.mxu0 %vm63_vm0, %v41_v18  ;;  %482 = vmatprep.mubr.msk.bf16.mxu1 %vm63_vm0, %v45_v19  ;;  %s560_s3 = scalar_lea.vmem %s786_s2, 2048  ;;  %p565_p1 = scmp.lt.s32.totalorder %s786_s2, %s786_s2 }
   0xc   :  { %p561_p0 = scmp.ne.s32.totalorder %s786_s2, %s560_s3  ;;  %p566_p2 = scmp.lt.s32.totalorder %s560_s3, %s560_s3 }
   0xe   :  { %p567_p3 = por %p566_p2, %p565_p1 }
  0x10   :  { %p568_p4 = pnand %p567_p3, %p561_p0 }
  0x12   :  { %475 = vmatmul.mubr.msk.bf16.gmra.mrb[4].mxu0 %vm63_vm0, %v42_v24  ;;  %483 = vmatmul.mubr.msk.bf16.gmra.mrb[4].mxu1 %vm63_vm0, %v46_v25 }
  0xdd   :  { %v472_v27 = vpop.f32.mrb[0].mxu0  ;;  %v480_v29 = vpop.f32.mrb[0].mxu1 }
  0xde   :  { %188 = vst.msk [vmem:[#allocation2 + $0x10] sm:$0xff] %vm185_vm1, %v472_v27  ;;  %v211_v30 = vmul.f32 %v472_v27, %v712_v26  ;;  %196 = vst.msk [vmem:[#allocation2 + $0x50] sm:$0xff] %vm185_vm1, %v480_v29  ;;  %v219_v31 = vmul.f32 %v480_v29, %v712_v26  ;;  %v122_v32 = vpop.f32.mrb[1].mxu0  ;;  %v154_v33 = vpop.f32.mrb[1].mxu1 }
  0xdf   :  { %186 = vst.msk [vmem:[#allocation2] sm:$0xff] %vm185_vm1, %v122_v32  ;;  %v209_v34 = vmul.f32 %v712_v26, %v122_v32  ;;  %194 = vst.msk [vmem:[#allocation2 + $0x40] sm:$0xff] %vm185_vm1, %v154_v33  ;;  %v217_v35 = vmul.f32 %v712_v26, %v154_v33  ;;  %v473_v36 = vpop.f32.mrb[2].mxu0  ;;  %v481_v37 = vpop.f32.mrb[2].mxu1 }
  0xe0   :  { %v728_v38 = vadd.f32 %v717_v28, %v211_v30  ;;  %v731_v39 = vadd.f32 %v717_v28, %v219_v31  ;;  %189 = vst.msk [vmem:[#allocation2 + $0x18] sm:$0xff] %vm185_vm1, %v473_v36  ;;  %v212_v40 = vmul.f32 %v473_v36, %v712_v26  ;;  %197 = vst.msk [vmem:[#allocation2 + $0x58] sm:$0xff] %vm185_vm1, %v481_v37  ;;  %v125_v42 = vpop.f32.mrb[3].mxu0  ;;  %v157_v43 = vpop.f32.mrb[3].mxu1 }
  0xe1   :  { %v220_v41 = vmul.f32 %v481_v37, %v712_v26  ;;  %v738_v44 = vadd.f32 %v717_v28, %v209_v34  ;;  %v741_v45 = vadd.f32 %v717_v28, %v217_v35  ;;  %187 = vst.msk [vmem:[#allocation2 + $0x8] sm:$0xff] %vm185_vm1, %v125_v42  ;;  %v210_v46 = vmul.f32 %v712_v26, %v125_v42 }
  0xe2   :  { %195 = vst.msk [vmem:[#allocation2 + $0x48] sm:$0xff] %vm185_vm1, %v157_v43  ;;  %v218_v47 = vmul.f32 %v712_v26, %v157_v43  ;;  %250 = vst.msk [vmem:[#allocation4 + $0x10] sm:$0xff] %vm185_vm1, %v728_v38  ;;  %v442_v48 = vmul.f32 -1.442695, %v728_v38  ;;  %v450_v49 = vmul.f32 -1.442695, %v731_v39  ;;  %v754_v50 = vadd.f32 %v717_v28, %v212_v40 }
  0xe3   :  { %258 = vst.msk [vmem:[#allocation4 + $0x50] sm:$0xff] %vm185_vm1, %v731_v39  ;;  %v757_v51 = vadd.f32 %v717_v28, %v220_v41  ;;  %248 = vst.msk [vmem:[#allocation4] sm:$0xff] %vm185_vm1, %v738_v44  ;;  %v440_v52 = vmul.f32 -1.442695, %v738_v44  ;;  %v448_v53 = vmul.f32 -1.442695, %v741_v45  ;;  %v766_v54 = vadd.f32 %v717_v28, %v210_v46 }
  0xe4   :  { %256 = vst.msk [vmem:[#allocation4 + $0x40] sm:$0xff] %vm185_vm1, %v741_v45  ;;  %v769_v55 = vadd.f32 %v717_v28, %v218_v47  ;;  %496 = vpow2.f32 %v442_v48  ;;  %251 = vst.msk [vmem:[#allocation4 + $0x18] sm:$0xff] %vm185_vm1, %v754_v50  ;;  %v443_v56 = vmul.f32 -1.442695, %v754_v50 }
  0xe5   :  { %259 = vst.msk [vmem:[#allocation4 + $0x58] sm:$0xff] %vm185_vm1, %v757_v51  ;;  %498 = vpow2.f32 %v450_v49  ;;  %v451_v57 = vmul.f32 -1.442695, %v757_v51  ;;  %249 = vst.msk [vmem:[#allocation4 + $0x8] sm:$0xff] %vm185_vm1, %v766_v54  ;;  %v476_v58 = vpop.f32.mrb[4].mxu0  ;;  %v484_v59 = vpop.f32.mrb[4].mxu1 }
  0xe6   :  { %257 = vst.msk [vmem:[#allocation4 + $0x48] sm:$0xff] %vm185_vm1, %v769_v55  ;;  %500 = vpow2.f32 %v440_v52  ;;  %v441_v60 = vmul.f32 -1.442695, %v766_v54  ;;  %192 = vst.msk [vmem:[#allocation2 + $0x30] sm:$0xff] %vm185_vm1, %v476_v58  ;;  %v215_v61 = vmul.f32 %v476_v58, %v712_v26  ;;  %v223_v62 = vmul.f32 %v484_v59, %v712_v26  ;;  %v138_v63 = vpop.f32.mrb[5].mxu0  ;;  %v170_v0 = vpop.f32.mrb[5].mxu1 }
  0xe7   :  { %200 = vst.msk [vmem:[#allocation2 + $0x70] sm:$0xff] %vm185_vm1, %v484_v59  ;;  %502 = vpow2.f32 %v448_v53  ;;  %v449_v1 = vmul.f32 -1.442695, %v769_v55  ;;  %190 = vst.msk [vmem:[#allocation2 + $0x20] sm:$0xff] %vm185_vm1, %v138_v63  ;;  %v213_v2 = vmul.f32 %v712_v26, %v138_v63  ;;  %v221_v3 = vmul.f32 %v712_v26, %v170_v0  ;;  %v477_v4 = vpop.f32.mrb[6].mxu0  ;;  %v485_v5 = vpop.f32.mrb[6].mxu1 }
  0xe8   :  { %198 = vst.msk [vmem:[#allocation2 + $0x60] sm:$0xff] %vm185_vm1, %v170_v0  ;;  %504 = vpow2.f32 %v443_v56  ;;  %v794_v6 = vadd.f32 %v717_v28, %v215_v61  ;;  %v797_v7 = vadd.f32 %v717_v28, %v223_v62  ;;  %193 = vst.msk [vmem:[#allocation2 + $0x38] sm:$0xff] %vm185_vm1, %v477_v4  ;;  %v216_v8 = vmul.f32 %v477_v4, %v712_v26  ;;  %v141_v9 = vpop.f32.mrb[7].mxu0  ;;  %v173_v10 = vpop.f32.mrb[7].mxu1 }
  0xe9   :  { %201 = vst.msk [vmem:[#allocation2 + $0x78] sm:$0xff] %vm185_vm1, %v485_v5  ;;  %506 = vpow2.f32 %v451_v57  ;;  %v803_v11 = vadd.f32 %v717_v28, %v213_v2  ;;  %v806_v12 = vadd.f32 %v717_v28, %v221_v3  ;;  %v224_v13 = vmul.f32 %v485_v5, %v712_v26  ;;  %191 = vst.msk [vmem:[#allocation2 + $0x28] sm:$0xff] %vm185_vm1, %v141_v9 }
  0xea   :  { %199 = vst.msk [vmem:[#allocation2 + $0x68] sm:$0xff] %vm185_vm1, %v173_v10  ;;  %508 = vpow2.f32 %v441_v60  ;;  %254 = vst.msk [vmem:[#allocation4 + $0x30] sm:$0xff] %vm185_vm1, %v794_v6  ;;  %v446_v14 = vmul.f32 -1.442695, %v794_v6  ;;  %v454_v15 = vmul.f32 -1.442695, %v797_v7  ;;  %v818_v16 = vadd.f32 %v717_v28, %v216_v8 }
  0xeb   :  { %262 = vst.msk [vmem:[#allocation4 + $0x70] sm:$0xff] %vm185_vm1, %v797_v7 }
  0xec   :  { %571 = shalt.err (!%p568_p4)
}
  0xed   :  { %s572_s13 = scalar_lea.hbm %s968_s4, 2048 }
  0xee   :  { %p573_p5 = scmp.ne.s32.totalorder %s968_s4, %s572_s13  ;;  %p576_p6 = scmp.lt.u32.totalorder %s572_s13, %s968_s4 }
  0xf0   :  { %p578_p7 = pnand %p576_p6, %p573_p5 }
  0xf2   :  { %581 = shalt.err (!%p578_p7)
}
  0xf3   :  { %s609_s18 = smov 128   ;;  %s610_s19 = smov 8   ;;  %510 = vpow2.f32 %v449_v1  ;;  %252 = vst.msk [vmem:[#allocation4 + $0x20] sm:$0xff] %vm185_vm1, %v803_v11  ;;  %v444_v17 = vmul.f32 -1.442695, %v803_v11  ;;  %260 = vst.msk [vmem:[#allocation4 + $0x60] sm:$0xff] %vm185_vm1, %v806_v12  ;;  %v847_v19 = vadd.f32 %v717_v28, %v224_v13  ;;  %v214_v21 = vmul.f32 %v712_v26, %v141_v9  ;;  %v497_v23 = vpop.eup %496 }
  0xf4   :  { %403 = dma.vmem_to_hbm [thread:$0]  %s786_s2, 2048, %s968_s4, [#allocation3], %s609_s18, %s609_s18, %s610_s19   ;;  %v452_v18 = vmul.f32 -1.442695, %v806_v12  ;;  %512 = vpow2.f32 %v446_v14  ;;  %255 = vst.msk [vmem:[#allocation4 + $0x38] sm:$0xff] %vm185_vm1, %v818_v16  ;;  %v222_v22 = vmul.f32 %v712_v26, %v173_v10  ;;  %v499_v27 = vpop.eup %498  ;;  %v314_v29 = vadd.f32 1.0, %v497_v23 }
  0xf5   :  { %s611_s22 = smov [#allocation4]   ;;  %v447_v20 = vmul.f32 -1.442695, %v818_v16  ;;  %514 = vpow2.f32 %v454_v15  ;;  %263 = vst.msk [vmem:[#allocation4 + $0x78] sm:$0xff] %vm185_vm1, %v847_v19  ;;  %v857_v24 = vadd.f32 %v717_v28, %v214_v21  ;;  %v501_v30 = vpop.eup %500  ;;  %v322_v31 = vadd.f32 1.0, %v499_v27 }
  0xf6   :  { %s409_s23 = sshll.u32 %s611_s22, 4  ;;  %516 = vpow2.f32 %v444_v17  ;;  %v860_v25 = vadd.f32 %v717_v28, %v222_v22  ;;  %v503_v26 = vpop.eup %502  ;;  %v312_v32 = vadd.f32 1.0, %v501_v30  ;;  %s410_s23 = int_to_ptr.vmem [resolvable:$true] %s409_s23 }
  0xf7   :  { %518 = vpow2.f32 %v452_v18  ;;  %253 = vst.msk [vmem:[#allocation4 + $0x28] sm:$0xff] %vm185_vm1, %v857_v24  ;;  %s582_s4 = scalar_lea.vmem %s410_s23, 2048  ;;  %p587_p9 = scmp.lt.s32.totalorder %s410_s23, %s410_s23 }
  0xf8   :  { %520 = vpow2.f32 %v447_v20  ;;  %261 = vst.msk [vmem:[#allocation4 + $0x68] sm:$0xff] %vm185_vm1, %v860_v25  ;;  %p583_p8 = scmp.ne.s32.totalorder %s410_s23, %s582_s4  ;;  %p588_p10 = scmp.lt.s32.totalorder %s582_s4, %s582_s4 }
  0xf9   :  { %522 = vrcp.f32 %v314_v29 }
  0xfa   :  { %p589_p11 = por %p588_p10, %p587_p9 }
  0xfc   :  { %p590_p12 = pnand %p589_p11, %p583_p8 }
  0xfe   :  { %593 = shalt.err (!%p590_p12)
}
  0xff   :  { %s594_s26 = scalar_lea.hbm %s969_s5, 2048 }
 0x100   :  { %p595_p13 = scmp.ne.s32.totalorder %s969_s5, %s594_s26  ;;  %p598_p0 = scmp.lt.u32.totalorder %s594_s26, %s969_s5 }
 0x102   :  { %p600_p1 = pnand %p598_p0, %p595_p13 }
 0x104   :  { %603 = shalt.err (!%p600_p1)
}
 0x105   :  { %415 = dma.vmem_to_hbm [thread:$0]  %s410_s23, 2048, %s969_s5, [#allocation5], %s609_s18, %s609_s18, %s610_s19   ;;  %v505_v28 = vpop.eup %504  ;;  %524 = vrcp.f32 %v322_v31  ;;  %v320_v33 = vadd.f32 1.0, %v503_v26  ;;  %v455_v58 = vmul.f32 -1.442695, %v847_v19 }
 0x106   :  { %v507_v34 = vpop.eup %506  ;;  %526 = vrcp.f32 %v312_v32  ;;  %v315_v35 = vadd.f32 1.0, %v505_v28  ;;  %v445_v61 = vmul.f32 -1.442695, %v857_v24  ;;  %v453_v0 = vmul.f32 -1.442695, %v860_v25 }
 0x107   :  { %v509_v36 = vpop.eup %508  ;;  %528 = vrcp.f32 %v320_v33  ;;  %v323_v37 = vadd.f32 1.0, %v507_v34 }
 0x108   :  { %v511_v40 = vpop.eup %510  ;;  %530 = vrcp.f32 %v315_v35  ;;  %v313_v41 = vadd.f32 1.0, %v509_v36 }
 0x109   :  { %v513_v42 = vpop.eup %512  ;;  %532 = vrcp.f32 %v323_v37  ;;  %v321_v43 = vadd.f32 1.0, %v511_v40 }
 0x10a   :  { %v515_v46 = vpop.eup %514  ;;  %534 = vrcp.f32 %v313_v41  ;;  %v318_v47 = vadd.f32 1.0, %v513_v42 }
 0x10b   :  { %v517_v48 = vpop.eup %516  ;;  %536 = vrcp.f32 %v321_v43  ;;  %v326_v49 = vadd.f32 1.0, %v515_v46 }
 0x10c   :  { %v519_v52 = vpop.eup %518  ;;  %538 = vrcp.f32 %v318_v47  ;;  %v316_v53 = vadd.f32 1.0, %v517_v48 }
 0x10d   :  { %v521_v56 = vpop.eup %520  ;;  %540 = vrcp.f32 %v326_v49  ;;  %v324_v57 = vadd.f32 1.0, %v519_v52 }
 0x10e   :  { %v523_v59 = vpop.eup %522  ;;  %542 = vrcp.f32 %v316_v53  ;;  %v319_v60 = vadd.f32 1.0, %v521_v56 }
 0x10f   :  { %v525_v62 = vpop.eup %524  ;;  %v362_v63 = vmul.f32 %v523_v59, %v728_v38  ;;  %544 = vrcp.f32 %v324_v57 }
 0x110   :  { %v527_v1 = vpop.eup %526  ;;  %v370_v2 = vmul.f32 %v525_v62, %v731_v39  ;;  %546 = vrcp.f32 %v319_v60 }
 0x111   :  { %v529_v3 = vpop.eup %528  ;;  %378 = vst.msk [vmem:[%s970_s6 + $0x10] sm:$0xff] %vm185_vm1, %v362_v63  ;;  %v360_v4 = vmul.f32 %v527_v1, %v738_v44  ;;  %548 = vpow2.f32 %v455_v58 }
 0x112   :  { %v531_v5 = vpop.eup %530  ;;  %386 = vst.msk [vmem:[%s970_s6 + $0x50] sm:$0xff] %vm185_vm1, %v370_v2  ;;  %v368_v38 = vmul.f32 %v529_v3, %v741_v45  ;;  %550 = vpow2.f32 %v445_v61 }
 0x113   :  { %v533_v39 = vpop.eup %532  ;;  %376 = vst.msk [vmem:[%s970_s6] sm:$0xff] %vm185_vm1, %v360_v4  ;;  %v363_v8 = vmul.f32 %v531_v5, %v754_v50  ;;  %552 = vpow2.f32 %v453_v0 }
 0x114   :  { %v535_v44 = vpop.eup %534  ;;  %384 = vst.msk [vmem:[%s970_s6 + $0x40] sm:$0xff] %vm185_vm1, %v368_v38  ;;  %v371_v9 = vmul.f32 %v533_v39, %v757_v51 }
 0x115   :  { %v537_v10 = vpop.eup %536  ;;  %379 = vst.msk [vmem:[%s970_s6 + $0x18] sm:$0xff] %vm185_vm1, %v363_v8  ;;  %v361_v45 = vmul.f32 %v535_v44, %v766_v54 }
 0x116   :  { %v539_v13 = vpop.eup %538  ;;  %387 = vst.msk [vmem:[%s970_s6 + $0x58] sm:$0xff] %vm185_vm1, %v371_v9  ;;  %v369_v50 = vmul.f32 %v537_v10, %v769_v55 }
 0x117   :  { %v541_v14 = vpop.eup %540  ;;  %377 = vst.msk [vmem:[%s970_s6 + $0x8] sm:$0xff] %vm185_vm1, %v361_v45  ;;  %v366_v51 = vmul.f32 %v539_v13, %v794_v6 }
 0x118   :  { %v543_v15 = vpop.eup %542  ;;  %385 = vst.msk [vmem:[%s970_s6 + $0x48] sm:$0xff] %vm185_vm1, %v369_v50  ;;  %v374_v54 = vmul.f32 %v541_v14, %v797_v7 }
 0x119   :  { %v545_v17 = vpop.eup %544  ;;  %382 = vst.msk [vmem:[%s970_s6 + $0x30] sm:$0xff] %vm185_vm1, %v366_v51  ;;  %v364_v55 = vmul.f32 %v543_v15, %v803_v11 }
 0x11a   :  { %v547_v18 = vpop.eup %546  ;;  %390 = vst.msk [vmem:[%s970_s6 + $0x70] sm:$0xff] %vm185_vm1, %v374_v54  ;;  %v372_v6 = vmul.f32 %v545_v17, %v806_v12 }
 0x11b   :  { %v549_v20 = vpop.eup %548  ;;  %380 = vst.msk [vmem:[%s970_s6 + $0x20] sm:$0xff] %vm185_vm1, %v364_v55  ;;  %v367_v7 = vmul.f32 %v547_v18, %v818_v16 }
 0x11c   :  { %v551_v21 = vpop.eup %550  ;;  %388 = vst.msk [vmem:[%s970_s6 + $0x60] sm:$0xff] %vm185_vm1, %v372_v6  ;;  %v327_v11 = vadd.f32 1.0, %v549_v20 }
 0x11d   :  { %v553_v22 = vpop.eup %552  ;;  %383 = vst.msk [vmem:[%s970_s6 + $0x38] sm:$0xff] %vm185_vm1, %v367_v7  ;;  %v317_v12 = vadd.f32 1.0, %v551_v21 }
 0x11e   :  { %554 = vrcp.f32 %v327_v11  ;;  %v325_v23 = vadd.f32 1.0, %v553_v22 }
 0x11f   :  { %556 = vrcp.f32 %v317_v12 }
 0x120   :  { %558 = vrcp.f32 %v325_v23 }
 0x128   :  { %v555_v27 = vpop.eup %554 }
 0x129   :  { %v557_v16 = vpop.eup %556  ;;  %v375_v29 = vmul.f32 %v555_v27, %v847_v19 }
 0x12a   :  { %v559_v30 = vpop.eup %558  ;;  %v365_v31 = vmul.f32 %v557_v16, %v857_v24 }
 0x12b   :  { %391 = vst.msk [vmem:[%s970_s6 + $0x78] sm:$0xff] %vm185_vm1, %v375_v29  ;;  %v373_v26 = vmul.f32 %v559_v30, %v860_v25 }
 0x12c   :  { %381 = vst.msk [vmem:[%s970_s6 + $0x28] sm:$0xff] %vm185_vm1, %v365_v31 }
 0x12d   :  { %389 = vst.msk [vmem:[%s970_s6 + $0x68] sm:$0xff] %vm185_vm1, %v373_v26 }
 0x12e   :  { %604 = dma.done.wait [#allocation3], 2048  }
 0x12f   :  { %605 = vsyncadd [#allocation3], 4294965248 }
 0x130   :  { %606 = dma.done.wait [#allocation5], 2048  }
 0x131   :  { %607 = vsyncadd [#allocation5], 4294965248 }
 0x132   :  { %426 = vsyncpa [#allocation3], 1 }
 0x133   :  { %427 = vsyncpa [#allocation5], 1 }

// kernel: _encoder_forward.11
= control target key start
LH: loop header
LB: loop body
LE: loop exit
PB: predicated region body
PF: predicated region fallthrough
CT: control target
= control target key end

     0   :  { %s1033_s15 = smov 0   ;;  %s1471_s0 = inlined_call_operand.vmem [shape: f32[1,2,10,10,16], index: 0, kind: input, shape index: {}]   ;;  %s1472_s1 = inlined_call_operand.vmem [shape: f32[9,1,1,1,16], index: 1, kind: input, shape index: {}]   ;;  %s1473_s2 = inlined_call_operand.vmem [shape: f32[1,1,1,16], index: 2, kind: input, shape index: {}]   ;;  %s1474_s3 = inlined_call_operand.vmem [shape: f32[1,1,1,16], index: 3, kind: input, shape index: {}]   ;;  %s1475_s4 = inlined_call_operand.vmem [shape: f32[2,8,8,16], index: 4, kind: output, shape index: {}]  }
   0x1 LB: > { %s921_s16 = sadd.s32 4294967295, %s1006_s15   ;;  %p925_p0 = scmp.ge.s32.totalorder %s1006_s15, 1  ;;  %s1006_s15 = sphi %s1033_s15, %s14_s15  }
   0x2   : > { %p162_p1 = scmp.lt.s32.totalorder %s1006_s15, 3 }
   0x4   : > { %p163_p2 = pnand %p925_p0, %p162_p1 }
   0x5   : > { %p188_p3 = scmp.lt.s32.totalorder (!%p163_p2), %s921_s16, 1  ;;  %v1047_v0 = vld [vmem:[%s1472_s1] ss:$0 sm:$0xff] (!%p163_p2)  ;;  %v1052_v1 = vld [vmem:[%s1472_s1 + $0x1] ss:$0 sm:$0xff] (!%p163_p2)  ;;  %vm281_vm0 = vcmask (!%p163_p2), 1046528  }
   0x6   : > { %166 = sbr.rel (%p163_p2) target bundleno = 151 (0x97), region = 36  ;;  %v1057_v2 = vld [vmem:[%s1472_s1 + $0x2] ss:$0 sm:$0xff] (!%p163_p2)  ;;  %v1067_v3 = vld [vmem:[%s1472_s1 + $0x3] ss:$0 sm:$0xff] (!%p163_p2)  ;;  %vm362_vm1 = vcmask (!%p163_p2), 1045504  }
   0x7   : > { %v1072_v4 = vld [vmem:[%s1472_s1 + $0x4] ss:$0 sm:$0xff] (!%p163_p2)  ;;  %v1079_v7 = vld [vmem:[%s1472_s1 + $0x5] ss:$0 sm:$0xff] (!%p163_p2)  ;;  %v1094_v18 = vld [vmem:[%s1472_s1 + $0x6] ss:$0 sm:$0xff] (!%p163_p2) }
   0x8   : > { %v1099_v19 = vld [vmem:[%s1472_s1 + $0x7] ss:$0 sm:$0xff] (!%p163_p2)  ;;  %v1109_v29 = vld [vmem:[%s1472_s1 + $0x8] ss:$0 sm:$0xff] (!%p163_p2)  ;;  %vm857_vm2 = vcmask (!%p163_p2), 130048  }
   0xd   : > { %s1477_s16 = smov (!%p188_p3, %s921_s16), 1 }
   0xe   : > { %s959_s17 = smul.u32 160, %s1477_s16  ;;  %s958_s19 = sshll.u32 %s1477_s16, 6 }
   0xf   : > { %s1307_s21 = scalar_lea.vmem %s1475_s4, %s958_s19 }
  0x10   : > { %s1062_s26 = scalar_lea.vmem %s1471_s0, %s959_s17 }
  0x11   : > { %v198_v5 = vld [vmem:[%s1062_s26] sm:$0xff]  ;;  %v199_v6 = vld [vmem:[%s1062_s26 + $0x8] sm:$0x3]  ;;  %v200_v8 = vld [vmem:[%s1062_s26 + $0x10] sm:$0xff] }
  0x12   : > { %v201_v9 = vld [vmem:[%s1062_s26 + $0x18] sm:$0x3]  ;;  %v225_v10 = vmul.f32 %v1047_v0, %v198_v5  ;;  %v249_v11 = vmul.f32 %v1052_v1, %v198_v5  ;;  %v250_v12 = vmul.f32 %v1052_v1, %v199_v6  ;;  %v330_v13 = vmul.f32 %v1057_v2, %v198_v5  ;;  %v1103_v24 = vld [vmem:[%s1062_s26 + $0x20] sm:$0xff]  ;;  %v1117_v34 = vld [vmem:[%s1062_s26 + $0x28] sm:$0x3] }
  0x13   : > { %v331_v14 = vmul.f32 %v1057_v2, %v199_v6  ;;  %v411_v15 = vmul.f32 %v1067_v3, %v200_v8  ;;  %v435_v16 = vmul.f32 %v1072_v4, %v200_v8  ;;  %v436_v17 = vmul.f32 %v1072_v4, %v201_v9 }
  0x14   : > { %v282_v20 = vrot.slane %v249_v11, 1  ;;  %v283_v21 = vrot.slane %v250_v12, 1  ;;  %v363_v22 = vrot.slane %v330_v13, 2  ;;  %v515_v23 = vmul.f32 %v1079_v7, %v200_v8 }
  0x15   : > { %v364_v25 = vrot.slane %v331_v14, 2  ;;  %v467_v26 = vrot.slane %v435_v16, 1  ;;  %v468_v27 = vrot.slane %v436_v17, 1  ;;  %v516_v28 = vmul.f32 %v1079_v7, %v201_v9  ;;  %v1151_v14 = vld [vmem:[%s1062_s26 + $0x38] sm:$0x3] }
  0x16   : > { %v284_v30 = vsel %vm281_vm0, %v282_v20, %v283_v21  ;;  %v547_v31 = vrot.slane %v515_v23, 2  ;;  %v595_v32 = vmul.f32 %v1094_v18, %v1103_v24  ;;  %v619_v33 = vmul.f32 %v1099_v19, %v1103_v24 }
  0x17   : > { %v314_v35 = vadd.f32 %v284_v30, %v225_v10  ;;  %v365_v36 = vsel %vm362_vm1, %v363_v22, %v364_v25  ;;  %v469_v37 = vsel %vm281_vm0, %v467_v26, %v468_v27  ;;  %v548_v38 = vrot.slane %v516_v28, 2  ;;  %v1147_v10 = vld [vmem:[%s1062_s26 + $0x30] sm:$0xff] }
  0x18   : > { %v620_v39 = vmul.f32 %v1099_v19, %v1117_v34  ;;  %v651_v40 = vrot.slane %v619_v33, 1  ;;  %v699_v41 = vmul.f32 %v1109_v29, %v1103_v24  ;;  %v700_v42 = vmul.f32 %v1109_v29, %v1117_v34 }
  0x19   : > { %v395_v43 = vadd.f32 %v365_v36, %v314_v35  ;;  %v549_v44 = vsel %vm362_vm1, %v547_v31, %v548_v38  ;;  %v226_v45 = vmul.f32 %v1047_v0, %v200_v8  ;;  %v251_v46 = vmul.f32 %v1052_v1, %v200_v8  ;;  %v1168_v36 = vld [vmem:[%s1473_s2] ss:$0 sm:$0xff] }
  0x1a   : > { %v652_v47 = vrot.slane %v620_v39, 1  ;;  %v731_v48 = vrot.slane %v699_v41, 2  ;;  %v732_v49 = vrot.slane %v700_v42, 2  ;;  %v252_v50 = vmul.f32 %v1052_v1, %v201_v9 }
  0x1b   : > { %v419_v51 = vadd.f32 %v411_v15, %v395_v43  ;;  %v285_v52 = vrot.slane %v251_v46, 1  ;;  %v332_v53 = vmul.f32 %v1057_v2, %v200_v8  ;;  %v333_v54 = vmul.f32 %v1057_v2, %v201_v9 }
  0x1c   : > { %v653_v55 = vsel %vm281_vm0, %v651_v40, %v652_v47  ;;  %v733_v56 = vsel %vm362_vm1, %v731_v48, %v732_v49  ;;  %v286_v57 = vrot.slane %v252_v50, 1  ;;  %v412_v58 = vmul.f32 %v1067_v3, %v1103_v24 }
  0x1d   : > { %v499_v59 = vadd.f32 %v469_v37, %v419_v51  ;;  %v366_v60 = vrot.slane %v332_v53, 2  ;;  %v367_v61 = vrot.slane %v333_v54, 2  ;;  %v437_v62 = vmul.f32 %v1072_v4, %v1103_v24 }
  0x1e   : > { %v287_v63 = vsel %vm281_vm0, %v285_v52, %v286_v57  ;;  %v438_v5 = vmul.f32 %v1072_v4, %v1117_v34  ;;  %v517_v6 = vmul.f32 %v1079_v7, %v1103_v24  ;;  %v518_v8 = vmul.f32 %v1079_v7, %v1117_v34 }
  0x1f   : > { %v579_v9 = vadd.f32 %v549_v44, %v499_v59  ;;  %v315_v11 = vadd.f32 %v287_v63, %v226_v45  ;;  %v368_v12 = vsel %vm362_vm1, %v366_v60, %v367_v61  ;;  %v470_v13 = vrot.slane %v437_v62, 1  ;;  %v1180_v45 = vld [vmem:[%s1474_s3] ss:$0 sm:$0xff] }
  0x20   : > { %v471_v15 = vrot.slane %v438_v5, 1  ;;  %v550_v16 = vrot.slane %v517_v6, 2  ;;  %v551_v17 = vrot.slane %v518_v8, 2  ;;  %v596_v20 = vmul.f32 %v1094_v18, %v1147_v10  ;;  %v1203_v8 = vld [vmem:[%s1062_s26 + $0x40] sm:$0xff] }
  0x21   : > { %v603_v21 = vadd.f32 %v595_v32, %v579_v9  ;;  %v396_v22 = vadd.f32 %v368_v12, %v315_v11  ;;  %v621_v23 = vmul.f32 %v1099_v19, %v1147_v10  ;;  %v622_v25 = vmul.f32 %v1099_v19, %v1151_v14  ;;  %v1208_v12 = vld [vmem:[%s1062_s26 + $0x48] sm:$0x3] }
  0x22   : > { %v472_v26 = vsel %vm281_vm0, %v470_v13, %v471_v15  ;;  %v552_v27 = vsel %vm362_vm1, %v550_v16, %v551_v17  ;;  %v701_v28 = vmul.f32 %v1109_v29, %v1147_v10  ;;  %v702_v30 = vmul.f32 %v1109_v29, %v1151_v14 }
  0x23   : > { %v683_v31 = vadd.f32 %v653_v55, %v603_v21  ;;  %v420_v33 = vadd.f32 %v412_v58, %v396_v22  ;;  %v654_v32 = vrot.slane %v621_v23, 1  ;;  %v655_v35 = vrot.slane %v622_v25, 1 }
  0x24   : > { %v734_v37 = vrot.slane %v701_v28, 2  ;;  %v735_v38 = vrot.slane %v702_v30, 2  ;;  %v227_v39 = vmul.f32 %v1047_v0, %v1103_v24  ;;  %v253_v40 = vmul.f32 %v1052_v1, %v1103_v24 }
  0x25   : > { %v763_v41 = vadd.f32 %v733_v56, %v683_v31  ;;  %v500_v42 = vadd.f32 %v472_v26, %v420_v33  ;;  %v656_v43 = vsel %vm281_vm0, %v654_v32, %v655_v35  ;;  %v254_v44 = vmul.f32 %v1052_v1, %v1117_v34 }
  0x26   : > { %v736_v46 = vsel %vm362_vm1, %v734_v37, %v735_v38  ;;  %v288_v47 = vrot.slane %v253_v40, 1  ;;  %v334_v48 = vmul.f32 %v1057_v2, %v1103_v24  ;;  %v335_v49 = vmul.f32 %v1057_v2, %v1117_v34 }
  0x27   : > { %v778_v50 = vmul.f32 %v1168_v36, %v763_v41  ;;  %v580_v51 = vadd.f32 %v552_v27, %v500_v42  ;;  %v289_v52 = vrot.slane %v254_v44, 1  ;;  %v413_v53 = vmul.f32 %v1067_v3, %v1147_v10 }
  0x28   : > { %v369_v54 = vrot.slane %v334_v48, 2  ;;  %v370_v55 = vrot.slane %v335_v49, 2  ;;  %v439_v56 = vmul.f32 %v1072_v4, %v1147_v10  ;;  %v440_v24 = vmul.f32 %v1072_v4, %v1151_v14 }
  0x29   : > { %v1195_v57 = vadd.f32 %v1180_v45, %v778_v50  ;;  %v604_v34 = vadd.f32 %v596_v20, %v580_v51  ;;  %v290_v58 = vsel %vm281_vm0, %v288_v47, %v289_v52  ;;  %v519_v59 = vmul.f32 %v1079_v7, %v1147_v10 }
  0x2a   : > { %v316_v60 = vadd.f32 %v290_v58, %v227_v39  ;;  %v371_v61 = vsel %vm362_vm1, %v369_v54, %v370_v55  ;;  %v473_v62 = vrot.slane %v439_v56, 1  ;;  %v474_v63 = vrot.slane %v440_v24, 1 }
  0x2b   : > { %v948_v5 = vmul.f32 -1.442695, %v1195_v57  ;;  %v684_v6 = vadd.f32 %v656_v43, %v604_v34  ;;  %v520_v9 = vmul.f32 %v1079_v7, %v1151_v14  ;;  %v553_v11 = vrot.slane %v519_v59, 2  ;;  %v1251_v34 = vld [vmem:[%s1062_s26 + $0x50] sm:$0xff] }
  0x2c   : > { %v397_v13 = vadd.f32 %v371_v61, %v316_v60  ;;  %v475_v15 = vsel %vm281_vm0, %v473_v62, %v474_v63  ;;  %v597_v16 = vmul.f32 %v1094_v18, %v1203_v8  ;;  %v623_v17 = vmul.f32 %v1099_v19, %v1203_v8 }
  0x2d   : > { %968 = vpow2.f32 %v948_v5  ;;  %v764_v20 = vadd.f32 %v736_v46, %v684_v6  ;;  %v554_v21 = vrot.slane %v520_v9, 2  ;;  %v624_v22 = vmul.f32 %v1099_v19, %v1208_v12 }
  0x2e   : > { %v421_v23 = vadd.f32 %v413_v53, %v397_v13  ;;  %v657_v25 = vrot.slane %v623_v17, 1  ;;  %v703_v26 = vmul.f32 %v1109_v29, %v1203_v8  ;;  %v704_v27 = vmul.f32 %v1109_v29, %v1208_v12  ;;  %v1257_v13 = vld [vmem:[%s1062_s26 + $0x58] sm:$0x3] }
  0x2f   : > { %v779_v28 = vmul.f32 %v1168_v36, %v764_v20  ;;  %v555_v30 = vsel %vm362_vm1, %v553_v11, %v554_v21  ;;  %v658_v31 = vrot.slane %v624_v22, 1  ;;  %v228_v33 = vmul.f32 %v1047_v0, %v1147_v10 }
  0x30   : > { %v501_v32 = vadd.f32 %v475_v15, %v421_v23  ;;  %v737_v35 = vrot.slane %v703_v26, 2  ;;  %v738_v37 = vrot.slane %v704_v27, 2  ;;  %v255_v38 = vmul.f32 %v1052_v1, %v1147_v10 }
  0x31   : > { %v1228_v39 = vadd.f32 %v1180_v45, %v779_v28  ;;  %v659_v40 = vsel %vm281_vm0, %v657_v25, %v658_v31  ;;  %v256_v41 = vmul.f32 %v1052_v1, %v1151_v14  ;;  %v336_v42 = vmul.f32 %v1057_v2, %v1147_v10 }
  0x32   : > { %v581_v43 = vadd.f32 %v555_v30, %v501_v32  ;;  %v739_v44 = vsel %vm362_vm1, %v737_v35, %v738_v37  ;;  %v291_v46 = vrot.slane %v255_v38, 1  ;;  %v337_v47 = vmul.f32 %v1057_v2, %v1151_v14 }
  0x33   : > { %v949_v48 = vmul.f32 -1.442695, %v1228_v39  ;;  %v292_v49 = vrot.slane %v256_v41, 1  ;;  %v372_v50 = vrot.slane %v336_v42, 2  ;;  %v414_v51 = vmul.f32 %v1067_v3, %v1203_v8 }
  0x34   : > { %v605_v52 = vadd.f32 %v597_v16, %v581_v43  ;;  %v373_v53 = vrot.slane %v337_v47, 2  ;;  %v441_v10 = vmul.f32 %v1072_v4, %v1203_v8  ;;  %v442_v54 = vmul.f32 %v1072_v4, %v1208_v12 }
  0x35   : > { %970 = vpow2.f32 %v949_v48  ;;  %v293_v55 = vsel %vm281_vm0, %v291_v46, %v292_v49  ;;  %v521_v14 = vmul.f32 %v1079_v7, %v1203_v8  ;;  %v522_v56 = vmul.f32 %v1079_v7, %v1208_v12 }
  0x36   : > { %v685_v24 = vadd.f32 %v659_v40, %v605_v52  ;;  %v317_v58 = vadd.f32 %v293_v55, %v228_v33  ;;  %v374_v59 = vsel %vm362_vm1, %v372_v50, %v373_v53  ;;  %v476_v60 = vrot.slane %v441_v10, 1 }
  0x37   : > { %v969_v61 = vpop.eup %968  ;;  %v477_v62 = vrot.slane %v442_v54, 1  ;;  %v556_v63 = vrot.slane %v521_v14, 2  ;;  %v557_v5 = vrot.slane %v522_v56, 2  ;;  %v598_v6 = vmul.f32 %v1094_v18, %v1251_v34 }
  0x38   : > { %v825_v9 = vadd.f32 1.0, %v969_v61  ;;  %v765_v11 = vadd.f32 %v739_v44, %v685_v24  ;;  %v398_v15 = vadd.f32 %v374_v59, %v317_v58  ;;  %v625_v16 = vmul.f32 %v1099_v19, %v1251_v34  ;;  %v1296_v24 = vld [vmem:[%s1062_s26 + $0x60] sm:$0xff] }
  0x39   : > { %v478_v17 = vsel %vm281_vm0, %v476_v60, %v477_v62  ;;  %v558_v20 = vsel %vm362_vm1, %v556_v63, %v557_v5  ;;  %v626_v21 = vmul.f32 %v1099_v19, %v1257_v13  ;;  %v705_v22 = vmul.f32 %v1109_v29, %v1251_v34 }
  0x3a   : > { %972 = vrcp.f32 %v825_v9  ;;  %v780_v23 = vmul.f32 %v1168_v36, %v765_v11  ;;  %v422_v25 = vadd.f32 %v414_v51, %v398_v15  ;;  %v660_v26 = vrot.slane %v625_v16, 1  ;;  %v1310_v9 = vld [vmem:[%s1062_s26 + $0x68] sm:$0x3] }
  0x3b   : > { %v661_v27 = vrot.slane %v626_v21, 1  ;;  %v706_v28 = vmul.f32 %v1109_v29, %v1257_v13  ;;  %v740_v30 = vrot.slane %v705_v22, 2  ;;  %v229_v31 = vmul.f32 %v1047_v0, %v1203_v8 }
  0x3c   : > { %v1273_v33 = vadd.f32 %v1180_v45, %v780_v23  ;;  %v502_v32 = vadd.f32 %v478_v17, %v422_v25  ;;  %v257_v35 = vmul.f32 %v1052_v1, %v1203_v8  ;;  %v258_v37 = vmul.f32 %v1052_v1, %v1208_v12 }
  0x3d   : > { %v662_v38 = vsel %vm281_vm0, %v660_v26, %v661_v27  ;;  %v741_v40 = vrot.slane %v706_v28, 2  ;;  %v338_v41 = vmul.f32 %v1057_v2, %v1203_v8  ;;  %v339_v42 = vmul.f32 %v1057_v2, %v1208_v12 }
  0x3e   : > { %v950_v43 = vmul.f32 -1.442695, %v1273_v33  ;;  %v582_v44 = vadd.f32 %v558_v20, %v502_v32  ;;  %v294_v46 = vrot.slane %v257_v35, 1  ;;  %v295_v47 = vrot.slane %v258_v37, 1 }
  0x3f   : > { %v971_v48 = vpop.eup %970  ;;  %v742_v49 = vsel %vm362_vm1, %v740_v30, %v741_v40  ;;  %v375_v50 = vrot.slane %v338_v41, 2  ;;  %v376_v51 = vrot.slane %v339_v42, 2  ;;  %v415_v52 = vmul.f32 %v1067_v3, %v1251_v34 }
  0x40   : > { %v826_v53 = vadd.f32 1.0, %v971_v48  ;;  %974 = vpow2.f32 %v950_v43  ;;  %v606_v8 = vadd.f32 %v598_v6, %v582_v44  ;;  %v296_v10 = vsel %vm281_vm0, %v294_v46, %v295_v47 }
  0x41   : > { %v318_v12 = vadd.f32 %v296_v10, %v229_v31  ;;  %v377_v54 = vsel %vm362_vm1, %v375_v50, %v376_v51  ;;  %v443_v55 = vmul.f32 %v1072_v4, %v1251_v34  ;;  %v444_v14 = vmul.f32 %v1072_v4, %v1257_v13 }
  0x42   : > { %976 = vrcp.f32 %v826_v53  ;;  %v686_v56 = vadd.f32 %v662_v38, %v606_v8  ;;  %v523_v58 = vmul.f32 %v1079_v7, %v1251_v34  ;;  %v524_v59 = vmul.f32 %v1079_v7, %v1257_v13 }
  0x43   : > { %v399_v60 = vadd.f32 %v377_v54, %v318_v12  ;;  %v479_v61 = vrot.slane %v443_v55, 1  ;;  %v480_v62 = vrot.slane %v444_v14, 1  ;;  %v599_v63 = vmul.f32 %v1094_v18, %v1296_v24  ;;  %v1347_v14 = vld [vmem:[%s1062_s26 + $0x70] sm:$0xff] }
  0x44   : > { %v973_v5 = vpop.eup %972  ;;  %v766_v6 = vadd.f32 %v742_v49, %v686_v56  ;;  %v559_v11 = vrot.slane %v523_v58, 2  ;;  %v560_v15 = vrot.slane %v524_v59, 2  ;;  %v627_v16 = vmul.f32 %v1099_v19, %v1296_v24 }
  0x45   : > { %v849_v17 = vmul.f32 %v973_v5, %v1195_v57  ;;  %v423_v20 = vadd.f32 %v415_v52, %v399_v60  ;;  %v481_v21 = vsel %vm281_vm0, %v479_v61, %v480_v62  ;;  %v628_v22 = vmul.f32 %v1099_v19, %v1310_v9  ;;  %v1363_v5 = vld [vmem:[%s1062_s26 + $0x78] sm:$0x3] }
  0x46   : > { %v781_v23 = vmul.f32 %v1168_v36, %v766_v6  ;;  %v561_v25 = vsel %vm362_vm1, %v559_v11, %v560_v15  ;;  %v663_v26 = vrot.slane %v627_v16, 1  ;;  %v707_v27 = vmul.f32 %v1109_v29, %v1296_v24 }
  0x47   : > { %858 = vst.msk [vmem:[%s1307_s21] sm:$0xff] %vm857_vm2, %v849_v17  ;;  %v503_v28 = vadd.f32 %v481_v21, %v423_v20  ;;  %v664_v30 = vrot.slane %v628_v22, 1  ;;  %v708_v57 = vmul.f32 %v1109_v29, %v1310_v9  ;;  %v230_v31 = vmul.f32 %v1047_v0, %v1251_v34 }
  0x48   : > { %v1329_v32 = vadd.f32 %v1180_v45, %v781_v23  ;;  %v743_v35 = vrot.slane %v707_v27, 2  ;;  %v259_v37 = vmul.f32 %v1052_v1, %v1251_v34  ;;  %v260_v38 = vmul.f32 %v1052_v1, %v1257_v13 }
  0x49   : > { %v583_v40 = vadd.f32 %v561_v25, %v503_v28  ;;  %v665_v41 = vsel %vm281_vm0, %v663_v26, %v664_v30  ;;  %v744_v42 = vrot.slane %v708_v57, 2  ;;  %v340_v43 = vmul.f32 %v1057_v2, %v1251_v34 }
  0x4a   : > { %v975_v44 = vpop.eup %974  ;;  %v951_v46 = vmul.f32 -1.442695, %v1329_v32  ;;  %v297_v47 = vrot.slane %v259_v37, 1  ;;  %v298_v48 = vrot.slane %v260_v38, 1  ;;  %v341_v49 = vmul.f32 %v1057_v2, %v1257_v13 }
  0x4b   : > { %v827_v50 = vadd.f32 1.0, %v975_v44  ;;  %v607_v51 = vadd.f32 %v599_v63, %v583_v40  ;;  %v745_v52 = vsel %vm362_vm1, %v743_v35, %v744_v42  ;;  %v378_v53 = vrot.slane %v340_v43, 2 }
  0x4c   : > { %v977_v8 = vpop.eup %976  ;;  %978 = vpow2.f32 %v951_v46  ;;  %v299_v10 = vsel %vm281_vm0, %v297_v47, %v298_v48  ;;  %v379_v34 = vrot.slane %v341_v49, 2  ;;  %v416_v12 = vmul.f32 %v1067_v3, %v1296_v24 }
  0x4d   : > { %v850_v54 = vmul.f32 %v977_v8, %v1228_v39  ;;  %980 = vrcp.f32 %v827_v50  ;;  %v687_v55 = vadd.f32 %v665_v41, %v607_v51  ;;  %v319_v13 = vadd.f32 %v299_v10, %v230_v31 }
  0x4e   : > { %v380_v56 = vsel %vm362_vm1, %v378_v53, %v379_v34  ;;  %v445_v58 = vmul.f32 %v1072_v4, %v1296_v24  ;;  %v446_v59 = vmul.f32 %v1072_v4, %v1310_v9  ;;  %v525_v60 = vmul.f32 %v1079_v7, %v1296_v24 }
  0x4f   : > { %859 = vst.msk [vmem:[%s1307_s21 + $0x8] sm:$0xff] %vm857_vm2, %v850_v54  ;;  %v767_v61 = vadd.f32 %v745_v52, %v687_v55  ;;  %v400_v39 = vadd.f32 %v380_v56, %v319_v13  ;;  %v526_v62 = vmul.f32 %v1079_v7, %v1310_v9  ;;  %v600_v63 = vmul.f32 %v1094_v18, %v1347_v14  ;;  %v214_v13 = vld [vmem:[%s1062_s26 + $0x80] sm:$0xff] }
  0x50   : > { %v482_v6 = vrot.slane %v445_v58, 1  ;;  %v483_v11 = vrot.slane %v446_v59, 1  ;;  %v562_v15 = vrot.slane %v525_v60, 2  ;;  %v629_v16 = vmul.f32 %v1099_v19, %v1347_v14 }
  0x51   : > { %v782_v17 = vmul.f32 %v1168_v36, %v767_v61  ;;  %v424_v20 = vadd.f32 %v416_v12, %v400_v39  ;;  %v563_v21 = vrot.slane %v526_v62, 2  ;;  %v630_v22 = vmul.f32 %v1099_v19, %v1363_v5 }
  0x52   : > { %v484_v23 = vsel %vm281_vm0, %v482_v6, %v483_v11  ;;  %v666_v25 = vrot.slane %v629_v16, 1  ;;  %v709_v26 = vmul.f32 %v1109_v29, %v1347_v14  ;;  %v710_v27 = vmul.f32 %v1109_v29, %v1363_v5 }
  0x53   : > { %v1376_v28 = vadd.f32 %v1180_v45, %v782_v17  ;;  %v504_v30 = vadd.f32 %v484_v23, %v424_v20  ;;  %v564_v57 = vsel %vm362_vm1, %v562_v15, %v563_v21  ;;  %v667_v31 = vrot.slane %v630_v22, 1 }
  0x54   : > { %v746_v35 = vrot.slane %v709_v26, 2  ;;  %v747_v37 = vrot.slane %v710_v27, 2  ;;  %v231_v38 = vmul.f32 %v1047_v0, %v1296_v24  ;;  %v261_v40 = vmul.f32 %v1052_v1, %v1296_v24 }
  0x55   : > { %v952_v41 = vmul.f32 -1.442695, %v1376_v28  ;;  %v584_v42 = vadd.f32 %v564_v57, %v504_v30  ;;  %v668_v43 = vsel %vm281_vm0, %v666_v25, %v667_v31  ;;  %v262_v44 = vmul.f32 %v1052_v1, %v1310_v9 }
  0x56   : > { %v979_v46 = vpop.eup %978  ;;  %v748_v47 = vsel %vm362_vm1, %v746_v35, %v747_v37  ;;  %v300_v48 = vrot.slane %v261_v40, 1  ;;  %v342_v49 = vmul.f32 %v1057_v2, %v1296_v24  ;;  %v343_v50 = vmul.f32 %v1057_v2, %v1310_v9 }
  0x57   : > { %v981_v51 = vpop.eup %980  ;;  %v828_v52 = vadd.f32 1.0, %v979_v46  ;;  %982 = vpow2.f32 %v952_v41  ;;  %v608_v53 = vadd.f32 %v600_v63, %v584_v42  ;;  %v301_v8 = vrot.slane %v262_v44, 1  ;;  %v215_v63 = vld [vmem:[%s1062_s26 + $0x88] sm:$0x3] }
  0x58   : > { %v851_v10 = vmul.f32 %v981_v51, %v1273_v33  ;;  %v381_v34 = vrot.slane %v342_v49, 2  ;;  %v382_v12 = vrot.slane %v343_v50, 2  ;;  %v417_v54 = vmul.f32 %v1067_v3, %v1347_v14 }
  0x59   : > { %984 = vrcp.f32 %v828_v52  ;;  %v688_v55 = vadd.f32 %v668_v43, %v608_v53  ;;  %v302_v24 = vsel %vm281_vm0, %v300_v48, %v301_v8  ;;  %v447_v9 = vmul.f32 %v1072_v4, %v1347_v14 }
  0x5a   : > { %860 = vst.msk [vmem:[%s1307_s21 + $0x10] sm:$0xff] %vm857_vm2, %v851_v10  ;;  %v320_v56 = vadd.f32 %v302_v24, %v231_v38  ;;  %v383_v58 = vsel %vm362_vm1, %v381_v34, %v382_v12  ;;  %v448_v33 = vmul.f32 %v1072_v4, %v1363_v5  ;;  %v527_v59 = vmul.f32 %v1079_v7, %v1347_v14 }
  0x5b   : > { %v768_v60 = vadd.f32 %v748_v47, %v688_v55  ;;  %v485_v61 = vrot.slane %v447_v9, 1  ;;  %v528_v39 = vmul.f32 %v1079_v7, %v1363_v5  ;;  %v601_v62 = vmul.f32 %v1094_v18, %v214_v13  ;;  %v216_v9 = vld [vmem:[%s1062_s26 + $0x90] sm:$0xff] }
  0x5c   : > { %v401_v6 = vadd.f32 %v383_v58, %v320_v56  ;;  %v486_v11 = vrot.slane %v448_v33, 1  ;;  %v565_v15 = vrot.slane %v527_v59, 2  ;;  %v631_v16 = vmul.f32 %v1099_v19, %v214_v13  ;;  %v217_v56 = vld [vmem:[%s1062_s26 + $0x98] sm:$0x3] }
  0x5d   : > { %v783_v17 = vmul.f32 %v1168_v36, %v768_v60  ;;  %v566_v20 = vrot.slane %v528_v39, 2  ;;  %v632_v21 = vmul.f32 %v1099_v19, %v215_v63  ;;  %v711_v22 = vmul.f32 %v1109_v29, %v214_v13 }
  0x5e   : > { %v425_v23 = vadd.f32 %v417_v54, %v401_v6  ;;  %v487_v25 = vsel %vm281_vm0, %v485_v61, %v486_v11  ;;  %v669_v26 = vrot.slane %v631_v16, 1  ;;  %v712_v27 = vmul.f32 %v1109_v29, %v215_v63 }
  0x5f   : > { %v1417_v30 = vadd.f32 %v1180_v45, %v783_v17  ;;  %v567_v57 = vsel %vm362_vm1, %v565_v15, %v566_v20  ;;  %v670_v31 = vrot.slane %v632_v21, 1  ;;  %v749_v35 = vrot.slane %v711_v22, 2 }
  0x60   : > { %v505_v37 = vadd.f32 %v487_v25, %v425_v23  ;;  %v750_v38 = vrot.slane %v712_v27, 2  ;;  %v232_v40 = vmul.f32 %v1047_v0, %v1347_v14  ;;  %v263_v41 = vmul.f32 %v1052_v1, %v1347_v14 }
  0x61   : > { %v983_v42 = vpop.eup %982  ;;  %v953_v43 = vmul.f32 -1.442695, %v1417_v30  ;;  %v671_v44 = vsel %vm281_vm0, %v669_v26, %v670_v31  ;;  %v264_v46 = vmul.f32 %v1052_v1, %v1363_v5  ;;  %v344_v47 = vmul.f32 %v1057_v2, %v1347_v14 }
  0x62   : > { %v829_v48 = vadd.f32 1.0, %v983_v42  ;;  %v585_v49 = vadd.f32 %v567_v57, %v505_v37  ;;  %v751_v50 = vsel %vm362_vm1, %v749_v35, %v750_v38  ;;  %v303_v0 = vrot.slane %v263_v41, 1 }
  0x63   : > { %v985_v51 = vpop.eup %984  ;;  %986 = vpow2.f32 %v953_v43  ;;  %v304_v52 = vrot.slane %v264_v46, 1  ;;  %v345_v53 = vmul.f32 %v1057_v2, %v1363_v5  ;;  %v384_v8 = vrot.slane %v344_v47, 2 }
  0x64   : > { %v852_v1 = vmul.f32 %v985_v51, %v1329_v32  ;;  %988 = vrcp.f32 %v829_v48  ;;  %v609_v10 = vadd.f32 %v601_v62, %v585_v49  ;;  %v418_v14 = vmul.f32 %v1067_v3, %v214_v13 }
  0x65   : > { %v305_v34 = vsel %vm281_vm0, %v303_v0, %v304_v52  ;;  %v385_v12 = vrot.slane %v345_v53, 2  ;;  %v449_v54 = vmul.f32 %v1072_v4, %v214_v13  ;;  %v450_v55 = vmul.f32 %v1072_v4, %v215_v63 }
  0x66   : > { %861 = vst.msk [vmem:[%s1307_s21 + $0x18] sm:$0xff] %vm857_vm2, %v852_v1  ;;  %v689_v24 = vadd.f32 %v671_v44, %v609_v10  ;;  %v321_v2 = vadd.f32 %v305_v34, %v232_v40  ;;  %v529_v5 = vmul.f32 %v1079_v7, %v214_v13  ;;  %v530_v32 = vmul.f32 %v1079_v7, %v215_v63 }
  0x67   : > { %v386_v58 = vsel %vm362_vm1, %v384_v8, %v385_v12  ;;  %v488_v3 = vrot.slane %v449_v54, 1  ;;  %v489_v33 = vrot.slane %v450_v55, 1  ;;  %v633_v62 = vmul.f32 %v1099_v19, %v216_v9 }
  0x68   : > { %v769_v59 = vadd.f32 %v751_v50, %v689_v24  ;;  %v402_v60 = vadd.f32 %v386_v58, %v321_v2  ;;  %v568_v61 = vrot.slane %v529_v5, 2  ;;  %v569_v39 = vrot.slane %v530_v32, 2 }
  0x69   : > { %v490_v4 = vsel %vm281_vm0, %v488_v3, %v489_v33  ;;  %v634_v6 = vmul.f32 %v1099_v19, %v217_v56  ;;  %v713_v11 = vmul.f32 %v1109_v29, %v216_v9  ;;  %v714_v7 = vmul.f32 %v1109_v29, %v217_v56 }
  0x6a   : > { %v784_v13 = vmul.f32 %v1168_v36, %v769_v59  ;;  %v426_v15 = vadd.f32 %v418_v14, %v402_v60  ;;  %v570_v63 = vsel %vm362_vm1, %v568_v61, %v569_v39  ;;  %v672_v16 = vrot.slane %v633_v62, 1 }
  0x6b   : > { %v673_v17 = vrot.slane %v634_v6, 1  ;;  %v602_v22 = vmul.f32 %v1094_v18, %v216_v9  ;;  %v752_v25 = vrot.slane %v713_v11, 2  ;;  %v753_v19 = vrot.slane %v714_v7, 2 }
  0x6c   : > { %v799_v20 = vadd.f32 %v1180_v45, %v784_v13  ;;  %v506_v21 = vadd.f32 %v490_v4, %v426_v15 }
  0x6d   : > { %v987_v23 = vpop.eup %986  ;;  %v674_v29 = vsel %vm281_vm0, %v672_v16, %v673_v17  ;;  %v754_v38 = vsel %vm362_vm1, %v752_v25, %v753_v19 }
  0x6e   : > { %v989_v26 = vpop.eup %988  ;;  %v830_v27 = vadd.f32 1.0, %v987_v23  ;;  %v954_v57 = vmul.f32 -1.442695, %v799_v20  ;;  %v586_v31 = vadd.f32 %v570_v63, %v506_v21 }
  0x6f   : > { %v853_v35 = vmul.f32 %v989_v26, %v1376_v28 }
  0x70   : > { %990 = vrcp.f32 %v830_v27  ;;  %v610_v37 = vadd.f32 %v602_v22, %v586_v31 }
  0x71   : > { %862 = vst.msk [vmem:[%s1307_s21 + $0x20] sm:$0xff] %vm857_vm2, %v853_v35  ;;  %992 = vpow2.f32 %v954_v57 }
  0x72   : > { %v690_v18 = vadd.f32 %v674_v29, %v610_v37 }
  0x74   : > { %v770_v40 = vadd.f32 %v754_v38, %v690_v18 }
  0x76   : > { %v785_v41 = vmul.f32 %v1168_v36, %v770_v40 }
  0x78   : > { %v800_v42 = vadd.f32 %v1180_v45, %v785_v41 }
  0x7a   : > { %v991_v43 = vpop.eup %990  ;;  %v955_v28 = vmul.f32 -1.442695, %v800_v42 }
  0x7b   : > { %v993_v44 = vpop.eup %992  ;;  %v854_v46 = vmul.f32 %v991_v43, %v1417_v30 }
  0x7c   : > { %v831_v47 = vadd.f32 1.0, %v993_v44  ;;  %994 = vpow2.f32 %v955_v28 }
  0x7d   : > { %863 = vst.msk [vmem:[%s1307_s21 + $0x28] sm:$0xff] %vm857_vm2, %v854_v46 }
  0x7e   : > { %996 = vrcp.f32 %v831_v47 }
  0x86   : > { %v995_v48 = vpop.eup %994 }
  0x87   : > { %v832_v49 = vadd.f32 1.0, %v995_v48 }
  0x88   : > { %v997_v50 = vpop.eup %996 }
  0x89   : > { %v855_v0 = vmul.f32 %v997_v50, %v799_v20  ;;  %998 = vrcp.f32 %v832_v49 }
  0x8b   : > { %864 = vst.msk [vmem:[%s1307_s21 + $0x30] sm:$0xff] %vm857_vm2, %v855_v0 }
  0x93   : > { %v999_v36 = vpop.eup %998 }
  0x94   : > { %v856_v45 = vmul.f32 %v999_v36, %v800_v42 }
  0x96   : > { %865 = vst.msk [vmem:[%s1307_s21 + $0x38] sm:$0xff] %vm857_vm2, %v856_v45 }
  0x97 PF: > { %s14_s15 = sadd.s32 1, %s1006_s15  }
  0x98   : > { %p11_p4 = scmp.ge.s32.totalorder %s14_s15, 4  }
  0x9a   :  { %13 = sbr.rel (!%p11_p4) target bundleno = 1 (0x1), region = 74 }

// kernel: _encoder_forward.12
= control target key start
LH: loop header
LB: loop body
LE: loop exit
PB: predicated region body
PF: predicated region fallthrough
CT: control target
= control target key end

     0   :  { %vm53_vm0 = vcmask 130048   ;;  %s557_s1 = inlined_call_operand.vmem [shape: bf16[16,16], index: 1, kind: input, shape index: {}]   ;;  %s558_s0 = inlined_call_operand.vmem [shape: f32[128,16], index: 0, kind: input, shape index: {}]   ;;  %s559_s2 = inlined_call_operand.vmem [shape: f32[1,16], index: 2, kind: input, shape index: {}]   ;;  %s560_s3 = inlined_call_operand.vmem [shape: f32[1,16], index: 3, kind: input, shape index: {}]   ;;  %s561_s4 = inlined_call_operand.vmem [shape: f32[128,16], index: 4, kind: input, shape index: {}]   ;;  %s562_s5 = inlined_call_operand.vmem [shape: f32[128,16], index: 5, kind: output, shape index: {}]  }
   0x1   :  { %v313_v0 = vld [vmem:[%s557_s1] sm:$0xff]   ;;  %v22_v2 = vld [vmem:[%s558_s0 + $0x8] sm:$0xff]  ;;  %v23_v6 = vld [vmem:[%s558_s0 + $0x10] sm:$0xff] }
   0x2   :  { %v21_v1 = vld [vmem:[%s558_s0] sm:$0xff]  ;;  %293 = vmatprep.subr.bf16.mxu0 %v313_v0  ;;  %311 = vmatprep.subr.bf16.mxu1 %v313_v0  ;;  %v30_v5 = vld [vmem:[%s558_s0 + $0x48] sm:$0xff]  ;;  %v24_v7 = vld [vmem:[%s558_s0 + $0x18] sm:$0xff] }
   0x3   :  { %v29_v3 = vld [vmem:[%s558_s0 + $0x40] sm:$0xff]  ;;  %v37_v4 = vpack.c.bf16 %v22_v2, %v21_v1  ;;  %294 = vmatpush3.bf16.msra.mxu0 %v313_v0  ;;  %312 = vmatpush3.bf16.msra.mxu1 %v313_v0  ;;  %v38_v9 = vpack.c.bf16 %v24_v7, %v23_v6  ;;  %v31_v10 = vld [vmem:[%s558_s0 + $0x50] sm:$0xff]  ;;  %v32_v11 = vld [vmem:[%s558_s0 + $0x58] sm:$0xff] }
   0x4   :  { %v41_v8 = vpack.c.bf16 %v30_v5, %v29_v3  ;;  %v25_v12 = vld [vmem:[%s558_s0 + $0x20] sm:$0xff]  ;;  %v42_v13 = vpack.c.bf16 %v32_v11, %v31_v10  ;;  %v26_v14 = vld [vmem:[%s558_s0 + $0x28] sm:$0xff]  ;;  %v27_v19 = vld [vmem:[%s558_s0 + $0x30] sm:$0xff] }
   0x5   :  { %295 = vmatprep.mubr.msk.bf16.mxu0 %vm53_vm0, %v37_v4  ;;  %v33_v15 = vld [vmem:[%s558_s0 + $0x60] sm:$0xff]  ;;  %v34_v16 = vld [vmem:[%s558_s0 + $0x68] sm:$0xff]  ;;  %v39_v17 = vpack.c.bf16 %v26_v14, %v25_v12  ;;  %v28_v20 = vld [vmem:[%s558_s0 + $0x38] sm:$0xff] }
   0x6   :  { %303 = vmatprep.mubr.msk.bf16.mxu1 %vm53_vm0, %v41_v8  ;;  %v43_v18 = vpack.c.bf16 %v34_v16, %v33_v15  ;;  %296 = vmatmul.mubr.msk.bf16.vlgmr.msra.gmra.mrb[0].mxu0 %vm53_vm0, %v38_v9  ;;  %v35_v21 = vld [vmem:[%s558_s0 + $0x70] sm:$0xff]  ;;  %v36_v22 = vld [vmem:[%s558_s0 + $0x78] sm:$0xff]  ;;  %v40_v23 = vpack.c.bf16 %v28_v20, %v27_v19  ;;  %v406_v25 = vld [vmem:[%s559_s2] ss:$0 sm:$0xff] }
   0x7   :  { %304 = vmatmul.mubr.msk.bf16.vlgmr.msra.gmra.mrb[0].mxu1 %vm53_vm0, %v42_v13  ;;  %299 = vmatprep.mubr.msk.bf16.mxu0 %vm53_vm0, %v39_v17  ;;  %v44_v24 = vpack.c.bf16 %v36_v22, %v35_v21  ;;  %v411_v27 = vld [vmem:[%s560_s3] ss:$0 sm:$0xff]  ;;  %v223_v33 = vld [vmem:[%s561_s4 + $0x10] sm:$0xff]  ;;  %v224_v49 = vld [vmem:[%s561_s4 + $0x18] sm:$0xff] }
   0x8   :  { %307 = vmatprep.mubr.msk.bf16.mxu1 %vm53_vm0, %v43_v18  ;;  %v231_v34 = vld [vmem:[%s561_s4 + $0x50] sm:$0xff]  ;;  %v221_v41 = vld [vmem:[%s561_s4] sm:$0xff]  ;;  %v232_v50 = vld [vmem:[%s561_s4 + $0x58] sm:$0xff] }
   0x9   :  { %v229_v42 = vld [vmem:[%s561_s4 + $0x40] sm:$0xff]  ;;  %v222_v57 = vld [vmem:[%s561_s4 + $0x8] sm:$0xff]  ;;  %v227_v9 = vld [vmem:[%s561_s4 + $0x30] sm:$0xff] }
   0xa   :  { %v230_v58 = vld [vmem:[%s561_s4 + $0x48] sm:$0xff]  ;;  %v235_v10 = vld [vmem:[%s561_s4 + $0x70] sm:$0xff]  ;;  %v225_v17 = vld [vmem:[%s561_s4 + $0x20] sm:$0xff] }
   0xb   :  { %v233_v18 = vld [vmem:[%s561_s4 + $0x60] sm:$0xff] }
   0xe   :  { %300 = vmatmul.mubr.msk.bf16.gmra.mrb[4].mxu0 %vm53_vm0, %v40_v23 }
   0xf   :  { %308 = vmatmul.mubr.msk.bf16.gmra.mrb[4].mxu1 %vm53_vm0, %v44_v24 }
  0xd9   :  { %v297_v26 = vpop.f32.mrb[0].mxu0 }
  0xda   :  { %v305_v28 = vpop.f32.mrb[0].mxu1  ;;  %v184_v29 = vmul.f32 %v297_v26, %v406_v25  ;;  %v112_v31 = vpop.f32.mrb[1].mxu0  ;;  %v228_v26 = vld [vmem:[%s561_s4 + $0x38] sm:$0xff] }
  0xdb   :  { %v192_v30 = vmul.f32 %v305_v28, %v406_v25  ;;  %v144_v32 = vpop.f32.mrb[1].mxu1  ;;  %v182_v35 = vmul.f32 %v406_v25, %v112_v31  ;;  %v298_v37 = vpop.f32.mrb[2].mxu0  ;;  %v236_v28 = vld [vmem:[%s561_s4 + $0x78] sm:$0xff] }
  0xdc   :  { %v190_v36 = vmul.f32 %v406_v25, %v144_v32  ;;  %v306_v38 = vpop.f32.mrb[2].mxu1  ;;  %v207_v39 = vadd.f32 %v411_v27, %v184_v29  ;;  %v185_v43 = vmul.f32 %v298_v37, %v406_v25  ;;  %v115_v45 = vpop.f32.mrb[3].mxu0 }
  0xdd   :  { %v215_v40 = vadd.f32 %v411_v27, %v192_v30  ;;  %v193_v44 = vmul.f32 %v306_v38, %v406_v25  ;;  %v147_v46 = vpop.f32.mrb[3].mxu1  ;;  %v205_v47 = vadd.f32 %v411_v27, %v182_v35  ;;  %v183_v51 = vmul.f32 %v406_v25, %v115_v45  ;;  %v226_v35 = vld [vmem:[%s561_s4 + $0x28] sm:$0xff] }
  0xde   :  { %v213_v48 = vadd.f32 %v411_v27, %v190_v36  ;;  %v191_v52 = vmul.f32 %v406_v25, %v147_v46  ;;  %v239_v53 = vadd.f32 %v223_v33, %v207_v39  ;;  %v208_v55 = vadd.f32 %v411_v27, %v185_v43  ;;  %v234_v36 = vld [vmem:[%s561_s4 + $0x68] sm:$0xff] }
  0xdf   :  { %v247_v54 = vadd.f32 %v231_v34, %v215_v40  ;;  %v216_v56 = vadd.f32 %v411_v27, %v193_v44  ;;  %v237_v59 = vadd.f32 %v221_v41, %v205_v47  ;;  %v206_v61 = vadd.f32 %v411_v27, %v183_v51 }
  0xe0   :  { %v245_v60 = vadd.f32 %v229_v42, %v213_v48  ;;  %v214_v62 = vadd.f32 %v411_v27, %v191_v52  ;;  %255 = vst.msk [vmem:[%s562_s5 + $0x10] sm:$0xff] %vm53_vm0, %v239_v53  ;;  %v240_v63 = vadd.f32 %v224_v49, %v208_v55 }
  0xe1   :  { %263 = vst.msk [vmem:[%s562_s5 + $0x50] sm:$0xff] %vm53_vm0, %v247_v54  ;;  %v248_v0 = vadd.f32 %v232_v50, %v216_v56  ;;  %253 = vst.msk [vmem:[%s562_s5] sm:$0xff] %vm53_vm0, %v237_v59  ;;  %v238_v1 = vadd.f32 %v222_v57, %v206_v61  ;;  %v301_v3 = vpop.f32.mrb[4].mxu0 }
  0xe2   :  { %261 = vst.msk [vmem:[%s562_s5 + $0x40] sm:$0xff] %vm53_vm0, %v245_v60  ;;  %v246_v2 = vadd.f32 %v230_v58, %v214_v62  ;;  %v309_v4 = vpop.f32.mrb[4].mxu1  ;;  %256 = vst.msk [vmem:[%s562_s5 + $0x18] sm:$0xff] %vm53_vm0, %v240_v63  ;;  %v188_v5 = vmul.f32 %v301_v3, %v406_v25  ;;  %v128_v7 = vpop.f32.mrb[5].mxu0 }
  0xe3   :  { %264 = vst.msk [vmem:[%s562_s5 + $0x58] sm:$0xff] %vm53_vm0, %v248_v0  ;;  %v196_v6 = vmul.f32 %v309_v4, %v406_v25  ;;  %v160_v8 = vpop.f32.mrb[5].mxu1  ;;  %254 = vst.msk [vmem:[%s562_s5 + $0x8] sm:$0xff] %vm53_vm0, %v238_v1  ;;  %v186_v11 = vmul.f32 %v406_v25, %v128_v7  ;;  %v302_v13 = vpop.f32.mrb[6].mxu0 }
  0xe4   :  { %262 = vst.msk [vmem:[%s562_s5 + $0x48] sm:$0xff] %vm53_vm0, %v246_v2  ;;  %v194_v12 = vmul.f32 %v406_v25, %v160_v8  ;;  %v310_v14 = vpop.f32.mrb[6].mxu1  ;;  %v211_v15 = vadd.f32 %v411_v27, %v188_v5  ;;  %v189_v19 = vmul.f32 %v302_v13, %v406_v25  ;;  %v131_v21 = vpop.f32.mrb[7].mxu0 }
  0xe5   :  { %v219_v16 = vadd.f32 %v411_v27, %v196_v6  ;;  %v197_v20 = vmul.f32 %v310_v14, %v406_v25  ;;  %v163_v22 = vpop.f32.mrb[7].mxu1  ;;  %v209_v23 = vadd.f32 %v411_v27, %v186_v11  ;;  %v187_v29 = vmul.f32 %v406_v25, %v131_v21 }
  0xe6   :  { %v217_v24 = vadd.f32 %v411_v27, %v194_v12  ;;  %v195_v30 = vmul.f32 %v406_v25, %v163_v22  ;;  %v243_v31 = vadd.f32 %v227_v9, %v211_v15  ;;  %v212_v33 = vadd.f32 %v411_v27, %v189_v19 }
  0xe7   :  { %v251_v32 = vadd.f32 %v235_v10, %v219_v16  ;;  %v220_v34 = vadd.f32 %v411_v27, %v197_v20  ;;  %v241_v37 = vadd.f32 %v225_v17, %v209_v23  ;;  %v210_v39 = vadd.f32 %v411_v27, %v187_v29 }
  0xe8   :  { %v249_v38 = vadd.f32 %v233_v18, %v217_v24  ;;  %v218_v25 = vadd.f32 %v411_v27, %v195_v30  ;;  %259 = vst.msk [vmem:[%s562_s5 + $0x30] sm:$0xff] %vm53_vm0, %v243_v31  ;;  %v244_v40 = vadd.f32 %v228_v26, %v212_v33 }
  0xe9   :  { %267 = vst.msk [vmem:[%s562_s5 + $0x70] sm:$0xff] %vm53_vm0, %v251_v32  ;;  %v252_v41 = vadd.f32 %v236_v28, %v220_v34  ;;  %257 = vst.msk [vmem:[%s562_s5 + $0x20] sm:$0xff] %vm53_vm0, %v241_v37  ;;  %v242_v27 = vadd.f32 %v226_v35, %v210_v39 }
  0xea   :  { %265 = vst.msk [vmem:[%s562_s5 + $0x60] sm:$0xff] %vm53_vm0, %v249_v38  ;;  %v250_v42 = vadd.f32 %v234_v36, %v218_v25  ;;  %260 = vst.msk [vmem:[%s562_s5 + $0x38] sm:$0xff] %vm53_vm0, %v244_v40 }
  0xeb   :  { %268 = vst.msk [vmem:[%s562_s5 + $0x78] sm:$0xff] %vm53_vm0, %v252_v41  ;;  %258 = vst.msk [vmem:[%s562_s5 + $0x28] sm:$0xff] %vm53_vm0, %v242_v27 }
  0xec   :  { %266 = vst.msk [vmem:[%s562_s5 + $0x68] sm:$0xff] %vm53_vm0, %v250_v42 }

// kernel: _encoder_forward.16
= control target key start
LH: loop header
LB: loop body
LE: loop exit
PB: predicated region body
PF: predicated region fallthrough
CT: control target
= control target key end

     0   :  { %vm43_vm0 = vcmask 1043456   ;;  %vm36_vm1 = vcmask 195584   ;;  %vm146_vm2 = vcmask 785408   ;;  %s257_s1 = inlined_call_operand.vmem [shape: bf16[24,96], index: 1, kind: input, shape index: {}]   ;;  %s258_s0 = inlined_call_operand.vmem [shape: f32[32,24], index: 0, kind: input, shape index: {}]   ;;  %s259_s2 = inlined_call_operand.vmem [shape: f32[1,96], index: 2, kind: input, shape index: {}]   ;;  %s260_s3 = inlined_call_operand.vmem [shape: f32[1,96], index: 3, kind: input, shape index: {}]   ;;  %s261_s4 = inlined_call_operand.vmem [shape: f32[32,96], index: 4, kind: output, shape index: {}]  }
   0x1   :  { %v178_v0 = vld [vmem:[%s257_s1] sm:$0xff]   ;;  %v179_v1 = vld [vmem:[%s257_s1 + $0x8] ss:$0 sps:$4 sm:$0xff]   ;;  %v20_v5 = vld [vmem:[%s258_s0 + $0x10] sm:$0xff] }
   0x2   :  { %v18_v2 = vld [vmem:[%s258_s0] sm:$0xff]  ;;  %v19_v3 = vld [vmem:[%s258_s0 + $0x8] sm:$0xff]  ;;  %169 = vmatprep.subr.bf16.mxu0 %v178_v0  ;;  %v21_v6 = vld [vmem:[%s258_s0 + $0x18] sm:$0xff]  ;;  %v45_v7 = vsel %vm43_vm0, %v179_v1, 0 }
   0x3   :  { %v22_v4 = vpack.c.bf16 %v19_v3, %v18_v2  ;;  %170 = vmatpush3.bf16.msra.mxu0 %v178_v0  ;;  %v23_v8 = vpack.c.bf16 %v21_v6, %v20_v5  ;;  %v159_v9 = vld [vmem:[%s259_s2] ss:$0 sm:$0xff] }
   0x4   :  { %177 = vmatprep.subr.msk.bf16.mxu0 %vm43_vm0, %v179_v1  ;;  %v160_v11 = vld [vmem:[%s260_s3] ss:$0 sm:$0xff] }
   0x5   :  { %173 = vmatprep.mubr.msk.bf16.mxu0 %vm36_vm1, %v22_v4 }
   0x7   :  { %172 = vmatpush3.bf16.msra.mxu0 %v45_v7 }
   0xa   :  { %174 = vmatmul.mubr.msk.bf16.vlgmr.msra.gmra.mrb[0].mxu0 %vm36_vm1, %v23_v8 }
  0xdd   :  { %v175_v10 = vpop.f32.mrb[0].mxu0 }
  0xde   :  { %v105_v12 = vmul.f32 %v175_v10, %v159_v9  ;;  %v81_v13 = vpop.f32.mrb[1].mxu0 }
  0xdf   :  { %v103_v14 = vmul.f32 %v159_v9, %v81_v13  ;;  %v176_v15 = vpop.f32.mrb[2].mxu0 }
  0xe0   :  { %v116_v16 = vadd.f32 %v160_v11, %v105_v12  ;;  %v106_v17 = vmul.f32 %v176_v15, %v159_v9  ;;  %v84_v18 = vpop.f32.mrb[3].mxu0 }
  0xe1   :  { %v114_v19 = vadd.f32 %v160_v11, %v103_v14  ;;  %v104_v20 = vmul.f32 %v159_v9, %v84_v18 }
  0xe2   :  { %v163_v21 = vmul.f32 -1.442695, %v116_v16  ;;  %v117_v22 = vadd.f32 %v160_v11, %v106_v17 }
  0xe3   :  { %v161_v23 = vmul.f32 -1.442695, %v114_v19  ;;  %v115_v24 = vadd.f32 %v160_v11, %v104_v20 }
  0xe4   :  { %180 = vpow2.f32 %v163_v21  ;;  %v164_v25 = vmul.f32 -1.442695, %v117_v22 }
  0xe5   :  { %182 = vpow2.f32 %v161_v23  ;;  %v162_v26 = vmul.f32 -1.442695, %v115_v24 }
  0xe6   :  { %184 = vpow2.f32 %v164_v25 }
  0xe7   :  { %186 = vpow2.f32 %v162_v26 }
  0xee   :  { %v181_v27 = vpop.eup %180 }
  0xef   :  { %v183_v28 = vpop.eup %182  ;;  %v132_v29 = vadd.f32 1.0, %v181_v27 }
  0xf0   :  { %v185_v30 = vpop.eup %184  ;;  %v130_v31 = vadd.f32 1.0, %v183_v28 }
  0xf1   :  { %v187_v32 = vpop.eup %186  ;;  %188 = vrcp.f32 %v132_v29  ;;  %v133_v33 = vadd.f32 1.0, %v185_v30 }
  0xf2   :  { %190 = vrcp.f32 %v130_v31  ;;  %v131_v34 = vadd.f32 1.0, %v187_v32 }
  0xf3   :  { %192 = vrcp.f32 %v133_v33 }
  0xf4   :  { %194 = vrcp.f32 %v131_v34 }
  0xfb   :  { %v189_v35 = vpop.eup %188 }
  0xfc   :  { %v191_v36 = vpop.eup %190  ;;  %v144_v37 = vmul.f32 %v189_v35, %v116_v16 }
  0xfd   :  { %v193_v38 = vpop.eup %192  ;;  %v142_v39 = vmul.f32 %v191_v36, %v114_v19 }
  0xfe   :  { %v195_v40 = vpop.eup %194  ;;  %149 = vst.msk [vmem:[%s261_s4 + $0x10] sm:$0xff] %vm146_vm2, %v144_v37  ;;  %v145_v41 = vmul.f32 %v193_v38, %v117_v22 }
  0xff   :  { %147 = vst.msk [vmem:[%s261_s4] sm:$0xff] %vm146_vm2, %v142_v39  ;;  %v143_v42 = vmul.f32 %v195_v40, %v115_v24 }
 0x100   :  { %150 = vst.msk [vmem:[%s261_s4 + $0x18] sm:$0xff] %vm146_vm2, %v145_v41 }
 0x101   :  { %148 = vst.msk [vmem:[%s261_s4 + $0x8] sm:$0xff] %vm146_vm2, %v143_v42 }

// kernel: _encoder_forward.14
= control target key start
LH: loop header
LB: loop body
LE: loop exit
PB: predicated region body
PF: predicated region fallthrough
CT: control target
= control target key end

     0   :  { %s764_s15 = smov 0   ;;  %s766_s16 = smov 0   ;;  %s951_s0 = inlined_call_operand.vmem [shape: f32[4,2,5,5,64], index: 0, kind: input, shape index: {}]   ;;  %s952_s1 = inlined_call_operand.vmem [shape: f32[9,1,1,1,64], index: 1, kind: input, shape index: {}]   ;;  %s953_s2 = inlined_call_operand.vmem [shape: f32[1,1,1,64], index: 2, kind: input, shape index: {}]   ;;  %s954_s3 = inlined_call_operand.vmem [shape: f32[1,1,1,64], index: 3, kind: input, shape index: {}]   ;;  %s955_s4 = inlined_call_operand.vmem [shape: f32[2,4,4,64], index: 4, kind: output, shape index: {}]  }
   0x1   :  { %s768_s17 = smov 0  }
   0x2 LB: > { %s625_s18 = sadd.s32 4294967295, %s737_s17   ;;  %s781_s19 = sadd.s32 1, %s737_s17   ;;  %s737_s17 = sphi %s768_s17, %s958_s17   ;;  %s733_s16 = sphi %s766_s16, %s957_s16   ;;  %s729_s15 = sphi %s764_s15, %s956_s15  }
   0x3   : > { %s18_s20 = ssub.s32 %s737_s17, %s781_s19  ;;  %s21_s21 = sadd.s32 1, %s733_s16 }
   0x4   : > { %p19_p0 = scmp.eq.s32.totalorder %s18_s20, 0  ;;  %p28_p1 = scmp.ne.s32.totalorder %s733_s16, %s729_s15 }
   0x5   : > { %p29_p2 = scmp.eq.s32.totalorder %s737_s17, 0  ;;  %p628_p4 = scmp.ge.s32.totalorder %s737_s17, 2 }
   0x6   : > { %s790_s22 = scalar_select %p19_p0, %s733_s16, %s21_s21  }
   0x7   : > { %p30_p3 = por %p29_p2, %p28_p1  ;;  %152 = sbr.rel (%p628_p4) target bundleno = 29 (0x1d), region = 28 }
   0xe   : > { %155 = sbr.rel (!%p30_p3) target bundleno = 29 (0x1d), region = 32  ;;  %s157_s23 = sand.u32 (%p30_p3), 1, %s733_s16  }
   0xf   : > { %s673_s24 = smul.u32 (%p30_p3), 40, %s737_s17 }
  0x10   : > { %s672_s25 = smul.u32 (%p30_p3), 160, %s157_s23 }
  0x11   : > { %s798_s28 = scalar_lea.vmem (%p30_p3), %s951_s0, %s673_s24 }
  0x12   : > { %v228_v0 = vld [vmem:[%s798_s28] sm:$0xff] (%p30_p3)  ;;  %v230_v1 = vld [vmem:[%s798_s28 + $0x8] sm:$0xff] (%p30_p3)  ;;  %v232_v2 = vld [vmem:[%s798_s28 + $0x10] sm:$0xff] (%p30_p3)  ;;  %s803_s29 = scalar_lea.vmem (%p30_p3), [#allocation2], %s672_s25 }
  0x13   : > { %229 = vst [vmem:[%s803_s29] sm:$0xff] (%p30_p3), %v228_v0  ;;  %231 = vst [vmem:[%s803_s29 + $0x8] sm:$0xff] (%p30_p3), %v230_v1  ;;  %v234_v3 = vld [vmem:[%s798_s28 + $0x18] sm:$0xff] (%p30_p3)  ;;  %v236_v4 = vld [vmem:[%s798_s28 + $0x20] sm:$0xff] (%p30_p3) }
  0x14   : > { %233 = vst [vmem:[%s803_s29 + $0x10] sm:$0xff] (%p30_p3), %v232_v2  ;;  %v238_v5 = vld [vmem:[%s798_s28 + $0x50] sm:$0xff] (%p30_p3)  ;;  %235 = vst [vmem:[%s803_s29 + $0x18] sm:$0xff] (%p30_p3), %v234_v3  ;;  %v240_v6 = vld [vmem:[%s798_s28 + $0x58] sm:$0xff] (%p30_p3) }
  0x15   : > { %237 = vst [vmem:[%s803_s29 + $0x20] sm:$0xff] %v236_v4  ;;  %239 = vst [vmem:[%s803_s29 + $0x28] sm:$0xff] %v238_v5  ;;  %v242_v7 = vld [vmem:[%s798_s28 + $0x60] sm:$0xff]  ;;  %v244_v8 = vld [vmem:[%s798_s28 + $0x68] sm:$0xff] }
  0x16   : > { %241 = vst [vmem:[%s803_s29 + $0x30] sm:$0xff] %v240_v6  ;;  %243 = vst [vmem:[%s803_s29 + $0x38] sm:$0xff] %v242_v7  ;;  %v246_v9 = vld [vmem:[%s798_s28 + $0x70] sm:$0xff]  ;;  %v248_v10 = vld [vmem:[%s798_s28 + $0xa0] sm:$0xff] }
  0x17   : > { %245 = vst [vmem:[%s803_s29 + $0x40] sm:$0xff] %v244_v8  ;;  %v250_v11 = vld [vmem:[%s798_s28 + $0xa8] sm:$0xff]  ;;  %247 = vst [vmem:[%s803_s29 + $0x48] sm:$0xff] %v246_v9  ;;  %v252_v12 = vld [vmem:[%s798_s28 + $0xb0] sm:$0xff] }
  0x18   : > { %249 = vst [vmem:[%s803_s29 + $0x50] sm:$0xff] %v248_v10  ;;  %251 = vst [vmem:[%s803_s29 + $0x58] sm:$0xff] %v250_v11  ;;  %v254_v13 = vld [vmem:[%s798_s28 + $0xb8] sm:$0xff]  ;;  %v256_v14 = vld [vmem:[%s798_s28 + $0xc0] sm:$0xff] }
  0x19   : > { %253 = vst [vmem:[%s803_s29 + $0x60] sm:$0xff] %v252_v12  ;;  %255 = vst [vmem:[%s803_s29 + $0x68] sm:$0xff] %v254_v13  ;;  %v258_v15 = vld [vmem:[%s798_s28 + $0xf0] sm:$0xff]  ;;  %v260_v16 = vld [vmem:[%s798_s28 + $0xf8] sm:$0xff] }
  0x1a   : > { %257 = vst [vmem:[%s803_s29 + $0x70] sm:$0xff] %v256_v14  ;;  %v262_v17 = vld [vmem:[%s798_s28 + $0x100] sm:$0xff]  ;;  %259 = vst [vmem:[%s803_s29 + $0x78] sm:$0xff] %v258_v15  ;;  %v264_v18 = vld [vmem:[%s798_s28 + $0x108] sm:$0xff] }
  0x1b   : > { %261 = vst [vmem:[%s803_s29 + $0x80] sm:$0xff] %v260_v16  ;;  %263 = vst [vmem:[%s803_s29 + $0x88] sm:$0xff] %v262_v17  ;;  %v266_v19 = vld [vmem:[%s798_s28 + $0x110] sm:$0xff] }
  0x1c   : > { %265 = vst [vmem:[%s803_s29 + $0x90] sm:$0xff] %v264_v18  ;;  %267 = vst [vmem:[%s803_s29 + $0x98] sm:$0xff] %v266_v19 }
  0x1d PF: > { %p630_p5 = scmp.ge.s32.totalorder %s737_s17, 1  ;;  %p272_p6 = scmp.lt.s32.totalorder %s737_s17, 3 }
  0x1f   : > { %p273_p7 = pnand %p630_p5, %p272_p6 }
  0x20   : > { %s279_s30 = sand.u32 (!%p273_p7), 1, %s729_s15   ;;  %v646_v20 = vld [vmem:[%s952_s1] ss:$0 sm:$0xff] (!%p273_p7)  ;;  %v648_v21 = vld [vmem:[%s952_s1 + $0x1] ss:$0 sm:$0xff] (!%p273_p7)  ;;  %p304_p8 = scmp.lt.s32.totalorder (!%p273_p7), %s625_s18, 1 }
  0x21   : > { %276 = sbr.rel (%p273_p7) target bundleno = 98 (0x62), region = 70  ;;  %v650_v22 = vld [vmem:[%s952_s1 + $0x2] ss:$0 sm:$0xff] (!%p273_p7)  ;;  %v857_v23 = vld [vmem:[%s952_s1 + $0x3] ss:$0 sm:$0xff] (!%p273_p7)  ;;  %vm559_vm0 = vcmask (!%p273_p7), 519168  }
  0x22   : > { %s674_s5 = smul.u32 (!%p273_p7), 160, %s279_s30  ;;  %v862_v24 = vld [vmem:[%s952_s1 + $0x4] ss:$0 sm:$0xff] (!%p273_p7)  ;;  %v867_v25 = vld [vmem:[%s952_s1 + $0x5] ss:$0 sm:$0xff] (!%p273_p7) }
  0x23   : > { %v876_v28 = vld [vmem:[%s952_s1 + $0x6] ss:$0 sm:$0xff] (!%p273_p7)  ;;  %v886_v40 = vld [vmem:[%s952_s1 + $0x8] ss:$0 sm:$0xff] (!%p273_p7)  ;;  %v893_v45 = vld [vmem:[%s952_s1 + $0x7] ss:$0 sm:$0xff] (!%p273_p7) }
  0x24   : > { %s869_s23 = scalar_lea.vmem (!%p273_p7), [#allocation2], %s674_s5 }
  0x25   : > { %v309_v26 = vld [vmem:[%s869_s23] sm:$0x1f] (!%p273_p7)  ;;  %v310_v27 = vld [vmem:[%s869_s23 + $0x8] sm:$0x1f] (!%p273_p7)  ;;  %v634_v30 = vld [vmem:[%s869_s23 + $0x30] sm:$0x1f] (!%p273_p7) }
  0x26   : > { %v633_v29 = vld [vmem:[%s869_s23 + $0x28] sm:$0x1f] (!%p273_p7)  ;;  %v638_v31 = vld [vmem:[%s869_s23 + $0x50] sm:$0x1f] (!%p273_p7)  ;;  %v337_v32 = vmul.f32 (!%p273_p7), %v646_v20, %v309_v26  ;;  %v338_v33 = vmul.f32 (!%p273_p7), %v646_v20, %v310_v27  ;;  %v369_v34 = vmul.f32 (!%p273_p7), %v650_v22, %v309_v26  ;;  %v370_v35 = vmul.f32 (!%p273_p7), %v650_v22, %v310_v27  ;;  %v642_v36 = vld [vmem:[%s869_s23 + $0x78] sm:$0x1f] (!%p273_p7) }
  0x27   : > { %v353_v37 = vmul.f32 (!%p273_p7), %v648_v21, %v633_v29  ;;  %v354_v38 = vmul.f32 (!%p273_p7), %v648_v21, %v634_v30  ;;  %v429_v39 = vmul.f32 (!%p273_p7), %v867_v25, %v638_v31  ;;  %v397_v43 = vmul.f32 (!%p273_p7), %v857_v23, %v638_v31  ;;  %v311_v46 = vld [vmem:[%s869_s23 + $0x10] sm:$0x1f] (!%p273_p7)  ;;  %v635_v51 = vld [vmem:[%s869_s23 + $0x38] sm:$0x1f] (!%p273_p7)  ;;  %v643_v54 = vld [vmem:[%s869_s23 + $0x80] sm:$0x1f] (!%p273_p7) }
  0x28   : > { %v377_v41 = vrot.slane %v369_v34, 1  ;;  %v378_v42 = vrot.slane %v370_v35, 1  ;;  %v413_v44 = vmul.f32 %v862_v24, %v642_v36  ;;  %v457_v50 = vmul.f32 %v876_v28, %v310_v27  ;;  %v639_v52 = vld [vmem:[%s869_s23 + $0x58] sm:$0x1f]  ;;  %v636_v3 = vld [vmem:[%s869_s23 + $0x40] sm:$0x1f] }
  0x29   : > { %v357_v47 = vadd.f32 %v353_v37, %v337_v32  ;;  %v358_v48 = vadd.f32 %v354_v38, %v338_v33  ;;  %v437_v49 = vrot.slane %v429_v39, 1  ;;  %v489_v53 = vmul.f32 %v886_v40, %v310_v27  ;;  %v312_v62 = vld [vmem:[%s869_s23 + $0x18] sm:$0x1f]  ;;  %v640_v8 = vld [vmem:[%s869_s23 + $0x60] sm:$0x1f]  ;;  %s960_s18 = smov (!%p304_p8, %s625_s18), 1 }
  0x2a   : > { %v339_v55 = vmul.f32 %v646_v20, %v311_v46  ;;  %v355_v56 = vmul.f32 %v648_v21, %v635_v51  ;;  %v371_v57 = vmul.f32 %v650_v22, %v311_v46  ;;  %v398_v60 = vmul.f32 %v857_v23, %v639_v52  ;;  %v644_v9 = vld [vmem:[%s869_s23 + $0x88] sm:$0x1f]  ;;  %v645_v34 = vld [vmem:[%s869_s23 + $0x90] sm:$0x1f]  ;;  %s671_s8 = sshll.u32 %s960_s18, 4 }
  0x2b   : > { %v385_v58 = vadd.f32 %v377_v41, %v357_v47  ;;  %v386_v59 = vadd.f32 %v378_v42, %v358_v48  ;;  %v414_v61 = vmul.f32 %v862_v24, %v643_v54  ;;  %v473_v63 = vmul.f32 %v893_v45, %v634_v30  ;;  %v641_v33 = vld [vmem:[%s869_s23 + $0x68] sm:$0x1f]  ;;  %v313_v48 = vld [vmem:[%s869_s23 + $0x20] sm:$0x1f]  ;;  %s308_s11 = scalar_lea.vmem %s955_s4, %s671_s8 }
  0x2c   : > { %v359_v0 = vadd.f32 %v355_v56, %v339_v55  ;;  %v379_v1 = vrot.slane %v371_v57, 1  ;;  %v430_v2 = vmul.f32 %v867_v25, %v639_v52  ;;  %v497_v5 = vrot.slane %v489_v53, 1 }
  0x2d   : > { %v401_v4 = vadd.f32 %v397_v43, %v385_v58  ;;  %v402_v6 = vadd.f32 %v398_v60, %v386_v59  ;;  %v458_v7 = vmul.f32 %v876_v28, %v311_v46  ;;  %v490_v12 = vmul.f32 %v886_v40, %v311_v46 }
  0x2e   : > { %v387_v10 = vadd.f32 %v379_v1, %v359_v0  ;;  %v438_v11 = vrot.slane %v430_v2, 1  ;;  %v340_v13 = vmul.f32 %v646_v20, %v312_v62  ;;  %v356_v16 = vmul.f32 %v648_v21, %v636_v3 }
  0x2f   : > { %v417_v14 = vadd.f32 %v413_v44, %v401_v4  ;;  %v418_v15 = vadd.f32 %v414_v61, %v402_v6  ;;  %v372_v17 = vmul.f32 %v650_v22, %v312_v62  ;;  %v474_v18 = vmul.f32 %v893_v45, %v635_v51 }
  0x30   : > { %v399_v19 = vmul.f32 %v857_v23, %v640_v8  ;;  %v415_v26 = vmul.f32 %v862_v24, %v644_v9  ;;  %v431_v27 = vmul.f32 %v867_v25, %v640_v8  ;;  %v360_v31 = vadd.f32 %v356_v16, %v340_v13 }
  0x31   : > { %v445_v29 = vadd.f32 %v437_v49, %v417_v14  ;;  %v446_v30 = vadd.f32 %v438_v11, %v418_v15  ;;  %v380_v32 = vrot.slane %v372_v17, 1  ;;  %v498_v20 = vrot.slane %v490_v12, 1  ;;  %v663_v49 = vld [vmem:[%s953_s2] ss:$0 sm:$0xff] }
  0x32   : > { %v403_v35 = vadd.f32 %v399_v19, %v387_v10  ;;  %v439_v36 = vrot.slane %v431_v27, 1  ;;  %v459_v21 = vmul.f32 %v876_v28, %v312_v62  ;;  %v491_v39 = vmul.f32 %v886_v40, %v312_v62 }
  0x33   : > { %v461_v22 = vadd.f32 %v457_v50, %v445_v29  ;;  %v462_v37 = vadd.f32 %v458_v7, %v446_v30  ;;  %v388_v38 = vadd.f32 %v380_v32, %v360_v31  ;;  %v400_v42 = vmul.f32 %v857_v23, %v641_v33  ;;  %v637_v23 = vld [vmem:[%s869_s23 + $0x48] sm:$0x1f] }
  0x34   : > { %v419_v41 = vadd.f32 %v415_v26, %v403_v35  ;;  %v416_v43 = vmul.f32 %v862_v24, %v645_v34  ;;  %v432_v44 = vmul.f32 %v867_v25, %v641_v33  ;;  %v475_v51 = vmul.f32 %v893_v45, %v636_v3  ;;  %v664_v24 = vld [vmem:[%s954_s3] ss:$0 sm:$0xff] }
  0x35   : > { %v477_v46 = vadd.f32 %v473_v63, %v461_v22  ;;  %v478_v47 = vadd.f32 %v474_v18, %v462_v37  ;;  %v404_v52 = vadd.f32 %v400_v42, %v388_v38  ;;  %v499_v56 = vrot.slane %v491_v39, 1 }
  0x36   : > { %v447_v50 = vadd.f32 %v439_v36, %v419_v41  ;;  %v440_v53 = vrot.slane %v432_v44, 1  ;;  %v460_v58 = vmul.f32 %v876_v28, %v313_v48  ;;  %v492_v59 = vmul.f32 %v886_v40, %v313_v48 }
  0x37   : > { %v505_v54 = vadd.f32 %v497_v5, %v477_v46  ;;  %v506_v55 = vadd.f32 %v498_v20, %v478_v47  ;;  %v420_v57 = vadd.f32 %v416_v43, %v404_v52  ;;  %v476_v0 = vmul.f32 %v893_v45, %v637_v23 }
  0x38   : > { %v463_v25 = vadd.f32 %v459_v21, %v447_v50  ;;  %v500_v5 = vrot.slane %v492_v59, 1 }
  0x39   : > { %v516_v60 = vmul.f32 %v663_v49, %v505_v54  ;;  %v517_v61 = vmul.f32 %v663_v49, %v506_v55  ;;  %v448_v63 = vadd.f32 %v440_v53, %v420_v57 }
  0x3a   : > { %v479_v62 = vadd.f32 %v475_v51, %v463_v25 }
  0x3b   : > { %v527_v1 = vadd.f32 %v664_v24, %v516_v60  ;;  %v528_v2 = vadd.f32 %v664_v24, %v517_v61  ;;  %v464_v4 = vadd.f32 %v460_v58, %v448_v63 }
  0x3c   : > { %v507_v3 = vadd.f32 %v499_v56, %v479_v62 }
  0x3d   : > { %v665_v6 = vmul.f32 -1.442695, %v527_v1  ;;  %v666_v7 = vmul.f32 -1.442695, %v528_v2  ;;  %v480_v9 = vadd.f32 %v476_v0, %v464_v4 }
  0x3e   : > { %v518_v8 = vmul.f32 %v663_v49, %v507_v3 }
  0x3f   : > { %699 = vpow2.f32 %v665_v6  ;;  %v508_v40 = vadd.f32 %v500_v5, %v480_v9 }
  0x40   : > { %701 = vpow2.f32 %v666_v7  ;;  %v529_v28 = vadd.f32 %v664_v24, %v518_v8 }
  0x41   : > { %v519_v11 = vmul.f32 %v663_v49, %v508_v40 }
  0x42   : > { %v667_v10 = vmul.f32 -1.442695, %v529_v28 }
  0x43   : > { %v530_v12 = vadd.f32 %v664_v24, %v519_v11 }
  0x44   : > { %703 = vpow2.f32 %v667_v10 }
  0x45   : > { %v668_v45 = vmul.f32 -1.442695, %v530_v12 }
  0x47   : > { %705 = vpow2.f32 %v668_v45 }
  0x49   : > { %v700_v13 = vpop.eup %699 }
  0x4a   : > { %v702_v14 = vpop.eup %701  ;;  %v543_v15 = vadd.f32 1.0, %v700_v13 }
  0x4b   : > { %v544_v16 = vadd.f32 1.0, %v702_v14 }
  0x4c   : > { %707 = vrcp.f32 %v543_v15 }
  0x4d   : > { %709 = vrcp.f32 %v544_v16 }
  0x4e   : > { %v704_v17 = vpop.eup %703 }
  0x4f   : > { %v545_v18 = vadd.f32 1.0, %v704_v17 }
  0x51   : > { %711 = vrcp.f32 %v545_v18  ;;  %v706_v19 = vpop.eup %705 }
  0x52   : > { %v546_v26 = vadd.f32 1.0, %v706_v19 }
  0x54   : > { %713 = vrcp.f32 %v546_v26 }
  0x56   : > { %v708_v27 = vpop.eup %707 }
  0x57   : > { %v710_v29 = vpop.eup %709  ;;  %v555_v30 = vmul.f32 %v708_v27, %v527_v1 }
  0x58   : > { %v556_v31 = vmul.f32 %v710_v29, %v528_v2 }
  0x59   : > { %560 = vst.msk [vmem:[%s308_s11] sm:$0xf] %vm559_vm0, %v555_v30 }
  0x5a   : > { %561 = vst.msk [vmem:[%s308_s11 + $0x4] sm:$0xf] %vm559_vm0, %v556_v31 }
  0x5b   : > { %v712_v32 = vpop.eup %711 }
  0x5c   : > { %v557_v33 = vmul.f32 %v712_v32, %v529_v28 }
  0x5e   : > { %562 = vst.msk [vmem:[%s308_s11 + $0x8] sm:$0xf] %vm559_vm0, %v557_v33  ;;  %v714_v34 = vpop.eup %713 }
  0x5f   : > { %v558_v20 = vmul.f32 %v714_v34, %v530_v12 }
  0x61   : > { %563 = vst.msk [vmem:[%s308_s11 + $0xc] sm:$0xf] %vm559_vm0, %v558_v20 }
  0x62 PF: > { %p11_p9 = scmp.ge.s32.totalorder %s781_s19, 4   ;;  %s956_s15 = smov %s733_s16 }
  0x63   : > { %s957_s16 = smov %s790_s22  ;;  %s958_s17 = smov %s781_s19 }
  0x64   :  { %13 = sbr.rel (!%p11_p9) target bundleno = 2 (0x2), region = 120 }

// kernel: _encoder_forward.15
= control target key start
LH: loop header
LB: loop body
LE: loop exit
PB: predicated region body
PF: predicated region fallthrough
CT: control target
= control target key end

     0   :  { %vm56_vm0 = vcmask 523264   ;;  %vm134_vm1 = vcmask 195584   ;;  %s240_s1 = inlined_call_operand.vmem [shape: bf16[64,24], index: 1, kind: input, shape index: {}]   ;;  %s241_s0 = inlined_call_operand.vmem [shape: f32[32,64], index: 0, kind: input, shape index: {}]   ;;  %s242_s2 = inlined_call_operand.vmem [shape: f32[1,24], index: 2, kind: input, shape index: {}]   ;;  %s243_s3 = inlined_call_operand.vmem [shape: f32[1,24], index: 3, kind: input, shape index: {}]   ;;  %s244_s4 = inlined_call_operand.vmem [shape: f32[32,24], index: 4, kind: output, shape index: {}]  }
   0x1   :  { %v169_v0 = vld [vmem:[%s240_s1] sm:$0xff]   ;;  %v170_v1 = vld [vmem:[%s240_s1 + $0x8] sm:$0xff]   ;;  %v171_v2 = vld [vmem:[%s240_s1 + $0x10] sm:$0xff]  }
   0x2   :  { %157 = vmatprep.subr.bf16.mxu0 %v169_v0  ;;  %v18_v3 = vld [vmem:[%s241_s0] sm:$0xff]  ;;  %v19_v4 = vld [vmem:[%s241_s0 + $0x8] sm:$0xff]  ;;  %v172_v6 = vld [vmem:[%s240_s1 + $0x18] sm:$0xff]  }
   0x3   :  { %158 = vmatpush3.bf16.msra.mxu0 %v169_v0  ;;  %v22_v5 = vpack.c.bf16 %v19_v4, %v18_v3  ;;  %v20_v7 = vld [vmem:[%s241_s0 + $0x10] sm:$0xff]  ;;  %v21_v8 = vld [vmem:[%s241_s0 + $0x18] sm:$0xff]  ;;  %v149_v10 = vld [vmem:[%s242_s2] ss:$0 sm:$0xff] }
   0x4   :  { %159 = vmatprep.subr.bf16.mxu0 %v170_v1  ;;  %v23_v9 = vpack.c.bf16 %v21_v8, %v20_v7  ;;  %v150_v12 = vld [vmem:[%s243_s3] ss:$0 sm:$0xff] }
   0x5   :  { %165 = vmatprep.mubr.msk.bf16.mxu0 %vm56_vm0, %v22_v5 }
   0x7   :  { %160 = vmatpush3.bf16.msra.mxu0 %v170_v1 }
   0x8   :  { %161 = vmatprep.subr.bf16.mxu0 %v171_v2 }
   0xb   :  { %162 = vmatpush3.bf16.msra.mxu0 %v171_v2 }
   0xc   :  { %163 = vmatprep.subr.bf16.mxu0 %v172_v6 }
   0xf   :  { %164 = vmatpush3.bf16.msra.mxu0 %v172_v6 }
  0x12   :  { %166 = vmatmul.mubr.msk.bf16.vlgmr.msra.gmra.mrb[0].mxu0 %vm56_vm0, %v23_v9 }
  0xe5   :  { %v167_v11 = vpop.f32.mrb[0].mxu0 }
  0xe6   :  { %v121_v13 = vmul.f32 %v167_v11, %v149_v10  ;;  %v97_v14 = vpop.f32.mrb[1].mxu0 }
  0xe7   :  { %v119_v15 = vmul.f32 %v149_v10, %v97_v14  ;;  %v168_v16 = vpop.f32.mrb[2].mxu0 }
  0xe8   :  { %v132_v17 = vadd.f32 %v150_v12, %v121_v13  ;;  %v122_v18 = vmul.f32 %v168_v16, %v149_v10  ;;  %v100_v19 = vpop.f32.mrb[3].mxu0 }
  0xe9   :  { %v130_v20 = vadd.f32 %v150_v12, %v119_v15  ;;  %v120_v21 = vmul.f32 %v149_v10, %v100_v19 }
  0xea   :  { %137 = vst.msk [vmem:[%s244_s4 + $0x10] sm:$0xff] %vm134_vm1, %v132_v17  ;;  %v133_v22 = vadd.f32 %v150_v12, %v122_v18 }
  0xeb   :  { %135 = vst.msk [vmem:[%s244_s4] sm:$0xff] %vm134_vm1, %v130_v20  ;;  %v131_v23 = vadd.f32 %v150_v12, %v120_v21 }
  0xec   :  { %138 = vst.msk [vmem:[%s244_s4 + $0x18] sm:$0xff] %vm134_vm1, %v133_v22 }
  0xed   :  { %136 = vst.msk [vmem:[%s244_s4 + $0x8] sm:$0xff] %vm134_vm1, %v131_v23 }

// kernel: _encoder_forward.18
= control target key start
LH: loop header
LB: loop body
LE: loop exit
PB: predicated region body
PF: predicated region fallthrough
CT: control target
= control target key end

     0   :  { %v174_v0 = vmov 0.0   ;;  %vm175_vm0 = vmmov 0   ;;  %vm68_vm1 = vcmask 785408   ;;  %vm128_vm2 = vcmask 261120   ;;  %s231_s1 = inlined_call_operand.vmem [shape: bf16[96,32], index: 1, kind: input, shape index: {}]   ;;  %s232_s0 = inlined_call_operand.vmem [shape: f32[8,96], index: 0, kind: input, shape index: {}]   ;;  %s233_s2 = inlined_call_operand.vmem [shape: f32[1,32], index: 2, kind: input, shape index: {}]   ;;  %s234_s3 = inlined_call_operand.vmem [shape: f32[1,32], index: 3, kind: input, shape index: {}]   ;;  %s235_s4 = inlined_call_operand.vmem [shape: f32[8,32], index: 4, kind: output, shape index: {}]  }
   0x1   :  { %150 = vmatprep.subr.bf16.mxu0 %v174_v0  ;;  %v168_v1 = vld [vmem:[%s231_s1] sm:$0xff]   ;;  %162 = vmatprep.mubr.msk.bf16.mxu0 %vm175_vm0, %v174_v0  ;;  %v169_v2 = vld [vmem:[%s231_s1 + $0x8] sm:$0xff]   ;;  %v170_v3 = vld [vmem:[%s231_s1 + $0x10] sm:$0xff]  }
   0x2   :  { %151 = vmatpush3.bf16.msra.mxu0 %v168_v1  ;;  %v171_v4 = vld [vmem:[%s231_s1 + $0x18] sm:$0xff]   ;;  %v172_v5 = vld [vmem:[%s231_s1 + $0x20] sm:$0xff]   ;;  %v173_v6 = vld [vmem:[%s231_s1 + $0x28] sm:$0xff]  }
   0x3   :  { %152 = vmatprep.subr.bf16.mxu0 %v174_v0  ;;  %v18_v7 = vld [vmem:[%s232_s0] sm:$0xff] }
   0x4   :  { %v19_v8 = vpack.c.bf16 %v18_v7, %v18_v7  ;;  %v141_v9 = vld [vmem:[%s233_s2] ss:$0 sm:$0xff] }
   0x5   :  { %v142_v11 = vld [vmem:[%s234_s3] ss:$0 sm:$0xff] }
   0x6   :  { %153 = vmatpush3.bf16.msra.mxu0 %v169_v2 }
   0x7   :  { %154 = vmatprep.subr.bf16.mxu0 %v174_v0 }
   0xa   :  { %155 = vmatpush3.bf16.msra.mxu0 %v170_v3 }
   0xb   :  { %156 = vmatprep.subr.bf16.mxu0 %v174_v0 }
   0xe   :  { %157 = vmatpush3.bf16.msra.mxu0 %v171_v4 }
   0xf   :  { %158 = vmatprep.subr.bf16.mxu0 %v174_v0 }
  0x12   :  { %159 = vmatpush3.bf16.msra.mxu0 %v172_v5 }
  0x13   :  { %160 = vmatprep.subr.bf16.mxu0 %v174_v0 }
  0x16   :  { %161 = vmatpush3.bf16.msra.mxu0 %v173_v6 }
  0x19   :  { %163 = vmatmul.mubr.msk.bf16.vlgmr.msra.gmra.mrb[0].mxu0 %vm68_vm1, %v19_v8 }
  0xec   :  { %v106_v10 = vpop.f32.mrb[0].mxu0 }
  0xed   :  { %v119_v12 = vmul.f32 %v141_v9, %v106_v10  ;;  %v164_v13 = vpop.f32.mrb[1].mxu0 }
  0xee   :  { %v109_v14 = vpop.f32.mrb[2].mxu0 }
  0xef   :  { %v127_v15 = vadd.f32 %v142_v11, %v119_v12  ;;  %v165_v16 = vpop.f32.mrb[3].mxu0 }
  0xf1   :  { %129 = vst.msk [vmem:[%s235_s4] sm:$0xff] %vm128_vm2, %v127_v15 }

// kernel: _encoder_forward.19
= control target key start
LH: loop header
LB: loop body
LE: loop exit
PB: predicated region body
PF: predicated region fallthrough
CT: control target
= control target key end

     0   :  { %12 = vsyncpa [#allocation3], 0  ;;  %v218_v1 = vmov 0.0   ;;  %vm219_vm0 = vmmov 0   ;;  %s299_s0 = inlined_call_operand.vmem [shape: f32[8,32], index: 0, kind: input, shape index: {}]   ;;  %s300_s1 = inlined_call_operand.vmem [shape: bf16[32,128], index: 1, kind: input, shape index: {}]   ;;  %s301_s2 = inlined_call_operand.vmem [shape: f32[1,128], index: 2, kind: input, shape index: {}]   ;;  %s302_s3 = inlined_call_operand.vmem [shape: f32[1,128], index: 3, kind: input, shape index: {}]   ;;  %s303_s4 = inlined_call_operand.hbm [shape: f32[8,128], index: 4, kind: output, shape index: {0}]   ;;  %s304_s5 = inlined_call_operand.hbm [shape: f32[8,128], index: 5, kind: output, shape index: {1}]   ;;  %s305_s6 = inlined_call_operand.vmem [shape: f32[8,128], index: 6, kind: output, shape index: {2}]  }
   0x1   :  { %v164_v0 = vld [vmem:[%s300_s1] sm:$0xff]   ;;  %152 = vmatprep.subr.bf16.mxu0 %v218_v1  ;;  %v165_v2 = vld [vmem:[%s300_s1 + $0x8] sm:$0xff]   ;;  %156 = vmatprep.mubr.msk.bf16.mxu0 %vm219_vm0, %v218_v1 }
   0x2   :  { %153 = vmatpush3.bf16.msra.mxu0 %v164_v0  ;;  %v23_v3 = vld [vmem:[%s299_s0] sm:$0xff] }
   0x3   :  { %13 = vsyncpa [#allocation5], 0  ;;  %154 = vmatprep.subr.bf16.mxu0 %v218_v1  ;;  %v24_v4 = vpack.c.bf16 %v23_v3, %v23_v3  ;;  %vm41_vm1 = vcmask 261120   ;;  %s220_s27 = smov [#allocation2]   ;;  %v146_v5 = vld [vmem:[%s301_s2] ss:$0 sm:$0xff] }
   0x4   :  { %s117_s28 = sshll.u32 %s220_s27, 4  ;;  %v147_v7 = vld [vmem:[%s302_s3] ss:$0 sm:$0xff]  ;;  %s221_s8 = smov [#allocation4]   ;;  %s118_s28 = int_to_ptr.vmem [resolvable:$true] %s117_s28 }
   0x5   :  { %s127_s0 = sshll.u32 %s221_s8, 4  ;;  %s170_s9 = scalar_lea.vmem %s118_s28, 128  ;;  %s128_s0 = int_to_ptr.vmem [resolvable:$true] %s127_s0 }
   0x6   :  { %155 = vmatpush3.bf16.msra.mxu0 %v165_v2  ;;  %p171_p0 = scmp.ne.s32.totalorder %s118_s28, %s170_s9  ;;  %p175_p1 = scmp.lt.s32.totalorder %s118_s28, %s118_s28 }
   0x7   :  { %p176_p2 = scmp.lt.s32.totalorder %s170_s9, %s170_s9 }
   0x9   :  { %157 = vmatmul.mubr.msk.bf16.vlgmr.msra.gmra.mrb[0].mxu0 %vm41_vm1, %v24_v4  ;;  %p177_p3 = por %p176_p2, %p175_p1 }
   0xb   :  { %p178_p4 = pnand %p177_p3, %p171_p0 }
  0xdc   :  { %v79_v6 = vpop.f32.mrb[0].mxu0 }
  0xdd   :  { %v93_v8 = vmul.f32 %v146_v5, %v79_v6  ;;  %85 = vst [vmem:[#allocation2] sm:$0xff] %v79_v6  ;;  %v158_v9 = vpop.f32.mrb[1].mxu0 }
  0xde   :  { %v82_v10 = vpop.f32.mrb[2].mxu0 }
  0xdf   :  { %181 = shalt.err (!%p178_p4)
}
  0xe0   :  { %s182_s11 = scalar_lea.hbm %s303_s4, 128 }
  0xe1   :  { %p183_p5 = scmp.ne.s32.totalorder %s303_s4, %s182_s11  ;;  %p186_p6 = scmp.lt.u32.totalorder %s182_s11, %s303_s4 }
  0xe3   :  { %p188_p7 = pnand %p186_p6, %p183_p5 }
  0xe5   :  { %191 = shalt.err (!%p188_p7)
}
  0xe6   :  { %120 = dma.vmem_to_hbm [thread:$0]  %s118_s28, 128, %s303_s4, [#allocation3]   ;;  %v101_v11 = vadd.f32 %v147_v7, %v93_v8  ;;  %v159_v12 = vpop.f32.mrb[3].mxu0 }
  0xe7   :  { %s192_s17 = scalar_lea.vmem %s128_s0, 128  ;;  %p197_p9 = scmp.lt.s32.totalorder %s128_s0, %s128_s0 }
  0xe8   :  { %v148_v13 = vmul.f32 -1.442695, %v101_v11  ;;  %102 = vst [vmem:[#allocation4] sm:$0xff] %v101_v11  ;;  %p193_p8 = scmp.ne.s32.totalorder %s128_s0, %s192_s17  ;;  %p198_p10 = scmp.lt.s32.totalorder %s192_s17, %s192_s17 }
  0xea   :  { %p199_p11 = por %p198_p10, %p197_p9 }
  0xec   :  { %p200_p12 = pnand %p199_p11, %p193_p8 }
  0xee   :  { %203 = shalt.err (!%p200_p12)
}
  0xef   :  { %s204_s20 = scalar_lea.hbm %s304_s5, 128 }
  0xf0   :  { %p205_p13 = scmp.ne.s32.totalorder %s304_s5, %s204_s20  ;;  %p208_p0 = scmp.lt.u32.totalorder %s204_s20, %s304_s5 }
  0xf2   :  { %p210_p1 = pnand %p208_p0, %p205_p13 }
  0xf4   :  { %213 = shalt.err (!%p210_p1)
}
  0xf5   :  { %130 = dma.vmem_to_hbm [thread:$0]  %s128_s0, 128, %s304_s5, [#allocation5]   ;;  %166 = vpow2.f32 %v148_v13 }
  0xff   :  { %v167_v14 = vpop.eup %166 }
 0x100   :  { %v106_v15 = vadd.f32 1.0, %v167_v14 }
 0x102   :  { %168 = vrcp.f32 %v106_v15 }
 0x10c   :  { %v169_v16 = vpop.eup %168 }
 0x10d   :  { %v109_v17 = vmul.f32 %v169_v16, %v101_v11 }
 0x10f   :  { %110 = vst [vmem:[%s305_s6] sm:$0xff] %v109_v17 }
 0x110   :  { %214 = dma.done.wait [#allocation3], 128  }
 0x111   :  { %215 = vsyncadd [#allocation3], 4294967168 }
 0x112   :  { %216 = dma.done.wait [#allocation5], 128  }
 0x113   :  { %217 = vsyncadd [#allocation5], 4294967168 }
 0x114   :  { %141 = vsyncpa [#allocation3], 1 }
 0x115   :  { %142 = vsyncpa [#allocation5], 1 }

// kernel: _encoder_forward.17
= control target key start
LH: loop header
LB: loop body
LE: loop exit
PB: predicated region body
PF: predicated region fallthrough
CT: control target
= control target key end

     0   :  { %s641_s15 = smov 0   ;;  %s643_s16 = smov 0   ;;  %s740_s0 = inlined_call_operand.vmem [shape: f32[4,2,3,3,96], index: 0, kind: input, shape index: {}]   ;;  %s741_s1 = inlined_call_operand.vmem [shape: f32[9,1,1,1,96], index: 1, kind: input, shape index: {}]   ;;  %s742_s2 = inlined_call_operand.vmem [shape: f32[1,1,1,96], index: 2, kind: input, shape index: {}]   ;;  %s743_s3 = inlined_call_operand.vmem [shape: f32[1,1,1,96], index: 3, kind: input, shape index: {}]   ;;  %s744_s4 = inlined_call_operand.vmem [shape: f32[2,2,2,96], index: 4, kind: output, shape index: {}]  }
   0x1   :  { %s645_s17 = smov 0  }
   0x2 LB: > { %s518_s18 = sadd.s32 4294967295, %s614_s17   ;;  %s658_s19 = sadd.s32 1, %s614_s17   ;;  %s614_s17 = sphi %s645_s17, %s747_s17   ;;  %s610_s16 = sphi %s643_s16, %s746_s16   ;;  %s606_s15 = sphi %s641_s15, %s745_s15  }
   0x3   : > { %s18_s20 = ssub.s32 %s614_s17, %s658_s19  ;;  %s21_s21 = sadd.s32 1, %s610_s16 }
   0x4   : > { %p19_p0 = scmp.eq.s32.totalorder %s18_s20, 0  ;;  %p28_p1 = scmp.ne.s32.totalorder %s610_s16, %s606_s15 }
   0x5   : > { %p29_p2 = scmp.eq.s32.totalorder %s614_s17, 0  ;;  %p521_p4 = scmp.ge.s32.totalorder %s614_s17, 2 }
   0x6   : > { %s667_s22 = scalar_select %p19_p0, %s610_s16, %s21_s21  }
   0x7   : > { %p30_p3 = por %p29_p2, %p28_p1  ;;  %152 = sbr.rel (%p521_p4) target bundleno = 23 (0x17), region = 28 }
   0xe   : > { %155 = sbr.rel (!%p30_p3) target bundleno = 23 (0x17), region = 32  ;;  %s157_s23 = sand.u32 (%p30_p3), 1, %s610_s16  }
   0xf   : > { %s558_s24 = smul.u32 (%p30_p3), 12, %s614_s17 }
  0x10   : > { %s557_s25 = smul.u32 (%p30_p3), 48, %s157_s23 }
  0x11   : > { %s162_s28 = scalar_lea.vmem (%p30_p3), %s740_s0, %s558_s24 }
  0x12   : > { %v178_v0 = vld [vmem:[%s162_s28] sm:$0xff] (%p30_p3)   ;;  %v182_v1 = vld [vmem:[%s162_s28 + $0x8] sm:$0xf] (%p30_p3)  ;;  %v184_v2 = vld [vmem:[%s162_s28 + $0x18] sm:$0xff] (%p30_p3)   ;;  %s159_s29 = scalar_lea.vmem (%p30_p3), [#allocation2], %s557_s25 }
  0x13   : > { %179 = vst [vmem:[%s159_s29] sm:$0xff] (%p30_p3), %v178_v0   ;;  %183 = vst [vmem:[%s159_s29 + $0x8] sm:$0xf] (%p30_p3), %v182_v1  ;;  %v188_v3 = vld [vmem:[%s162_s28 + $0x20] sm:$0xf] (%p30_p3)  ;;  %v190_v4 = vld [vmem:[%s162_s28 + $0x30] sm:$0xff] (%p30_p3)  }
  0x14   : > { %185 = vst [vmem:[%s159_s29 + $0xc] sm:$0xff] (%p30_p3), %v184_v2   ;;  %v194_v5 = vld [vmem:[%s162_s28 + $0x38] sm:$0xf] (%p30_p3)  ;;  %189 = vst [vmem:[%s159_s29 + $0x14] sm:$0xf] (%p30_p3), %v188_v3  ;;  %v196_v6 = vld [vmem:[%s162_s28 + $0x48] sm:$0xff] (%p30_p3)  }
  0x15   : > { %191 = vst [vmem:[%s159_s29 + $0x18] sm:$0xff] %v190_v4   ;;  %195 = vst [vmem:[%s159_s29 + $0x20] sm:$0xf] %v194_v5  ;;  %v200_v7 = vld [vmem:[%s162_s28 + $0x50] sm:$0xf] }
  0x16   : > { %197 = vst [vmem:[%s159_s29 + $0x24] sm:$0xff] %v196_v6   ;;  %201 = vst [vmem:[%s159_s29 + $0x2c] sm:$0xf] %v200_v7 }
  0x17 PF: > { %p523_p5 = scmp.ge.s32.totalorder %s614_s17, 1  ;;  %p247_p6 = scmp.lt.s32.totalorder %s614_s17, 3 }
  0x19   : > { %p248_p7 = pnand %p523_p5, %p247_p6 }
  0x1a   : > { %s254_s30 = sand.u32 (!%p248_p7), 1, %s606_s15   ;;  %v533_v8 = vld [vmem:[%s741_s1] ss:$0 sm:$0xff] (!%p248_p7)  ;;  %v537_v9 = vld [vmem:[%s741_s1 + $0x2] ss:$0 sm:$0xff] (!%p248_p7)  ;;  %p279_p8 = scmp.lt.s32.totalorder (!%p248_p7), %s518_s18, 1 }
  0x1b   : > { %251 = sbr.rel (%p248_p7) target bundleno = 85 (0x55), region = 73  ;;  %v535_v10 = vld [vmem:[%s741_s1 + $0x1] ss:$0 sm:$0xff] (!%p248_p7)  ;;  %v539_v11 = vld [vmem:[%s741_s1 + $0x3] ss:$0 sm:$0xff] (!%p248_p7)  ;;  %vm454_vm0 = vcmask (!%p248_p7), 779264  }
  0x1c   : > { %s559_s5 = smul.u32 (!%p248_p7), 48, %s254_s30  ;;  %v543_v14 = vld [vmem:[%s741_s1 + $0x5] ss:$0 sm:$0xff] (!%p248_p7)  ;;  %v541_v27 = vld [vmem:[%s741_s1 + $0x4] ss:$0 sm:$0xff] (!%p248_p7) }
  0x1d   : > { %v545_v39 = vld [vmem:[%s741_s1 + $0x6] ss:$0 sm:$0xff] (!%p248_p7)  ;;  %v549_v40 = vld [vmem:[%s741_s1 + $0x8] ss:$0 sm:$0xff] (!%p248_p7)  ;;  %v547_v48 = vld [vmem:[%s741_s1 + $0x7] ss:$0 sm:$0xff] (!%p248_p7) }
  0x1e   : > { %s690_s14 = scalar_lea.vmem (!%p248_p7), [#allocation2], %s559_s5  ;;  %v550_v1 = vld [vmem:[%s742_s2] ss:$0 sm:$0xff] (!%p248_p7) }
  0x1f   : > { %v284_v12 = vld [vmem:[%s690_s14] sm:$0x7] (!%p248_p7)  ;;  %v285_v13 = vld [vmem:[%s690_s14 + $0x4] sm:$0x7] (!%p248_p7)  ;;  %v526_v15 = vld [vmem:[%s690_s14 + $0xc] sm:$0x7] (!%p248_p7) }
  0x20   : > { %v527_v16 = vld [vmem:[%s690_s14 + $0x10] sm:$0x7] (!%p248_p7)  ;;  %v529_v17 = vld [vmem:[%s690_s14 + $0x18] sm:$0x7] (!%p248_p7)  ;;  %v304_v18 = vmul.f32 (!%p248_p7), %v533_v8, %v284_v12  ;;  %v305_v19 = vmul.f32 (!%p248_p7), %v533_v8, %v285_v13  ;;  %v328_v20 = vmul.f32 (!%p248_p7), %v537_v9, %v284_v12  ;;  %v329_v21 = vmul.f32 (!%p248_p7), %v537_v9, %v285_v13  ;;  %v531_v24 = vld [vmem:[%s690_s14 + $0x24] sm:$0x7] (!%p248_p7) }
  0x21   : > { %v316_v22 = vmul.f32 (!%p248_p7), %v535_v10, %v526_v15  ;;  %v317_v23 = vmul.f32 (!%p248_p7), %v535_v10, %v527_v16  ;;  %v346_v30 = vmul.f32 (!%p248_p7), %v539_v11, %v529_v17  ;;  %v370_v31 = vmul.f32 (!%p248_p7), %v543_v14, %v529_v17  ;;  %v530_v32 = vld [vmem:[%s690_s14 + $0x1c] sm:$0x7] (!%p248_p7)  ;;  %v532_v33 = vld [vmem:[%s690_s14 + $0x28] sm:$0x7] (!%p248_p7)  ;;  %v528_v50 = vld [vmem:[%s690_s14 + $0x14] sm:$0x7] (!%p248_p7) }
  0x22   : > { %v332_v25 = vrot.slane %v328_v20, 1  ;;  %v333_v26 = vrot.slane %v329_v21, 1  ;;  %v347_v34 = vmul.f32 %v539_v11, %v530_v32  ;;  %v371_v35 = vmul.f32 %v543_v14, %v530_v32  ;;  %v286_v42 = vld [vmem:[%s690_s14 + $0x8] sm:$0x7]  ;;  %v551_v4 = vld [vmem:[%s743_s3] ss:$0 sm:$0xff] }
  0x23   : > { %v318_v28 = vadd.f32 %v316_v22, %v304_v18  ;;  %v319_v29 = vadd.f32 %v317_v23, %v305_v19  ;;  %v358_v38 = vmul.f32 %v541_v27, %v531_v24  ;;  %v359_v41 = vmul.f32 %v541_v27, %v532_v33  ;;  %s749_s18 = smov (!%p279_p8, %s518_s18), 1 }
  0x24   : > { %v374_v44 = vrot.slane %v370_v31, 1  ;;  %v375_v46 = vrot.slane %v371_v35, 1  ;;  %v388_v47 = vmul.f32 %v545_v39, %v285_v13  ;;  %v412_v49 = vmul.f32 %v549_v40, %v285_v13  ;;  %s556_s8 = sshll.u32 %s749_s18, 2 }
  0x25   : > { %v336_v36 = vadd.f32 %v332_v25, %v318_v28  ;;  %v337_v37 = vadd.f32 %v333_v26, %v319_v29  ;;  %v389_v53 = vmul.f32 %v545_v39, %v286_v42  ;;  %v413_v54 = vmul.f32 %v549_v40, %v286_v42  ;;  %s283_s11 = scalar_lea.vmem %s744_s4, %s556_s8 }
  0x26   : > { %v400_v56 = vmul.f32 %v547_v48, %v527_v16  ;;  %v401_v58 = vmul.f32 %v547_v48, %v528_v50  ;;  %v416_v60 = vrot.slane %v412_v49, 1 }
  0x27   : > { %v348_v43 = vadd.f32 %v346_v30, %v336_v36  ;;  %v349_v45 = vadd.f32 %v347_v34, %v337_v37  ;;  %v417_v62 = vrot.slane %v413_v54, 1 }
  0x29   : > { %v360_v51 = vadd.f32 %v358_v38, %v348_v43  ;;  %v361_v52 = vadd.f32 %v359_v41, %v349_v45 }
  0x2b   : > { %v378_v55 = vadd.f32 %v374_v44, %v360_v51  ;;  %v379_v57 = vadd.f32 %v375_v46, %v361_v52 }
  0x2d   : > { %v390_v59 = vadd.f32 %v388_v47, %v378_v55  ;;  %v391_v61 = vadd.f32 %v389_v53, %v379_v57 }
  0x2f   : > { %v402_v63 = vadd.f32 %v400_v56, %v390_v59  ;;  %v403_v0 = vadd.f32 %v401_v58, %v391_v61 }
  0x31   : > { %v420_v2 = vadd.f32 %v416_v60, %v402_v63  ;;  %v421_v3 = vadd.f32 %v417_v62, %v403_v0 }
  0x33   : > { %v429_v5 = vmul.f32 %v550_v1, %v420_v2  ;;  %v430_v6 = vmul.f32 %v550_v1, %v421_v3 }
  0x35   : > { %v438_v7 = vadd.f32 %v551_v4, %v429_v5  ;;  %v439_v8 = vadd.f32 %v551_v4, %v430_v6 }
  0x37   : > { %v552_v9 = vmul.f32 -1.442695, %v438_v7  ;;  %v553_v10 = vmul.f32 -1.442695, %v439_v8 }
  0x39   : > { %584 = vpow2.f32 %v552_v9 }
  0x3a   : > { %586 = vpow2.f32 %v553_v10 }
  0x43   : > { %v585_v11 = vpop.eup %584 }
  0x44   : > { %v587_v12 = vpop.eup %586  ;;  %v446_v13 = vadd.f32 1.0, %v585_v11 }
  0x45   : > { %v447_v14 = vadd.f32 1.0, %v587_v12 }
  0x46   : > { %588 = vrcp.f32 %v446_v13 }
  0x47   : > { %590 = vrcp.f32 %v447_v14 }
  0x50   : > { %v589_v15 = vpop.eup %588 }
  0x51   : > { %v591_v16 = vpop.eup %590  ;;  %v452_v17 = vmul.f32 %v589_v15, %v438_v7 }
  0x52   : > { %v453_v18 = vmul.f32 %v591_v16, %v439_v8 }
  0x53   : > { %455 = vst.msk [vmem:[%s283_s11] sm:$0x3] %vm454_vm0, %v452_v17 }
  0x54   : > { %456 = vst.msk [vmem:[%s283_s11 + $0x2] sm:$0x3] %vm454_vm0, %v453_v18 }
  0x55 PF: > { %p11_p9 = scmp.ge.s32.totalorder %s658_s19, 4   ;;  %s745_s15 = smov %s610_s16 }
  0x56   : > { %s746_s16 = smov %s667_s22  ;;  %s747_s17 = smov %s658_s19 }
  0x57   :  { %13 = sbr.rel (!%p11_p9) target bundleno = 2 (0x2), region = 123 }

</bundles_post_ra>
